<compile_context>
chip_gen: v7x
topology: tpu7x:2x2x1
jax: 0.10.0
libtpu: 0.0.40
codegen_flags: <defaults>
</compile_context>

<pallas_src>
import functools

import jax
import jax.numpy as jnp
from jax.experimental import pallas as pl
from jax.experimental.pallas import tpu as pltpu


def make_kernel(H, W, C, *, eps=1e-5, compute_dtype=jnp.float32):
    """Per-sample residual-block kernel (grid iterates over the batch)."""
    inv_n = 1.0 / float(H * W)

    def reflect_pad(x):
        # x: (H, W, C) value -> (H+2, W+2, C) value (ReflectionPad2d(1)).
        rows = jnp.concatenate([x[1:2, :, :], x, x[H - 2:H - 1, :, :]], axis=0)
        return jnp.concatenate(
            [rows[:, 1:2, :], rows, rows[:, W - 2:W - 1, :]], axis=1)

    def im2col(xp):
        # xp: (H+2, W+2, C) -> (H*W, 9*C); column order = tap*C + cin, matching
        # the (9*C, C) weight layout built in the wrapper.
        taps = [xp[dy:dy + H, dx:dx + W, :]
                for dy in range(3) for dx in range(3)]
        return jnp.concatenate(taps, axis=-1).reshape(H * W, 9 * C)

    def conv3x3(x_hwc, w_ref, b_ref):
        # One fused matmul: (H*W, 9C) @ (9C, C), f32 accumulation on the MXU.
        patch = im2col(reflect_pad(x_hwc)).astype(compute_dtype)
        out = jnp.dot(patch, w_ref[...], preferred_element_type=jnp.float32)
        return out + b_ref[0, :]

    def instance_norm(flat):
        # flat: (H*W, C). Single pass: sum + sum-of-squares from the same data.
        s = jnp.sum(flat, axis=0, keepdims=True)
        ss = jnp.sum(flat * flat, axis=0, keepdims=True)
        mean = s * inv_n
        var = jnp.maximum(ss * inv_n - mean * mean, 0.0)
        return (flat - mean) * jax.lax.rsqrt(var + eps)

    def kernel(x_ref, w1_ref, b1_ref, w2_ref, b2_ref, o_ref):
        x = x_ref[0].astype(jnp.float32)                    # (H, W, C)

        h = instance_norm(conv3x3(x, w1_ref, b1_ref))       # (H*W, C)
        h = jnp.maximum(h, 0.0)                             # ReLU
        h = instance_norm(conv3x3(h.reshape(H, W, C), w2_ref, b2_ref))

        o_ref[0] = (x + h.reshape(H, W, C)).astype(o_ref.dtype)

    return kernel


def _vmem_limit_bytes(H, W, C, itemsize=4):
    """Per-grid-step VMEM footprint estimate (with headroom), capped by HW."""
    blk = H * W * C * itemsize
    est = (4 * blk                                    # in/out double buffers
           + 2 * 2 * (9 * C * C + C) * itemsize       # both weight sets + bias
           + 2 * (H + 2) * (W + 2) * C * itemsize     # padded value
           + 3 * H * W * 9 * C * itemsize             # im2col patch + slack
           + 6 * blk)                                 # conv / norm temporaries
    try:
        cap = int(pltpu.get_tpu_info().vmem_capacity_bytes) * 3 // 4
    except Exception:
        cap = 48 * 1024 * 1024                        # safe on v5e/v6e/v7x
    return int(min(max(2 * est, 32 * 1024 * 1024), cap))


def residual_block_nhwc(x_nhwc, w1, b1, w2, b2, *,
                        compute_dtype=jnp.float32, eps=1e-5):
    """NHWC residual block. x: (N, H, W, C); w*: (C, C, 3, 3) OIHW; b*: (C,)."""
    N, H, W, C = x_nhwc.shape

    def prep_w(w):
        # (O, I, Kh, Kw) -> (Kh, Kw, I, O) -> (9*Cin, Cout); row = tap*Cin+cin.
        return jnp.transpose(w, (2, 3, 1, 0)).reshape(9 * C, C).astype(
            compute_dtype)

    w1k, w2k = prep_w(w1), prep_w(w2)
    b1k = b1.reshape(1, C).astype(jnp.float32)
    b2k = b2.reshape(1, C).astype(jnp.float32)

    return pl.pallas_call(
        make_kernel(H, W, C, eps=eps, compute_dtype=compute_dtype),
        out_shape=jax.ShapeDtypeStruct((N, H, W, C), x_nhwc.dtype),
        grid_spec=pltpu.PrefetchScalarGridSpec(
            num_scalar_prefetch=0,
            grid=(N,),
            in_specs=[
                pl.BlockSpec((1, H, W, C), lambda n: (n, 0, 0, 0)),
                pl.BlockSpec((9 * C, C), lambda n: (0, 0)),
                pl.BlockSpec((1, C), lambda n: (0, 0)),
                pl.BlockSpec((9 * C, C), lambda n: (0, 0)),
                pl.BlockSpec((1, C), lambda n: (0, 0)),
            ],
            out_specs=pl.BlockSpec((1, H, W, C), lambda n: (n, 0, 0, 0)),
        ),
        compiler_params=pltpu.CompilerParams(
            dimension_semantics=("parallel",),
            vmem_limit_bytes=_vmem_limit_bytes(H, W, C)),
    )(x_nhwc, w1k, b1k, w2k, b2k)


@functools.partial(jax.jit, static_argnames=("compute_dtype", "eps"))
def residual_block(x_nchw, w1, b1, w2, b2, *,
                   compute_dtype=jnp.float32, eps=1e-5):
    """NCHW (PyTorch-convention) wrapper. Prefer residual_block_nhwc when
    chaining blocks, to avoid the extra HBM transposes."""
    x = jnp.transpose(x_nchw, (0, 2, 3, 1))                 # NCHW -> NHWC
    out = residual_block_nhwc(x, w1, b1, w2, b2,
                              compute_dtype=compute_dtype, eps=eps)
    return jnp.transpose(out, (0, 3, 1, 2))                 # NHWC -> NCHW


def reference(x, w1, b1, w2, b2):
    """Pure-JAX reference of the PyTorch forward (NCHW)."""
    def pad(a):
        return jnp.pad(a, ((0, 0), (0, 0), (1, 1), (1, 1)), mode="reflect")

    def conv(a, w, b):
        y = jax.lax.conv_general_dilated(
            a, w, (1, 1), "VALID",
            dimension_numbers=("NCHW", "OIHW", "NCHW"))
        return y + b[None, :, None, None]

    def inorm(a):
        m = a.mean(axis=(2, 3), keepdims=True)
        v = ((a - m) ** 2).mean(axis=(2, 3), keepdims=True)
        return (a - m) * jax.lax.rsqrt(v + 1e-5)

    h = inorm(conv(pad(x), w1, b1))
    h = jnp.maximum(h, 0.0)
    h = inorm(conv(pad(h), w2, b2))
    return x + h


if __name__ == "__main__":
    N, C, H, W = 2, 4, 16, 16
    key = jax.random.PRNGKey(0)
    kx, kw1, kb1, kw2, kb2 = jax.random.split(key, 5)

    x = jax.random.normal(kx, (N, C, H, W), dtype=jnp.float32)
    w1 = 0.1 * jax.random.normal(kw1, (C, C, 3, 3), dtype=jnp.float32)
    b1 = 0.1 * jax.random.normal(kb1, (C,), dtype=jnp.float32)
    w2 = 0.1 * jax.random.normal(kw2, (C, C, 3, 3), dtype=jnp.float32)
    b2 = 0.1 * jax.random.normal(kb2, (C,), dtype=jnp.float32)

    ref = reference(x, w1, b1, w2, b2)

    # f32-operand path (matches PyTorch numerics).
    out = jax.block_until_ready(residual_block(x, w1, b1, w2, b2))
    assert out.shape == (N, C, H, W) and out.dtype == jnp.float32
    assert jnp.allclose(out, ref, atol=2e-3, rtol=2e-3), "f32 mismatch vs ref"

    # bf16-operand MXU path (v6e/v7x perf suggestion), f32 accumulation.
    out_bf16 = jax.block_until_ready(
        residual_block(x, w1, b1, w2, b2, compute_dtype=jnp.bfloat16))
    assert jnp.allclose(out_bf16, ref, atol=5e-2, rtol=5e-2), "bf16 mismatch"

    print("KERNEL_OK")
</pallas_src>

<mosaic_0001>
module attributes {stable_mosaic.version = 11 : i64} {
  func.func @kernel(%arg0: i32, %arg1: memref<1x16x16x4xf32, #tpu.memory_space<vmem>>, %arg2: memref<36x4xf32, #tpu.memory_space<vmem>>, %arg3: memref<1x4xf32, #tpu.memory_space<vmem>>, %arg4: memref<36x4xf32, #tpu.memory_space<vmem>>, %arg5: memref<1x4xf32, #tpu.memory_space<vmem>>, %arg6: memref<1x16x16x4xf32, #tpu.memory_space<vmem>>) attributes {dimension_semantics = [#tpu.dimension_semantics<parallel>], iteration_bounds = array<i64: 2>, scalar_prefetch = 0 : i64, scratch_operands = 0 : i64, tpu.core_type = #tpu.core_type<tc>, window_params = [{transform_indices = @transform_0, window_bounds = array<i64: 1, 16, 16, 4>}, {pipeline_mode = #tpu.pipeline_mode<synchronous>, transform_indices = @transform_1, window_bounds = array<i64: 36, 4>}, {pipeline_mode = #tpu.pipeline_mode<synchronous>, transform_indices = @transform_2, window_bounds = array<i64: 1, 4>}, {pipeline_mode = #tpu.pipeline_mode<synchronous>, transform_indices = @transform_3, window_bounds = array<i64: 36, 4>}, {pipeline_mode = #tpu.pipeline_mode<synchronous>, transform_indices = @transform_4, window_bounds = array<i64: 1, 4>}, {transform_indices = @transform_5, window_bounds = array<i64: 1, 16, 16, 4>}]} {
    %c0 = arith.constant 0 : index
    %c0_0 = arith.constant 0 : index
    %c0_1 = arith.constant 0 : index
    %c0_2 = arith.constant 0 : index
    %0 = vector.load %arg1[%c0, %c0_0, %c0_1, %c0_2] : memref<1x16x16x4xf32, #tpu.memory_space<vmem>>, vector<1x16x16x4xf32>
    %1 = vector.shape_cast %0 : vector<1x16x16x4xf32> to vector<16x16x4xf32>
    %2 = vector.extract_strided_slice %1 {offsets = [1, 0, 0], sizes = [1, 16, 4], strides = [1, 1, 1]} : vector<16x16x4xf32> to vector<1x16x4xf32>
    %3 = vector.extract_strided_slice %1 {offsets = [14, 0, 0], sizes = [1, 16, 4], strides = [1, 1, 1]} : vector<16x16x4xf32> to vector<1x16x4xf32>
    %4 = tpu.concatenate %2, %1, %3 in 0 : vector<1x16x4xf32>, vector<16x16x4xf32>, vector<1x16x4xf32> -> vector<18x16x4xf32>
    %5 = vector.extract_strided_slice %4 {offsets = [0, 1, 0], sizes = [18, 1, 4], strides = [1, 1, 1]} : vector<18x16x4xf32> to vector<18x1x4xf32>
    %6 = vector.extract_strided_slice %4 {offsets = [0, 14, 0], sizes = [18, 1, 4], strides = [1, 1, 1]} : vector<18x16x4xf32> to vector<18x1x4xf32>
    %7 = tpu.concatenate %5, %4, %6 in 1 : vector<18x1x4xf32>, vector<18x16x4xf32>, vector<18x1x4xf32> -> vector<18x18x4xf32>
    %8 = vector.extract_strided_slice %7 {offsets = [0, 0, 0], sizes = [16, 16, 4], strides = [1, 1, 1]} : vector<18x18x4xf32> to vector<16x16x4xf32>
    %9 = vector.extract_strided_slice %7 {offsets = [0, 1, 0], sizes = [16, 16, 4], strides = [1, 1, 1]} : vector<18x18x4xf32> to vector<16x16x4xf32>
    %10 = vector.extract_strided_slice %7 {offsets = [0, 2, 0], sizes = [16, 16, 4], strides = [1, 1, 1]} : vector<18x18x4xf32> to vector<16x16x4xf32>
    %11 = vector.extract_strided_slice %7 {offsets = [1, 0, 0], sizes = [16, 16, 4], strides = [1, 1, 1]} : vector<18x18x4xf32> to vector<16x16x4xf32>
    %12 = vector.extract_strided_slice %7 {offsets = [1, 1, 0], sizes = [16, 16, 4], strides = [1, 1, 1]} : vector<18x18x4xf32> to vector<16x16x4xf32>
    %13 = vector.extract_strided_slice %7 {offsets = [1, 2, 0], sizes = [16, 16, 4], strides = [1, 1, 1]} : vector<18x18x4xf32> to vector<16x16x4xf32>
    %14 = vector.extract_strided_slice %7 {offsets = [2, 0, 0], sizes = [16, 16, 4], strides = [1, 1, 1]} : vector<18x18x4xf32> to vector<16x16x4xf32>
    %15 = vector.extract_strided_slice %7 {offsets = [2, 1, 0], sizes = [16, 16, 4], strides = [1, 1, 1]} : vector<18x18x4xf32> to vector<16x16x4xf32>
    %16 = vector.extract_strided_slice %7 {offsets = [2, 2, 0], sizes = [16, 16, 4], strides = [1, 1, 1]} : vector<18x18x4xf32> to vector<16x16x4xf32>
    %17 = tpu.concatenate %8, %9, %10, %11, %12, %13, %14, %15, %16 in 2 : vector<16x16x4xf32>, vector<16x16x4xf32>, vector<16x16x4xf32>, vector<16x16x4xf32>, vector<16x16x4xf32>, vector<16x16x4xf32>, vector<16x16x4xf32>, vector<16x16x4xf32>, vector<16x16x4xf32> -> vector<16x16x36xf32>
    %18 = vector.shape_cast %17 : vector<16x16x36xf32> to vector<256x36xf32>
    %c0_3 = arith.constant 0 : index
    %c0_4 = arith.constant 0 : index
    %19 = vector.load %arg2[%c0_3, %c0_4] : memref<36x4xf32, #tpu.memory_space<vmem>>, vector<36x4xf32>
    %cst = arith.constant dense<0.000000e+00> : vector<256x4xf32>
    %20 = tpu.matmul %18, %19, %cst {dimension_numbers = #tpu.dot_dimension_numbers<[1], [0], [0], [1], [0, 0, 1, 1], [], []>} : vector<256x36xf32>, vector<36x4xf32>, vector<256x4xf32> -> vector<256x4xf32>
    %c0_5 = arith.constant 0 : index
    %c0_6 = arith.constant 0 : index
    %21 = vector.load %arg3[%c0_5, %c0_6] : memref<1x4xf32, #tpu.memory_space<vmem>>, vector<1x4xf32>
    %22 = vector.shape_cast %21 : vector<1x4xf32> to vector<4xf32>
    %23 = vector.shape_cast %22 : vector<4xf32> to vector<1x4xf32>
    %24 = vector.broadcast %23 : vector<1x4xf32> to vector<256x4xf32>
    %25 = arith.addf %20, %24 : vector<256x4xf32>
    %cst_7 = arith.constant dense<0.000000e+00> : vector<4xf32>
    %26 = vector.multi_reduction <add>, %25, %cst_7 [0] : vector<256x4xf32> to vector<4xf32>
    %27 = vector.shape_cast %26 : vector<4xf32> to vector<1x4xf32>
    %28 = arith.mulf %25, %25 : vector<256x4xf32>
    %cst_8 = arith.constant dense<0.000000e+00> : vector<4xf32>
    %29 = vector.multi_reduction <add>, %28, %cst_8 [0] : vector<256x4xf32> to vector<4xf32>
    %30 = vector.shape_cast %29 : vector<4xf32> to vector<1x4xf32>
    %cst_9 = arith.constant 3.906250e-03 : f32
    %31 = vector.broadcast %cst_9 : f32 to vector<1x4xf32>
    %32 = arith.mulf %27, %31 : vector<1x4xf32>
    %cst_10 = arith.constant 3.906250e-03 : f32
    %33 = vector.broadcast %cst_10 : f32 to vector<1x4xf32>
    %34 = arith.mulf %30, %33 : vector<1x4xf32>
    %35 = arith.mulf %32, %32 : vector<1x4xf32>
    %36 = arith.subf %34, %35 : vector<1x4xf32>
    %cst_11 = arith.constant 0.000000e+00 : f32
    %37 = vector.broadcast %cst_11 : f32 to vector<1x4xf32>
    %38 = arith.maximumf %36, %37 : vector<1x4xf32>
    %39 = vector.broadcast %32 : vector<1x4xf32> to vector<256x4xf32>
    %40 = arith.subf %25, %39 : vector<256x4xf32>
    %cst_12 = arith.constant 9.99999974E-6 : f32
    %41 = vector.broadcast %cst_12 : f32 to vector<1x4xf32>
    %42 = arith.addf %38, %41 : vector<1x4xf32>
    %43 = math.rsqrt %42 : vector<1x4xf32>
    %44 = vector.broadcast %43 : vector<1x4xf32> to vector<256x4xf32>
    %45 = arith.mulf %40, %44 : vector<256x4xf32>
    %cst_13 = arith.constant 0.000000e+00 : f32
    %46 = vector.broadcast %cst_13 : f32 to vector<256x4xf32>
    %47 = arith.maximumf %45, %46 : vector<256x4xf32>
    %48 = vector.shape_cast %47 : vector<256x4xf32> to vector<16x16x4xf32>
    %49 = vector.extract_strided_slice %48 {offsets = [1, 0, 0], sizes = [1, 16, 4], strides = [1, 1, 1]} : vector<16x16x4xf32> to vector<1x16x4xf32>
    %50 = vector.extract_strided_slice %48 {offsets = [14, 0, 0], sizes = [1, 16, 4], strides = [1, 1, 1]} : vector<16x16x4xf32> to vector<1x16x4xf32>
    %51 = tpu.concatenate %49, %48, %50 in 0 : vector<1x16x4xf32>, vector<16x16x4xf32>, vector<1x16x4xf32> -> vector<18x16x4xf32>
    %52 = vector.extract_strided_slice %51 {offsets = [0, 1, 0], sizes = [18, 1, 4], strides = [1, 1, 1]} : vector<18x16x4xf32> to vector<18x1x4xf32>
    %53 = vector.extract_strided_slice %51 {offsets = [0, 14, 0], sizes = [18, 1, 4], strides = [1, 1, 1]} : vector<18x16x4xf32> to vector<18x1x4xf32>
    %54 = tpu.concatenate %52, %51, %53 in 1 : vector<18x1x4xf32>, vector<18x16x4xf32>, vector<18x1x4xf32> -> vector<18x18x4xf32>
    %55 = vector.extract_strided_slice %54 {offsets = [0, 0, 0], sizes = [16, 16, 4], strides = [1, 1, 1]} : vector<18x18x4xf32> to vector<16x16x4xf32>
    %56 = vector.extract_strided_slice %54 {offsets = [0, 1, 0], sizes = [16, 16, 4], strides = [1, 1, 1]} : vector<18x18x4xf32> to vector<16x16x4xf32>
    %57 = vector.extract_strided_slice %54 {offsets = [0, 2, 0], sizes = [16, 16, 4], strides = [1, 1, 1]} : vector<18x18x4xf32> to vector<16x16x4xf32>
    %58 = vector.extract_strided_slice %54 {offsets = [1, 0, 0], sizes = [16, 16, 4], strides = [1, 1, 1]} : vector<18x18x4xf32> to vector<16x16x4xf32>
    %59 = vector.extract_strided_slice %54 {offsets = [1, 1, 0], sizes = [16, 16, 4], strides = [1, 1, 1]} : vector<18x18x4xf32> to vector<16x16x4xf32>
    %60 = vector.extract_strided_slice %54 {offsets = [1, 2, 0], sizes = [16, 16, 4], strides = [1, 1, 1]} : vector<18x18x4xf32> to vector<16x16x4xf32>
    %61 = vector.extract_strided_slice %54 {offsets = [2, 0, 0], sizes = [16, 16, 4], strides = [1, 1, 1]} : vector<18x18x4xf32> to vector<16x16x4xf32>
    %62 = vector.extract_strided_slice %54 {offsets = [2, 1, 0], sizes = [16, 16, 4], strides = [1, 1, 1]} : vector<18x18x4xf32> to vector<16x16x4xf32>
    %63 = vector.extract_strided_slice %54 {offsets = [2, 2, 0], sizes = [16, 16, 4], strides = [1, 1, 1]} : vector<18x18x4xf32> to vector<16x16x4xf32>
    %64 = tpu.concatenate %55, %56, %57, %58, %59, %60, %61, %62, %63 in 2 : vector<16x16x4xf32>, vector<16x16x4xf32>, vector<16x16x4xf32>, vector<16x16x4xf32>, vector<16x16x4xf32>, vector<16x16x4xf32>, vector<16x16x4xf32>, vector<16x16x4xf32>, vector<16x16x4xf32> -> vector<16x16x36xf32>
    %65 = vector.shape_cast %64 : vector<16x16x36xf32> to vector<256x36xf32>
    %c0_14 = arith.constant 0 : index
    %c0_15 = arith.constant 0 : index
    %66 = vector.load %arg4[%c0_14, %c0_15] : memref<36x4xf32, #tpu.memory_space<vmem>>, vector<36x4xf32>
    %cst_16 = arith.constant dense<0.000000e+00> : vector<256x4xf32>
    %67 = tpu.matmul %65, %66, %cst_16 {dimension_numbers = #tpu.dot_dimension_numbers<[1], [0], [0], [1], [0, 0, 1, 1], [], []>} : vector<256x36xf32>, vector<36x4xf32>, vector<256x4xf32> -> vector<256x4xf32>
    %c0_17 = arith.constant 0 : index
    %c0_18 = arith.constant 0 : index
    %68 = vector.load %arg5[%c0_17, %c0_18] : memref<1x4xf32, #tpu.memory_space<vmem>>, vector<1x4xf32>
    %69 = vector.shape_cast %68 : vector<1x4xf32> to vector<4xf32>
    %70 = vector.shape_cast %69 : vector<4xf32> to vector<1x4xf32>
    %71 = vector.broadcast %70 : vector<1x4xf32> to vector<256x4xf32>
    %72 = arith.addf %67, %71 : vector<256x4xf32>
    %cst_19 = arith.constant dense<0.000000e+00> : vector<4xf32>
    %73 = vector.multi_reduction <add>, %72, %cst_19 [0] : vector<256x4xf32> to vector<4xf32>
    %74 = vector.shape_cast %73 : vector<4xf32> to vector<1x4xf32>
    %75 = arith.mulf %72, %72 : vector<256x4xf32>
    %cst_20 = arith.constant dense<0.000000e+00> : vector<4xf32>
    %76 = vector.multi_reduction <add>, %75, %cst_20 [0] : vector<256x4xf32> to vector<4xf32>
    %77 = vector.shape_cast %76 : vector<4xf32> to vector<1x4xf32>
    %cst_21 = arith.constant 3.906250e-03 : f32
    %78 = vector.broadcast %cst_21 : f32 to vector<1x4xf32>
    %79 = arith.mulf %74, %78 : vector<1x4xf32>
    %cst_22 = arith.constant 3.906250e-03 : f32
    %80 = vector.broadcast %cst_22 : f32 to vector<1x4xf32>
    %81 = arith.mulf %77, %80 : vector<1x4xf32>
    %82 = arith.mulf %79, %79 : vector<1x4xf32>
    %83 = arith.subf %81, %82 : vector<1x4xf32>
    %cst_23 = arith.constant 0.000000e+00 : f32
    %84 = vector.broadcast %cst_23 : f32 to vector<1x4xf32>
    %85 = arith.maximumf %83, %84 : vector<1x4xf32>
    %86 = vector.broadcast %79 : vector<1x4xf32> to vector<256x4xf32>
    %87 = arith.subf %72, %86 : vector<256x4xf32>
    %cst_24 = arith.constant 9.99999974E-6 : f32
    %88 = vector.broadcast %cst_24 : f32 to vector<1x4xf32>
    %89 = arith.addf %85, %88 : vector<1x4xf32>
    %90 = math.rsqrt %89 : vector<1x4xf32>
    %91 = vector.broadcast %90 : vector<1x4xf32> to vector<256x4xf32>
    %92 = arith.mulf %87, %91 : vector<256x4xf32>
    %93 = vector.shape_cast %92 : vector<256x4xf32> to vector<16x16x4xf32>
    %94 = arith.addf %1, %93 : vector<16x16x4xf32>
    %c0_25 = arith.constant 0 : index
    %c0_26 = arith.constant 0 : index
    %c0_27 = arith.constant 0 : index
    %c0_28 = arith.constant 0 : index
    %95 = vector.load %arg6[%c0_25, %c0_26, %c0_27, %c0_28] : memref<1x16x16x4xf32, #tpu.memory_space<vmem>>, vector<1x16x16x4xf32>
    %96 = vector.shape_cast %95 : vector<1x16x16x4xf32> to vector<16x16x4xf32>
    %97 = vector.shape_cast %94 : vector<16x16x4xf32> to vector<1x16x16x4xf32>
    tpu.vector_store %arg6[%c0_25, %c0_26, %c0_27, %c0_28], %97 {strides = array<i32>} : memref<1x16x16x4xf32, #tpu.memory_space<vmem>>, vector<1x16x16x4xf32>,
    return
  }
  func.func @transform_0(%arg0: i32) -> (i32, i32, i32, i32) {
    %c0_i32 = arith.constant 0 : i32
    %c0_i32_0 = arith.constant 0 : i32
    %c0_i32_1 = arith.constant 0 : i32
    %c0_i32_2 = arith.constant 0 : i32
    return %arg0, %c0_i32, %c0_i32_0, %c0_i32_1 : i32, i32, i32, i32
  }
  func.func @transform_1(%arg0: i32) -> (i32, i32) {
    %c0_i32 = arith.constant 0 : i32
    %c0_i32_0 = arith.constant 0 : i32
    %c0_i32_1 = arith.constant 0 : i32
    return %c0_i32, %c0_i32_0 : i32, i32
  }
  func.func @transform_2(%arg0: i32) -> (i32, i32) {
    %c0_i32 = arith.constant 0 : i32
    %c0_i32_0 = arith.constant 0 : i32
    %c0_i32_1 = arith.constant 0 : i32
    return %c0_i32, %c0_i32_0 : i32, i32
  }
  func.func @transform_3(%arg0: i32) -> (i32, i32) {
    %c0_i32 = arith.constant 0 : i32
    %c0_i32_0 = arith.constant 0 : i32
    %c0_i32_1 = arith.constant 0 : i32
    return %c0_i32, %c0_i32_0 : i32, i32
  }
  func.func @transform_4(%arg0: i32) -> (i32, i32) {
    %c0_i32 = arith.constant 0 : i32
    %c0_i32_0 = arith.constant 0 : i32
    %c0_i32_1 = arith.constant 0 : i32
    return %c0_i32, %c0_i32_0 : i32, i32
  }
  func.func @transform_5(%arg0: i32) -> (i32, i32, i32, i32) {
    %c0_i32 = arith.constant 0 : i32
    %c0_i32_0 = arith.constant 0 : i32
    %c0_i32_1 = arith.constant 0 : i32
    %c0_i32_2 = arith.constant 0 : i32
    return %arg0, %c0_i32, %c0_i32_0, %c0_i32_1 : i32, i32, i32, i32
  }
}

</mosaic_0001>

<bundles_post_ra>
// kernel: residual_block.1
= control target key start
LH: loop header
LB: loop body
LE: loop exit
PB: predicated region body
PF: predicated region fallthrough
CT: control target
= control target key end

     0   :  { %s4770_s18 = smov 0   ;;  %s9012_s0 = inlined_call_operand.vmem [shape: f32[2,16,16,4], index: 0, kind: input, shape index: {}]   ;;  %s9013_s1 = inlined_call_operand.vmem [shape: f32[36,4], index: 1, kind: input, shape index: {}]   ;;  %s9014_s2 = inlined_call_operand.vmem [shape: f32[1,4], index: 2, kind: input, shape index: {}]   ;;  %s9015_s3 = inlined_call_operand.vmem [shape: f32[36,4], index: 3, kind: input, shape index: {}]   ;;  %s9016_s4 = inlined_call_operand.vmem [shape: f32[1,4], index: 4, kind: input, shape index: {}]   ;;  %s9017_s5 = inlined_call_operand.vmem [shape: f32[2,16,16,4], index: 5, kind: output, shape index: {}]  }
   0x1 LB: > { %s4385_s19 = sadd.s32 4294967295, %s4730_s18   ;;  %p4389_p0 = scmp.ge.s32.totalorder %s4730_s18, 1  ;;  %s4730_s18 = sphi %s4770_s18, %s15_s18  }
   0x2   : > { %p187_p1 = scmp.lt.s32.totalorder %s4730_s18, 3 }
   0x4   : > { %p188_p2 = pnand %p4389_p0, %p187_p1 }
   0x6   : > { %191 = sbr.rel (%p188_p2) target bundleno = 1803 (0x70b), region = 40 }
   0xd   : > { %p215_p3 = scmp.lt.s32.totalorder %s4385_s19, 1  ;;  %vm321_vm0 = vcmask 1040384   ;;  %vm511_vm1 = vcmask 1046528   ;;  %s4732_s24 = smov 4   ;;  %vm677_vm2 = vcmask 1045504   ;;  %vm1782_vm3 = vcmask 1043456  }
   0xe   : > { %s4733_s25 = smov 8   ;;  %s4734_s26 = smov 12   ;;  %vm1413_vm4 = vcmask 31744   ;;  %vm1444_vm5 = vcmask 64512   ;;  %vm1475_vm6 = vcmask 97280   ;;  %vm1508_vm7 = vcmask 130048  }
   0xf   : > { %s9734_s19 = smov (!%p215_p3, %s4385_s19), 1  ;;  %s4735_s27 = smov 16   ;;  %vm1541_vm8 = vcmask 162816   ;;  %vm1574_vm9 = vcmask 195584   ;;  %vm1607_vm10 = vcmask 228352   ;;  %vm1640_vm11 = vcmask 261120  }
  0x10   : > { %s4464_s20 = sshll.u32 %s9734_s19, 8  ;;  %s4736_s11 = smov 20   ;;  %vm1685_vm12 = vcmask 293888  }
  0x11   : > { %s4786_s23 = scalar_lea.vmem %s9012_s0, %s4464_s20  ;;  %s4737_s14 = smov 24  }
  0x12   : > { %v227_v0 = vld [vmem:[%s4786_s23 + $0x10] sm:$0xff]  ;;  %v228_v1 = vld [vmem:[%s4786_s23 + $0x18] sm:$0xff]  ;;  %v225_v2 = vld [vmem:[%s4786_s23] sm:$0xff]  ;;  %s4738_s15 = smov 28   ;;  %s4739_s16 = smov 32  }
  0x13   : > { %v273_v3 = vrot.slane %v227_v0, 1  ;;  %v322_v4 = vrot.slane %v227_v0, 7  ;;  %v323_v5 = vrot.slane %v228_v1, 7  ;;  %v226_v6 = vld [vmem:[%s4786_s23 + $0x8] sm:$0xff]  ;;  %v274_v7 = vrot.slane %v225_v2, 1  ;;  %v229_v8 = vld [vmem:[%s4786_s23 + $0x20] sm:$0xff]  ;;  %s8891_s12 = scalar_lea.vmem %s9017_s5, %s4464_s20 }
  0x14   : > { %v325_v9 = vrot.slane %v225_v2, 7  ;;  %v326_v10 = vrot.slane %v226_v6, 7  ;;  %v417_v11 = vrot.slane %v228_v1, 5  ;;  %v418_v12 = vrot.slane %v226_v6, 5  ;;  %v230_v15 = vld [vmem:[%s4786_s23 + $0x28] sm:$0xff]  ;;  %v231_v22 = vld [vmem:[%s4786_s23 + $0x30] sm:$0xff] }
  0x15   : > { %v4794_v13 = vsel %vm321_vm0, %v322_v4, %v323_v5  ;;  %v4797_v14 = vsel %vm321_vm0, %v273_v3, %v322_v4  ;;  %v275_v16 = vrot.slane %v229_v8, 1  ;;  %v328_v17 = vrot.slane %v229_v8, 7  ;;  %v232_v31 = vld [vmem:[%s4786_s23 + $0x38] sm:$0xff]  ;;  %v233_v36 = vld [vmem:[%s4786_s23 + $0x40] sm:$0xff]  ;;  %v234_v41 = vld [vmem:[%s4786_s23 + $0x48] sm:$0xff] }
  0x16   : > { %v512_v18 = vrot.slane %v4797_v14, 1  ;;  %v513_v19 = vrot.slane %v4794_v13, 1  ;;  %v4803_v20 = vsel %vm321_vm0, %v325_v9, %v326_v10  ;;  %v4806_v21 = vsel %vm321_vm0, %v274_v7, %v325_v9  ;;  %v235_v54 = vld [vmem:[%s4786_s23 + $0x50] sm:$0xff]  ;;  %v236_v59 = vld [vmem:[%s4786_s23 + $0x58] sm:$0xff]  ;;  %v237_v0 = vld [vmem:[%s4786_s23 + $0x60] sm:$0xff] }
  0x17   : > { %v517_v23 = vrot.slane %v4806_v21, 1  ;;  %v518_v24 = vrot.slane %v4803_v20, 1  ;;  %v4812_v25 = vsel %vm321_vm0, %v323_v5, %v417_v11  ;;  %v4815_v26 = vsel %vm321_vm0, %v326_v10, %v418_v12  ;;  %v238_v4 = vld [vmem:[%s4786_s23 + $0x68] sm:$0xff] }
  0x18   : > { %v4818_v27 = vsel %vm511_vm1, %v512_v18, %v513_v19  ;;  %v515_v28 = vrot.slane %v4812_v25, 1  ;;  %v520_v29 = vrot.slane %v4815_v26, 1  ;;  %v329_v30 = vrot.slane %v230_v15, 7 }
  0x19   : > { %587 = vrot.lane.b32.xlu0 %v4818_v27, %s4732_s24  ;;  %v4826_v32 = vsel %vm511_vm1, %v517_v23, %v518_v24  ;;  %v4829_v33 = vsel %vm321_vm0, %v275_v16, %v328_v17  ;;  %v419_v34 = vrot.slane %v230_v15, 5  ;;  %v276_v35 = vrot.slane %v231_v22, 1  ;;  %v240_v23 = vld [vmem:[%s4786_s23 + $0x78] sm:$0xff] }
  0x1a   : > { %591 = vrot.lane.b32.xlu1 %v4826_v32, %s4732_s24  ;;  %v4835_v37 = vsel %vm511_vm1, %v513_v19, %v515_v28  ;;  %v4838_v38 = vsel %vm511_vm1, %v518_v24, %v520_v29  ;;  %v4841_v39 = vsel %vm321_vm0, %v328_v17, %v329_v30  ;;  %v522_v40 = vrot.slane %v4829_v33, 1 }
  0x1b   : > { %v523_v42 = vrot.slane %v4841_v39, 1  ;;  %v4847_v43 = vsel %vm321_vm0, %v329_v30, %v419_v34  ;;  %v331_v44 = vrot.slane %v231_v22, 7  ;;  %v332_v45 = vrot.slane %v232_v31, 7  ;;  %v239_v22 = vld [vmem:[%s4786_s23 + $0x70] sm:$0xff]  ;;  %v241_v30 = vld [vmem:[%s4786_s23 + $0x80] sm:$0xff] }
  0x1c   : > { %v525_v46 = vrot.slane %v4847_v43, 1  ;;  %v420_v47 = vrot.slane %v232_v31, 5  ;;  %v277_v48 = vrot.slane %v233_v36, 1  ;;  %v334_v49 = vrot.slane %v233_v36, 7 }
  0x1d   : > { %589 = vrot.lane.b32.xlu0 %v4835_v37, %s4732_s24  ;;  %v4853_v50 = vsel %vm511_vm1, %v522_v40, %v523_v42  ;;  %v4856_v51 = vsel %vm321_vm0, %v331_v44, %v332_v45  ;;  %v4859_v52 = vsel %vm321_vm0, %v276_v35, %v331_v44  ;;  %v335_v53 = vrot.slane %v234_v41, 7  ;;  %v242_v40 = vld [vmem:[%s4786_s23 + $0x88] sm:$0xff] }
  0x1e   : > { %593 = vrot.lane.b32.xlu1 %v4838_v38, %s4732_s24  ;;  %v4865_v55 = vsel %vm511_vm1, %v523_v42, %v525_v46  ;;  %v527_v56 = vrot.slane %v4859_v52, 1  ;;  %v528_v57 = vrot.slane %v4856_v51, 1  ;;  %v4870_v58 = vsel %vm321_vm0, %v332_v45, %v420_v47 }
  0x1f   : > { %9237 = vst [vmem:[#allocation2_spill] sm:$0xff] %v4865_v55  ;;  %v530_v60 = vrot.slane %v4870_v58, 1  ;;  %v4875_v61 = vsel %vm321_vm0, %v334_v49, %v335_v53  ;;  %v4878_v62 = vsel %vm321_vm0, %v277_v48, %v334_v49  ;;  %v421_v63 = vrot.slane %v234_v41, 5 }
  0x20   : > { %v4882_v1 = vsel %vm511_vm1, %v527_v56, %v528_v57  ;;  %v532_v2 = vrot.slane %v4878_v62, 1  ;;  %v278_v3 = vrot.slane %v235_v54, 1  ;;  %v533_v5 = vrot.slane %v4875_v61, 1 }
  0x21   : > { %9238 = vst [vmem:[#allocation3_spill] sm:$0xff] %v4882_v1  ;;  %595 = vrot.lane.b32.xlu0 %v4853_v50, %s4732_s24  ;;  %v4890_v6 = vsel %vm321_vm0, %v335_v53, %v421_v63  ;;  %v337_v7 = vrot.slane %v235_v54, 7  ;;  %v338_v8 = vrot.slane %v236_v59, 7  ;;  %v4895_v9 = vsel %vm511_vm1, %v528_v57, %v530_v60  ;;  %v244_v60 = vld [vmem:[%s4786_s23 + $0x98] sm:$0xff] }
  0x22   : > { %597 = vrot.lane.b32.xlu1 %v4865_v55, %s4732_s24  ;;  %9239 = vst [vmem:[#allocation4_spill] sm:$0xff] %v4895_v9  ;;  %v535_v10 = vrot.slane %v4890_v6, 1  ;;  %v422_v11 = vrot.slane %v236_v59, 5  ;;  %v279_v12 = vrot.slane %v237_v0, 1  ;;  %v340_v17 = vrot.slane %v237_v0, 7  ;;  %v243_v59 = vld [vmem:[%s4786_s23 + $0x90] sm:$0xff] }
  0x23   : > { %v4899_v15 = vsel %vm321_vm0, %v337_v7, %v338_v8  ;;  %v4902_v16 = vsel %vm321_vm0, %v278_v3, %v337_v7  ;;  %v341_v18 = vrot.slane %v238_v4, 7  ;;  %v4912_v24 = vsel %vm511_vm1, %v532_v2, %v533_v5 }
  0x24   : > { %v4905_v19 = vsel %vm321_vm0, %v338_v8, %v422_v11  ;;  %9240 = vst [vmem:[#allocation5_spill] sm:$0xff] %v4912_v24  ;;  %v4915_v28 = vsel %vm511_vm1, %v533_v5, %v535_v10  ;;  %v423_v29 = vrot.slane %v238_v4, 5  ;;  %v537_v31 = vrot.slane %v4902_v16, 1 }
  0x25   : > { %599 = vrot.lane.b32.xlu0 %v4882_v1, %s4732_s24  ;;  %9241 = vst [vmem:[#allocation6_spill] sm:$0xff] %v4915_v28  ;;  %v538_v34 = vrot.slane %v4899_v15, 1  ;;  %v540_v35 = vrot.slane %v4905_v19, 1  ;;  %v4924_v36 = vsel %vm321_vm0, %v340_v17, %v341_v18  ;;  %v4928_v41 = vsel %vm321_vm0, %v279_v12, %v340_v17  ;;  %v245_v17 = vld [vmem:[%s4786_s23 + $0xa0] sm:$0xff] }
  0x26   : > { %601 = vrot.lane.b32.xlu1 %v4895_v9, %s4732_s24  ;;  %9242 = vst [vmem:[#allocation7_spill] sm:$0xff] %v4924_v36  ;;  %9243 = vst [vmem:[#allocation8_spill] sm:$0xff] %v4928_v41  ;;  %v280_v42 = vrot.slane %v239_v22, 1  ;;  %v343_v44 = vrot.slane %v239_v22, 7  ;;  %v344_v45 = vrot.slane %v240_v23, 7  ;;  %v4931_v46 = vsel %vm321_vm0, %v341_v18, %v423_v29  ;;  %v246_v29 = vld [vmem:[%s4786_s23 + $0xa8] sm:$0xff] }
  0x27   : > { %v424_v47 = vrot.slane %v240_v23, 5  ;;  %v281_v48 = vrot.slane %v241_v30, 1  ;;  %v346_v49 = vrot.slane %v241_v30, 7  ;;  %v347_v53 = vrot.slane %v242_v40, 7  ;;  %v253_v9 = vld [vmem:[%s4786_s23 + $0xe0] sm:$0xff] }
  0x28   : > { %v4938_v54 = vsel %vm511_vm1, %v537_v31, %v538_v34  ;;  %v542_v56 = vrot.slane %v4928_v41, 1  ;;  %v543_v57 = vrot.slane %v4924_v36, 1  ;;  %v4945_v63 = vsel %vm511_vm1, %v538_v34, %v540_v35 }
  0x29   : > { %603 = vrot.lane.b32.xlu0 %v4912_v24, %s4732_s24  ;;  %9244 = vst [vmem:[#allocation9_spill] sm:$0xff] %v4938_v54  ;;  %9245 = vst [vmem:[#allocation10_spill] sm:$0xff] %v4945_v63  ;;  %v545_v0 = vrot.slane %v4931_v46, 1  ;;  %v4949_v2 = vsel %vm321_vm0, %v343_v44, %v344_v45  ;;  %v4952_v3 = vsel %vm321_vm0, %v280_v42, %v343_v44  ;;  %v425_v7 = vrot.slane %v242_v40, 5  ;;  %v252_v24 = vld [vmem:[%s4786_s23 + $0xd8] sm:$0xff] }
  0x2a   : > { %605 = vrot.lane.b32.xlu1 %v4915_v28, %s4732_s24  ;;  %9246 = vst [vmem:[#allocation11_spill] sm:$0xff] %v4949_v2  ;;  %9247 = vst [vmem:[#allocation12_spill] sm:$0xff] %v4952_v3  ;;  %v4955_v4 = vsel %vm321_vm0, %v344_v45, %v424_v47  ;;  %v4958_v5 = vsel %vm321_vm0, %v281_v48, %v346_v49  ;;  %v4963_v8 = vsel %vm321_vm0, %v346_v49, %v347_v53  ;;  %v251_v28 = vld [vmem:[%s4786_s23 + $0xd0] sm:$0xff] }
  0x2b   : > { %9248 = vst [vmem:[#allocation13_spill] sm:$0xff] %v4958_v5  ;;  %v282_v10 = vrot.slane %v243_v59, 1  ;;  %v349_v11 = vrot.slane %v243_v59, 7  ;;  %v350_v12 = vrot.slane %v244_v60, 7  ;;  %v4969_v18 = vsel %vm511_vm1, %v542_v56, %v543_v57 }
  0x2c   : > { %9249 = vst [vmem:[#allocation14_spill] sm:$0xff] %v4969_v18  ;;  %v547_v22 = vrot.slane %v4952_v3, 1  ;;  %v548_v23 = vrot.slane %v4949_v2, 1  ;;  %v4975_v30 = vsel %vm511_vm1, %v543_v57, %v545_v0  ;;  %v550_v31 = vrot.slane %v4955_v4, 1  ;;  %v248_v0 = vld [vmem:[%s4786_s23 + $0xb8] sm:$0xff] }
  0x2d   : > { %607 = vrot.lane.b32.xlu0 %v4938_v54, %s4732_s24  ;;  %9250 = vst [vmem:[#allocation15_spill] sm:$0xff] %v4975_v30  ;;  %v552_v34 = vrot.slane %v4958_v5, 1  ;;  %v553_v35 = vrot.slane %v4963_v8, 1  ;;  %v4981_v40 = vsel %vm321_vm0, %v347_v53, %v425_v7  ;;  %v426_v42 = vrot.slane %v244_v60, 5  ;;  %v247_v60 = vld [vmem:[%s4786_s23 + $0xb0] sm:$0xff] }
  0x2e   : > { %609 = vrot.lane.b32.xlu1 %v4945_v63, %s4732_s24  ;;  %v283_v44 = vrot.slane %v245_v17, 1  ;;  %v4986_v45 = vsel %vm321_vm0, %v349_v11, %v350_v12  ;;  %v4989_v47 = vsel %vm321_vm0, %v282_v10, %v349_v11  ;;  %v352_v48 = vrot.slane %v245_v17, 7  ;;  %v250_v63 = vld [vmem:[%s4786_s23 + $0xc8] sm:$0xff] }
  0x2f   : > { %v353_v49 = vrot.slane %v246_v29, 7  ;;  %v4994_v56 = vsel %vm511_vm1, %v547_v22, %v548_v23  ;;  %v427_v53 = vrot.slane %v246_v29, 5  ;;  %v4997_v57 = vsel %vm511_vm1, %v548_v23, %v550_v31 }
  0x30   : > { %9251 = vst [vmem:[#allocation16_spill] sm:$0xff] %v4994_v56  ;;  %9252 = vst [vmem:[#allocation17_spill] sm:$0xff] %v4997_v57  ;;  %v555_v59 = vrot.slane %v4981_v40, 1  ;;  %v557_v7 = vrot.slane %v4989_v47, 1  ;;  %v558_v10 = vrot.slane %v4986_v45, 1  ;;  %v5005_v11 = vsel %vm321_vm0, %v350_v12, %v426_v42 }
  0x31   : > { %611 = vrot.lane.b32.xlu0 %v4969_v18, %s4732_s24  ;;  %v5010_v17 = vsel %vm511_vm1, %v552_v34, %v553_v35  ;;  %v5013_v22 = vsel %vm321_vm0, %v352_v48, %v353_v49  ;;  %v5016_v23 = vsel %vm321_vm0, %v283_v44, %v352_v48  ;;  %v5021_v29 = vsel %vm321_vm0, %v353_v49, %v427_v53 }
  0x32   : > { %613 = vrot.lane.b32.xlu1 %v4975_v30, %s4732_s24  ;;  %9253 = vst [vmem:[#allocation18_spill] sm:$0xff] %v5010_v17  ;;  %v284_v12 = vrot.slane %v247_v60, 1  ;;  %v355_v31 = vrot.slane %v247_v60, 7  ;;  %v356_v42 = vrot.slane %v248_v0, 7  ;;  %v249_v30 = vld [vmem:[%s4786_s23 + $0xc0] sm:$0xff]  ;;  %v560_v34 = vrot.slane %v5005_v11, 1 }
  0x33   : > { %v428_v18 = vrot.slane %v248_v0, 5  ;;  %v5030_v44 = vsel %vm511_vm1, %v557_v7, %v558_v10  ;;  %v562_v48 = vrot.slane %v5016_v23, 1  ;;  %v563_v49 = vrot.slane %v5013_v22, 1 }
  0x34   : > { %9255 = vst [vmem:[#allocation20_spill] sm:$0xff] %v5030_v44  ;;  %v565_v53 = vrot.slane %v5021_v29, 1  ;;  %v5043_v60 = vsel %vm321_vm0, %v284_v12, %v355_v31  ;;  %v358_v0 = vrot.slane %v249_v30, 7  ;;  %v359_v7 = vrot.slane %v250_v63, 7 }
  0x35   : > { %615 = vrot.lane.b32.xlu0 %v4994_v56, %s4732_s24  ;;  %v5025_v56 = vsel %vm511_vm1, %v553_v35, %v555_v59  ;;  %v285_v35 = vrot.slane %v249_v30, 1  ;;  %v5040_v59 = vsel %vm321_vm0, %v355_v31, %v356_v42  ;;  %9257 = vst [vmem:[#allocation22_spill] sm:$0xff] %v5043_v60  ;;  %v429_v54 = vrot.slane %v250_v63, 5 }
  0x36   : > { %617 = vrot.lane.b32.xlu1 %v4997_v57, %s4732_s24  ;;  %9254 = vst [vmem:[#allocation19_spill] sm:$0xff] %v5025_v56  ;;  %9256 = vst [vmem:[#allocation21_spill] sm:$0xff] %v5040_v59  ;;  %v5049_v57 = vsel %vm321_vm0, %v356_v42, %v428_v18  ;;  %v567_v30 = vrot.slane %v5043_v60, 1  ;;  %v568_v12 = vrot.slane %v5040_v59, 1  ;;  %v5063_v18 = vsel %vm511_vm1, %v563_v49, %v565_v53 }
  0x37   : > { %9260 = vst [vmem:[#allocation25_spill] sm:$0xff] %v5063_v18  ;;  %v570_v63 = vrot.slane %v5049_v57, 1  ;;  %v5070_v31 = vsel %vm321_vm0, %v285_v35, %v358_v0  ;;  %v5073_v42 = vsel %vm321_vm0, %v359_v7, %v429_v54  ;;  %v430_v1 = vrot.slane %v252_v24, 5 }
  0x38   : > { %9262 = vst [vmem:[#allocation27_spill] sm:$0xff] %v5070_v31  ;;  %v572_v53 = vrot.slane %v5070_v31, 1  ;;  %v575_v35 = vrot.slane %v5073_v42, 1 }
  0x39   : > { %619 = vrot.lane.b32.xlu0 %v5010_v17, %s4732_s24  ;;  %v5046_v17 = vsel %vm511_vm1, %v558_v10, %v560_v34  ;;  %v5067_v10 = vsel %vm321_vm0, %v358_v0, %v359_v7  ;;  %v286_v34 = vrot.slane %v251_v28, 1  ;;  %v5086_v54 = vsel %vm511_vm1, %v568_v12, %v570_v63 }
  0x3a   : > { %621 = vrot.lane.b32.xlu1 %v5025_v56, %s4732_s24  ;;  %9258 = vst [vmem:[#allocation23_spill] sm:$0xff] %v5046_v17  ;;  %v5056_v56 = vsel %vm511_vm1, %v562_v48, %v563_v49  ;;  %9261 = vst [vmem:[#allocation26_spill] sm:$0xff] %v5067_v10  ;;  %v361_v48 = vrot.slane %v251_v28, 7  ;;  %v5080_v49 = vsel %vm511_vm1, %v567_v30, %v568_v12  ;;  %v573_v28 = vrot.slane %v5067_v10, 1 }
  0x3b   : > { %9259 = vst [vmem:[#allocation24_spill] sm:$0xff] %v5056_v56  ;;  %9263 = vst [vmem:[#allocation28_spill] sm:$0xff] %v5080_v49  ;;  %v364_v30 = vrot.slane %v253_v9, 7 }
  0x3c   : > { %9264 = vst [vmem:[#allocation29_spill] sm:$0xff] %v5086_v54  ;;  %v5094_v7 = vsel %vm321_vm0, %v286_v34, %v361_v48  ;;  %v5104_v12 = vsel %vm511_vm1, %v572_v53, %v573_v28 }
  0x3d   : > { %623 = vrot.lane.b32.xlu0 %v5030_v44, %s4732_s24  ;;  %v362_v44 = vrot.slane %v252_v24, 7  ;;  %v287_v24 = vrot.slane %v253_v9, 1  ;;  %9266 = vst [vmem:[#allocation31_spill] sm:$0xff] %v5094_v7  ;;  %9267 = vst [vmem:[#allocation32_spill] sm:$0xff] %v5104_v12  ;;  %v577_v63 = vrot.slane %v5094_v7, 1  ;;  %v5109_v9 = vsel %vm511_vm1, %v573_v28, %v575_v35 }
  0x3e   : > { %625 = vrot.lane.b32.xlu1 %v5046_v17, %s4732_s24  ;;  %v254_v17 = vld [vmem:[%s4786_s23 + $0xe8] sm:$0xff]  ;;  %9268 = vst [vmem:[#allocation33_spill] sm:$0xff] %v5109_v9 }
  0x3f   : > { %v5091_v0 = vsel %vm321_vm0, %v361_v48, %v362_v44  ;;  %v5097_v55 = vsel %vm321_vm0, %v362_v44, %v430_v1  ;;  %v5116_v44 = vsel %vm321_vm0, %v287_v24, %v364_v30 }
  0x40   : > { %9265 = vst [vmem:[#allocation30_spill] sm:$0xff] %v5091_v0  ;;  %v578_v34 = vrot.slane %v5091_v0, 1  ;;  %v580_v1 = vrot.slane %v5097_v55, 1  ;;  %9270 = vst [vmem:[#allocation35_spill] sm:$0xff] %v5116_v44  ;;  %v582_v28 = vrot.slane %v5116_v44, 1 }
  0x41   : > { %627 = vrot.lane.b32.xlu0 %v5056_v56, %s4732_s24  ;;  %v365_v56 = vrot.slane %v254_v17, 7 }
  0x42   : > { %629 = vrot.lane.b32.xlu1 %v5063_v18, %s4732_s24  ;;  %v431_v18 = vrot.slane %v254_v17, 5  ;;  %v5126_v53 = vsel %vm511_vm1, %v577_v63, %v578_v34 }
  0x43   : > { %v5113_v17 = vsel %vm321_vm0, %v364_v30, %v365_v56  ;;  %9271 = vst [vmem:[#allocation36_spill] sm:$0xff] %v5126_v53  ;;  %v679_v30 = vrot.slane %v4794_v13, 2 }
  0x44   : > { %9269 = vst [vmem:[#allocation34_spill] sm:$0xff] %v5113_v17  ;;  %v5119_v48 = vsel %vm321_vm0, %v365_v56, %v431_v18  ;;  %v583_v35 = vrot.slane %v5113_v17, 1  ;;  %v678_v18 = vrot.slane %v4797_v14, 2 }
  0x45   : > { %631 = vrot.lane.b32.xlu0 %v5080_v49, %s4732_s24  ;;  %v585_v24 = vrot.slane %v5119_v48, 1 }
  0x46   : > { %633 = vrot.lane.b32.xlu1 %v5086_v54, %s4732_s24  ;;  %v5131_v54 = vsel %vm511_vm1, %v578_v34, %v580_v1  ;;  %v5139_v56 = vsel %vm511_vm1, %v582_v28, %v583_v35  ;;  %v681_v34 = vrot.slane %v4812_v25, 2  ;;  %v5152_v1 = vsel %vm677_vm2, %v678_v18, %v679_v30 }
  0x47   : > { %9272 = vst [vmem:[#allocation37_spill] sm:$0xff] %v5131_v54  ;;  %9273 = vst [vmem:[#allocation38_spill] sm:$0xff] %v5139_v56  ;;  %v5144_v63 = vsel %vm511_vm1, %v583_v35, %v585_v24  ;;  %v683_v28 = vrot.slane %v4806_v21, 2  ;;  %v686_v35 = vrot.slane %v4815_v26, 2  ;;  %v688_v24 = vrot.slane %v4829_v33, 2 }
  0x48   : > { %9274 = vst [vmem:[#allocation39_spill] sm:$0xff] %v5144_v63  ;;  %v689_v18 = vrot.slane %v4841_v39, 2 }
  0x49   : > { %635 = vrot.lane.b32.xlu0 %v5104_v12, %s4732_s24 }
  0x4a   : > { %637 = vrot.lane.b32.xlu1 %v5109_v9, %s4732_s24  ;;  %v5178_v26 = vsel %vm677_vm2, %v688_v24, %v689_v18  ;;  %v699_v24 = vrot.slane %v4875_v61, 2 }
  0x4d   : > { %639 = vrot.lane.b32.xlu0 %v5126_v53, %s4732_s24  ;;  %v5157_v53 = vsel %vm677_vm2, %v679_v30, %v681_v34  ;;  %v691_v30 = vrot.slane %v4847_v43, 2  ;;  %v693_v34 = vrot.slane %v4859_v52, 2 }
  0x4e   : > { %641 = vrot.lane.b32.xlu1 %v5131_v54, %s4732_s24  ;;  %v684_v54 = vrot.slane %v4803_v20, 2 }
  0x50   : > { %v5165_v25 = vsel %vm677_vm2, %v683_v28, %v684_v54  ;;  %v694_v28 = vrot.slane %v4856_v51, 2 }
  0x51   : > { %643 = vrot.lane.b32.xlu0 %v5139_v56, %s4732_s24  ;;  %v5183_v56 = vsel %vm677_vm2, %v689_v18, %v691_v30  ;;  %v701_v18 = vrot.slane %v4890_v6, 2  ;;  %v703_v30 = vrot.slane %v4902_v16, 2 }
  0x52   : > { %645 = vrot.lane.b32.xlu1 %v5144_v63, %s4732_s24  ;;  %v5170_v63 = vsel %vm677_vm2, %v684_v54, %v686_v35  ;;  %v696_v54 = vrot.slane %v4870_v58, 2  ;;  %v5191_v43 = vsel %vm677_vm2, %v693_v34, %v694_v28  ;;  %v698_v35 = vrot.slane %v4878_v62, 2 }
  0x53   : > { %v704_v34 = vrot.slane %v4899_v15, 2  ;;  %v5209_v12 = vsel %vm677_vm2, %v699_v24, %v701_v18  ;;  %v713_v18 = vrot.slane %v4952_v3, 2 }
  0x54   : > { %v5196_v9 = vsel %vm677_vm2, %v694_v28, %v696_v54  ;;  %v5204_v58 = vsel %vm677_vm2, %v698_v35, %v699_v24  ;;  %9275 = vst [vmem:[#allocation40_spill] sm:$0xff] %v5209_v12  ;;  %v706_v28 = vrot.slane %v4905_v19, 2  ;;  %v708_v54 = vrot.slane %v4928_v41, 2 }
  0x55   : > { %753 = vrot.lane.b32.xlu0 %v5152_v1, %s4733_s25  ;;  %v5217_v6 = vsel %vm677_vm2, %v703_v30, %v704_v34  ;;  %v709_v35 = vrot.slane %v4924_v36, 2  ;;  %v711_v24 = vrot.slane %v4931_v46, 2  ;;  %v714_v30 = vrot.slane %v4949_v2, 2 }
  0x56   : > { %755 = vrot.lane.b32.xlu1 %v5157_v53, %s4733_s25  ;;  %v5222_v49 = vsel %vm677_vm2, %v704_v34, %v706_v28  ;;  %v716_v34 = vrot.slane %v4955_v4, 2  ;;  %v718_v28 = vrot.slane %v4958_v5, 2 }
  0x57   : > { %9276 = vst [vmem:[#allocation41_spill] sm:$0xff] %v5222_v49  ;;  %v5230_v19 = vsel %vm677_vm2, %v708_v54, %v709_v35  ;;  %v5243_v46 = vsel %vm677_vm2, %v713_v18, %v714_v30  ;;  %v719_v54 = vrot.slane %v4963_v8, 2  ;;  %v724_v18 = vrot.slane %v4986_v45, 2 }
  0x59   : > { %757 = vrot.lane.b32.xlu0 %v5165_v25, %s4733_s25  ;;  %v5256_v4 = vsel %vm677_vm2, %v718_v28, %v719_v54  ;;  %v729_v28 = vrot.slane %v5013_v22, 2 }
  0x5a   : > { %759 = vrot.lane.b32.xlu1 %v5170_v63, %s4733_s25 }
  0x5d   : > { %761 = vrot.lane.b32.xlu0 %v5178_v26, %s4733_s25 }
  0x5e   : > { %763 = vrot.lane.b32.xlu1 %v5183_v56, %s4733_s25 }
  0x61   : > { %765 = vrot.lane.b32.xlu0 %v5191_v43, %s4733_s25 }
  0x62   : > { %767 = vrot.lane.b32.xlu1 %v5196_v9, %s4733_s25 }
  0x65   : > { %769 = vrot.lane.b32.xlu0 %v5204_v58, %s4733_s25 }
  0x66   : > { %771 = vrot.lane.b32.xlu1 %v5209_v12, %s4733_s25  ;;  %v5235_v12 = vsel %vm677_vm2, %v709_v35, %v711_v24  ;;  %v721_v35 = vrot.slane %v4981_v40, 2  ;;  %v723_v24 = vrot.slane %v4989_v47, 2 }
  0x67   : > { %9277 = vst [vmem:[#allocation42_spill] sm:$0xff] %v5235_v12 }
  0x68   : > { %v5269_v40 = vsel %vm677_vm2, %v723_v24, %v724_v18  ;;  %v734_v24 = vrot.slane %v5040_v59, 2 }
  0x69   : > { %773 = vrot.lane.b32.xlu0 %v5217_v6, %s4733_s25 }
  0x6a   : > { %775 = vrot.lane.b32.xlu1 %v5222_v49, %s4733_s25  ;;  %v5248_v49 = vsel %vm677_vm2, %v714_v30, %v716_v34  ;;  %v726_v30 = vrot.slane %v5005_v11, 2  ;;  %v728_v34 = vrot.slane %v5016_v23, 2 }
  0x6b   : > { %9278 = vst [vmem:[#allocation43_spill] sm:$0xff] %v5248_v49 }
  0x6c   : > { %v5282_v11 = vsel %vm677_vm2, %v728_v34, %v729_v28  ;;  %v739_v34 = vrot.slane %v5067_v10, 2 }
  0x6d   : > { %777 = vrot.lane.b32.xlu0 %v5230_v19, %s4733_s25  ;;  %9281 = vst [vmem:[#allocation46_spill] sm:$0xff] %v5282_v11 }
  0x6e   : > { %779 = vrot.lane.b32.xlu1 %v5235_v12, %s4733_s25  ;;  %v5261_v12 = vsel %vm677_vm2, %v719_v54, %v721_v35  ;;  %v731_v54 = vrot.slane %v5021_v29, 2  ;;  %v733_v35 = vrot.slane %v5043_v60, 2 }
  0x6f   : > { %9279 = vst [vmem:[#allocation44_spill] sm:$0xff] %v5261_v12 }
  0x70   : > { %v5295_v29 = vsel %vm677_vm2, %v733_v35, %v734_v24  ;;  %v744_v35 = vrot.slane %v5091_v0, 2 }
  0x71   : > { %781 = vrot.lane.b32.xlu0 %v5243_v46, %s4733_s25  ;;  %9283 = vst [vmem:[#allocation48_spill] sm:$0xff] %v5295_v29 }
  0x72   : > { %783 = vrot.lane.b32.xlu1 %v5248_v49, %s4733_s25  ;;  %v5274_v49 = vsel %vm677_vm2, %v724_v18, %v726_v30  ;;  %v736_v18 = vrot.slane %v5049_v57, 2  ;;  %v738_v30 = vrot.slane %v5070_v31, 2 }
  0x73   : > { %9280 = vst [vmem:[#allocation45_spill] sm:$0xff] %v5274_v49 }
  0x74   : > { %v5308_v57 = vsel %vm677_vm2, %v738_v30, %v739_v34  ;;  %v749_v30 = vrot.slane %v5113_v17, 2 }
  0x75   : > { %785 = vrot.lane.b32.xlu0 %v5256_v4, %s4733_s25  ;;  %9285 = vst [vmem:[#allocation50_spill] sm:$0xff] %v5308_v57 }
  0x76   : > { %787 = vrot.lane.b32.xlu1 %v5261_v12, %s4733_s25  ;;  %v5287_v12 = vsel %vm677_vm2, %v729_v28, %v731_v54  ;;  %v741_v28 = vrot.slane %v5073_v42, 2  ;;  %v743_v54 = vrot.slane %v5094_v7, 2 }
  0x77   : > { %9282 = vst [vmem:[#allocation47_spill] sm:$0xff] %v5287_v12 }
  0x78   : > { %v5321_v42 = vsel %vm677_vm2, %v743_v54, %v744_v35 }
  0x79   : > { %789 = vrot.lane.b32.xlu0 %v5269_v40, %s4733_s25  ;;  %9287 = vst [vmem:[#allocation52_spill] sm:$0xff] %v5321_v42 }
  0x7a   : > { %791 = vrot.lane.b32.xlu1 %v5274_v49, %s4733_s25  ;;  %v5300_v49 = vsel %vm677_vm2, %v734_v24, %v736_v18  ;;  %v746_v24 = vrot.slane %v5097_v55, 2  ;;  %v748_v18 = vrot.slane %v5116_v44, 2 }
  0x7b   : > { %9284 = vst [vmem:[#allocation49_spill] sm:$0xff] %v5300_v49 }
  0x7c   : > { %v5334_v55 = vsel %vm677_vm2, %v748_v18, %v749_v30 }
  0x7d   : > { %793 = vrot.lane.b32.xlu0 %v5282_v11, %s4733_s25  ;;  %9289 = vst [vmem:[#allocation54_spill] sm:$0xff] %v5334_v55  ;;  %v9342_v11 = vld [vmem:[#allocation15_spill] sm:$0xff] }
  0x7e   : > { %795 = vrot.lane.b32.xlu1 %v5287_v12, %s4733_s25  ;;  %v5313_v12 = vsel %vm677_vm2, %v739_v34, %v741_v28  ;;  %v751_v34 = vrot.slane %v5119_v48, 2 }
  0x7f   : > { %9286 = vst [vmem:[#allocation51_spill] sm:$0xff] %v5313_v12 }
  0x80   : > { %v5339_v54 = vsel %vm677_vm2, %v749_v30, %v751_v34 }
  0x81   : > { %797 = vrot.lane.b32.xlu0 %v5295_v29, %s4733_s25  ;;  %9290 = vst [vmem:[#allocation55_spill] sm:$0xff] %v5339_v54  ;;  %v5457_v29 = vld [vmem:[%s4786_s23 + $0xf8] sm:$0xff] }
  0x82   : > { %799 = vrot.lane.b32.xlu1 %v5300_v49, %s4733_s25  ;;  %v5326_v49 = vsel %vm677_vm2, %v744_v35, %v746_v24  ;;  %9317 = vst [vmem:[#allocation82_spill] sm:$0xff] %v5457_v29 }
  0x83   : > { %9288 = vst [vmem:[#allocation53_spill] sm:$0xff] %v5326_v49 }
  0x85   : > { %801 = vrot.lane.b32.xlu0 %v5308_v57, %s4733_s25 }
  0x86   : > { %803 = vrot.lane.b32.xlu1 %v5313_v12, %s4733_s25 }
  0x89   : > { %805 = vrot.lane.b32.xlu0 %v5321_v42, %s4733_s25 }
  0x8a   : > { %807 = vrot.lane.b32.xlu1 %v5326_v49, %s4733_s25 }
  0x8b   : > { %v5336_v28 = vpop.permute.xlu0 %587 }
  0x8c   : > { %v5341_v12 = vpop.permute.xlu1 %591 }
  0x8d   : > { %809 = vrot.lane.b32.xlu0 %v5334_v55, %s4733_s25 }
  0x8e   : > { %811 = vrot.lane.b32.xlu1 %v5339_v54, %s4733_s25 }
  0x8f   : > { %v5347_v48 = vpop.permute.xlu0 %589 }
  0x90   : > { %v5349_v35 = vpop.permute.xlu1 %593 }
  0x91   : > { %844 = vrot.lane.b32.xlu0 %v4806_v21, %s4734_s26 }
  0x92   : > { %846 = vrot.lane.b32.xlu1 %v4803_v20, %s4734_s26 }
  0x93   : > { %v5355_v24 = vpop.permute.xlu0 %595 }
  0x94   : > { %9291 = vst [vmem:[#allocation56_spill] sm:$0xff] %v5355_v24  ;;  %v5357_v18 = vpop.permute.xlu1 %597 }
  0x95   : > { %9292 = vst [vmem:[#allocation57_spill] sm:$0xff] %v5357_v18  ;;  %848 = vrot.lane.b32.xlu0 %v4797_v14, %s4734_s26  ;;  %v1675_v18 = vld [vmem:[%s9013_s1 + $0x10] sm:$0xff] }
  0x96   : > { %850 = vrot.lane.b32.xlu1 %v4794_v13, %s4734_s26 }
  0x97   : > { %v5363_v30 = vpop.permute.xlu0 %599 }
  0x98   : > { %9293 = vst [vmem:[#allocation58_spill] sm:$0xff] %v5363_v30  ;;  %v5365_v34 = vpop.permute.xlu1 %601 }
  0x99   : > { %9294 = vst [vmem:[#allocation59_spill] sm:$0xff] %v5365_v34  ;;  %852 = vrot.lane.b32.xlu0 %v4829_v33, %s4734_s26 }
  0x9a   : > { %854 = vrot.lane.b32.xlu1 %v4841_v39, %s4734_s26 }
  0x9b   : > { %v5371_v54 = vpop.permute.xlu0 %603 }
  0x9c   : > { %9295 = vst [vmem:[#allocation60_spill] sm:$0xff] %v5371_v54  ;;  %v5373_v55 = vpop.permute.xlu1 %605 }
  0x9d   : > { %9296 = vst [vmem:[#allocation61_spill] sm:$0xff] %v5373_v55  ;;  %856 = vrot.lane.b32.xlu0 %v4859_v52, %s4734_s26 }
  0x9e   : > { %858 = vrot.lane.b32.xlu1 %v4856_v51, %s4734_s26 }
  0x9f   : > { %v5379_v49 = vpop.permute.xlu0 %607 }
  0xa0   : > { %9297 = vst [vmem:[#allocation62_spill] sm:$0xff] %v5379_v49  ;;  %v5381_v42 = vpop.permute.xlu1 %609 }
  0xa1   : > { %9298 = vst [vmem:[#allocation63_spill] sm:$0xff] %v5381_v42  ;;  %860 = vrot.lane.b32.xlu0 %v4878_v62, %s4734_s26 }
  0xa2   : > { %862 = vrot.lane.b32.xlu1 %v4875_v61, %s4734_s26 }
  0xa3   : > { %v5387_v57 = vpop.permute.xlu0 %611 }
  0xa4   : > { %9299 = vst [vmem:[#allocation64_spill] sm:$0xff] %v5387_v57  ;;  %v5389_v54 = vpop.permute.xlu1 %613 }
  0xa5   : > { %9300 = vst [vmem:[#allocation65_spill] sm:$0xff] %v5389_v54  ;;  %864 = vrot.lane.b32.xlu0 %v4902_v16, %s4734_s26 }
  0xa6   : > { %866 = vrot.lane.b32.xlu1 %v4899_v15, %s4734_s26 }
  0xa7   : > { %v5395_v55 = vpop.permute.xlu0 %615 }
  0xa8   : > { %9301 = vst [vmem:[#allocation66_spill] sm:$0xff] %v5395_v55  ;;  %v5397_v49 = vpop.permute.xlu1 %617 }
  0xa9   : > { %9302 = vst [vmem:[#allocation67_spill] sm:$0xff] %v5397_v49  ;;  %868 = vrot.lane.b32.xlu0 %v4928_v41, %s4734_s26 }
  0xaa   : > { %870 = vrot.lane.b32.xlu1 %v4924_v36, %s4734_s26 }
  0xab   : > { %v5403_v42 = vpop.permute.xlu0 %619 }
  0xac   : > { %9303 = vst [vmem:[#allocation68_spill] sm:$0xff] %v5403_v42  ;;  %v5405_v57 = vpop.permute.xlu1 %621 }
  0xad   : > { %9304 = vst [vmem:[#allocation69_spill] sm:$0xff] %v5405_v57  ;;  %872 = vrot.lane.b32.xlu0 %v4952_v3, %s4734_s26 }
  0xae   : > { %874 = vrot.lane.b32.xlu1 %v4949_v2, %s4734_s26 }
  0xaf   : > { %v5411_v54 = vpop.permute.xlu0 %623 }
  0xb0   : > { %9305 = vst [vmem:[#allocation70_spill] sm:$0xff] %v5411_v54  ;;  %v5413_v55 = vpop.permute.xlu1 %625 }
  0xb1   : > { %9306 = vst [vmem:[#allocation71_spill] sm:$0xff] %v5413_v55  ;;  %876 = vrot.lane.b32.xlu0 %v4958_v5, %s4734_s26 }
  0xb2   : > { %878 = vrot.lane.b32.xlu1 %v4963_v8, %s4734_s26 }
  0xb3   : > { %v5419_v49 = vpop.permute.xlu0 %627 }
  0xb4   : > { %9307 = vst [vmem:[#allocation72_spill] sm:$0xff] %v5419_v49  ;;  %v5421_v42 = vpop.permute.xlu1 %629 }
  0xb5   : > { %9308 = vst [vmem:[#allocation73_spill] sm:$0xff] %v5421_v42  ;;  %880 = vrot.lane.b32.xlu0 %v4989_v47, %s4734_s26 }
  0xb6   : > { %882 = vrot.lane.b32.xlu1 %v4986_v45, %s4734_s26 }
  0xb7   : > { %v5427_v54 = vpop.permute.xlu0 %631 }
  0xb8   : > { %9309 = vst [vmem:[#allocation74_spill] sm:$0xff] %v5427_v54  ;;  %v5429_v55 = vpop.permute.xlu1 %633 }
  0xb9   : > { %9310 = vst [vmem:[#allocation75_spill] sm:$0xff] %v5429_v55  ;;  %884 = vrot.lane.b32.xlu0 %v5016_v23, %s4734_s26 }
  0xba   : > { %886 = vrot.lane.b32.xlu1 %v5013_v22, %s4734_s26 }
  0xbb   : > { %v5435_v49 = vpop.permute.xlu0 %635 }
  0xbc   : > { %9311 = vst [vmem:[#allocation76_spill] sm:$0xff] %v5435_v49  ;;  %v5437_v42 = vpop.permute.xlu1 %637  ;;  %v255_v49 = vld [vmem:[%s4786_s23 + $0xf0] sm:$0xff] }
  0xbd   : > { %9312 = vst [vmem:[#allocation77_spill] sm:$0xff] %v5437_v42  ;;  %888 = vrot.lane.b32.xlu0 %v5043_v60, %s4734_s26 }
  0xbe   : > { %890 = vrot.lane.b32.xlu1 %v5040_v59, %s4734_s26  ;;  %v1673_v59 = vld [vmem:[%s9013_s1] sm:$0xff] }
  0xbf   : > { %v5443_v57 = vpop.permute.xlu0 %639 }
  0xc0   : > { %9313 = vst [vmem:[#allocation78_spill] sm:$0xff] %v5443_v57  ;;  %v5445_v54 = vpop.permute.xlu1 %641  ;;  %v367_v57 = vrot.slane %v255_v49, 7 }
  0xc1   : > { %9314 = vst [vmem:[#allocation79_spill] sm:$0xff] %v5445_v54  ;;  %892 = vrot.lane.b32.xlu0 %v5070_v31, %s4734_s26  ;;  %v288_v54 = vrot.slane %v255_v49, 1  ;;  %v9108_v31 = vrot.slane %v5457_v29, 7  ;;  %v9329_v29 = vld [vmem:[#allocation3_spill] sm:$0xff] }
  0xc2   : > { %894 = vrot.lane.b32.xlu1 %v5067_v10, %s4734_s26 }
  0xc3   : > { %v5451_v55 = vpop.permute.xlu0 %643  ;;  %v5480_v49 = vsel %vm321_vm0, %v367_v57, %v9108_v31 }
  0xc4   : > { %9315 = vst [vmem:[#allocation80_spill] sm:$0xff] %v5451_v55  ;;  %v5454_v42 = vpop.permute.xlu1 %645  ;;  %9319 = vst [vmem:[#allocation84_spill] sm:$0xff] %v5480_v49 }
  0xc5   : > { %9316 = vst [vmem:[#allocation81_spill] sm:$0xff] %v5454_v42  ;;  %896 = vrot.lane.b32.xlu0 %v5094_v7, %s4734_s26  ;;  %v5473_v42 = vsel %vm321_vm0, %v288_v54, %v367_v57  ;;  %v9330_v7 = vld [vmem:[#allocation4_spill] sm:$0xff] }
  0xc6   : > { %898 = vrot.lane.b32.xlu1 %v5091_v0, %s4734_s26  ;;  %9318 = vst [vmem:[#allocation83_spill] sm:$0xff] %v5473_v42 }
  0xc7   : > { %v5463_v34 = vpop.permute.xlu0 %753 }
  0xc8   : > { %v5466_v10 = vpop.permute.xlu1 %755 }
  0xc9   : > { %900 = vrot.lane.b32.xlu0 %v5116_v44, %s4734_s26 }
  0xca   : > { %902 = vrot.lane.b32.xlu1 %v5113_v17, %s4734_s26 }
  0xcb   : > { %v5475_v55 = vpop.permute.xlu0 %757 }
  0xcc   : > { %v5482_v0 = vpop.permute.xlu1 %759 }
  0xcd   : > { %904 = vrot.lane.b32.xlu0 %v5473_v42, %s4734_s26 }
  0xce   : > { %906 = vrot.lane.b32.xlu1 %v5480_v49, %s4734_s26 }
  0xcf   : > { %v5488_v44 = vpop.permute.xlu0 %761 }
  0xd0   : > { %9320 = vst [vmem:[#allocation85_spill] sm:$0xff] %v5488_v44  ;;  %v5490_v17 = vpop.permute.xlu1 %763  ;;  %v1676_v44 = vld [vmem:[%s9013_s1 + $0x18] sm:$0xff] }
  0xd1   : > { %9321 = vst [vmem:[#allocation86_spill] sm:$0xff] %v5490_v17  ;;  %946 = vrot.lane.b32.xlu0 %v4826_v32, %s4735_s27  ;;  %v9326_v32 = vld [vmem:[#allocation2_spill] sm:$0xff] }
  0xd2   : > { %948 = vrot.lane.b32.xlu1 %v4838_v38, %s4735_s27 }
  0xd3   : > { %v5496_v57 = vpop.permute.xlu0 %765 }
  0xd4   : > { %9322 = vst [vmem:[#allocation87_spill] sm:$0xff] %v5496_v57  ;;  %v5498_v54 = vpop.permute.xlu1 %767  ;;  %v9334_v57 = vld [vmem:[#allocation6_spill] sm:$0xff] }
  0xd5   : > { %9323 = vst [vmem:[#allocation88_spill] sm:$0xff] %v5498_v54  ;;  %950 = vrot.lane.b32.xlu0 %v4818_v27, %s4735_s27 }
  0xd6   : > { %952 = vrot.lane.b32.xlu1 %v4835_v37, %s4735_s27 }
  0xd7   : > { %v5504_v31 = vpop.permute.xlu0 %769 }
  0xd8   : > { %9324 = vst [vmem:[#allocation89_spill] sm:$0xff] %v5504_v31  ;;  %v5506_v49 = vpop.permute.xlu1 %771 }
  0xd9   : > { %9325 = vst [vmem:[#allocation90_spill] sm:$0xff] %v5506_v49  ;;  %954 = vrot.lane.b32.xlu0 %v4853_v50, %s4735_s27  ;;  %v9333_v49 = vld [vmem:[#allocation5_spill] sm:$0xff] }
  0xda   : > { %956 = vrot.lane.b32.xlu1 %v9326_v32, %s4735_s27 }
  0xdb   : > { %v5512_v38 = vpop.permute.xlu0 %773 }
  0xdc   : > { %9327 = vst [vmem:[#allocation2_spill] sm:$0xff] %v5512_v38  ;;  %v5514_v42 = vpop.permute.xlu1 %775 }
  0xdd   : > { %9328 = vst [vmem:[#allocation91_spill] sm:$0xff] %v5514_v42  ;;  %958 = vrot.lane.b32.xlu0 %v9329_v29, %s4735_s27  ;;  %v9337_v42 = vld [vmem:[#allocation9_spill] sm:$0xff] }
  0xde   : > { %960 = vrot.lane.b32.xlu1 %v9330_v7, %s4735_s27 }
  0xdf   : > { %v5520_v54 = vpop.permute.xlu0 %777 }
  0xe0   : > { %9331 = vst [vmem:[#allocation3_spill] sm:$0xff] %v5520_v54  ;;  %v5522_v31 = vpop.permute.xlu1 %779  ;;  %v9338_v54 = vld [vmem:[#allocation10_spill] sm:$0xff] }
  0xe1   : > { %9332 = vst [vmem:[#allocation4_spill] sm:$0xff] %v5522_v31  ;;  %962 = vrot.lane.b32.xlu0 %v9333_v49, %s4735_s27  ;;  %v1674_v31 = vld [vmem:[%s9013_s1 + $0x8] sm:$0xff] }
  0xe2   : > { %964 = vrot.lane.b32.xlu1 %v9334_v57, %s4735_s27  ;;  %v4656_v60 = vpack.c.bf16 %v1674_v31, %v1673_v59  ;;  %v4660_v59 = vpack.c.bf16 %v1676_v44, %v1675_v18 }
  0xe3   : > { %v5528_v30 = vpop.permute.xlu0 %781 }
  0xe4   : > { %9335 = vst [vmem:[#allocation5_spill] sm:$0xff] %v5528_v30  ;;  %v5530_v38 = vpop.permute.xlu1 %783  ;;  %4657 = vmatprep.subr.bf16.mxu0 %v4656_v60 }
  0xe5   : > { %9336 = vst [vmem:[#allocation6_spill] sm:$0xff] %v5530_v38  ;;  %966 = vrot.lane.b32.xlu0 %v9337_v42, %s4735_s27  ;;  %v9341_v38 = vld [vmem:[#allocation14_spill] sm:$0xff]  ;;  %4659 = vmatpush3.bf16.msra.mxu0 %v4656_v60 }
  0xe6   : > { %968 = vrot.lane.b32.xlu1 %v9338_v54, %s4735_s27  ;;  %4661 = vmatprep.subr.bf16.mxu0 %v4660_v59  ;;  %v1677_v60 = vld [vmem:[%s9013_s1 + $0x20] sm:$0xf] }
  0xe7   : > { %v5542_v17 = vpop.permute.xlu0 %785 }
  0xe8   : > { %9339 = vst [vmem:[#allocation9_spill] sm:$0xff] %v5542_v17  ;;  %v5544_v30 = vpop.permute.xlu1 %787  ;;  %v9345_v17 = vld [vmem:[#allocation16_spill] sm:$0xff] }
  0xe9   : > { %9340 = vst [vmem:[#allocation10_spill] sm:$0xff] %v5544_v30  ;;  %970 = vrot.lane.b32.xlu0 %v9341_v38, %s4735_s27  ;;  %4663 = vmatpush3.bf16.msra.mxu0 %v4660_v59 }
  0xea   : > { %972 = vrot.lane.b32.xlu1 %v9342_v11, %s4735_s27  ;;  %4548 = vmatprep.subr.msk.mxu0 %vm1782_vm3, %v1677_v60 }
  0xeb   : > { %v5556_v31 = vpop.permute.xlu0 %789 }
  0xec   : > { %9343 = vst [vmem:[#allocation14_spill] sm:$0xff] %v5556_v31  ;;  %v5558_v30 = vpop.permute.xlu1 %791 }
  0xed   : > { %9344 = vst [vmem:[#allocation15_spill] sm:$0xff] %v5558_v30  ;;  %974 = vrot.lane.b32.xlu0 %v9345_v17, %s4735_s27  ;;  %4549 = vmatpush3.msk.msra.mxu0 %vm1782_vm3, %v1677_v60 }
  0xee   : > { %1047 = vrot.lane.b32.xlu1 %v5165_v25, %s4736_s11 }
  0xef   : > { %v5567_v24 = vpop.permute.xlu0 %793 }
  0xf0   : > { %9346 = vst [vmem:[#allocation16_spill] sm:$0xff] %v5567_v24  ;;  %v5570_v44 = vpop.permute.xlu1 %795 }
  0xf1   : > { %9347 = vst [vmem:[#allocation92_spill] sm:$0xff] %v5570_v44  ;;  %1049 = vrot.lane.b32.xlu0 %v5170_v63, %s4736_s11 }
  0xf2   : > { %1143 = vrot.lane.b32.xlu1 %v4797_v14, %s4737_s14 }
  0xf3   : > { %v5577_v25 = vpop.permute.xlu0 %797 }
  0xf4   : > { %9348 = vst [vmem:[#allocation93_spill] sm:$0xff] %v5577_v25  ;;  %v5579_v18 = vpop.permute.xlu1 %799 }
  0xf5   : > { %9349 = vst [vmem:[#allocation94_spill] sm:$0xff] %v5579_v18  ;;  %1145 = vrot.lane.b32.xlu0 %v4794_v13, %s4737_s14 }
  0xf6   : > { %1233 = vrot.lane.b32.xlu1 %v4818_v27, %s4738_s15 }
  0xf7   : > { %v5585_v59 = vpop.permute.xlu0 %801 }
  0xf8   : > { %9350 = vst [vmem:[#allocation95_spill] sm:$0xff] %v5585_v59  ;;  %v5587_v63 = vpop.permute.xlu1 %803 }
  0xf9   : > { %9351 = vst [vmem:[#allocation96_spill] sm:$0xff] %v5587_v63  ;;  %1235 = vrot.lane.b32.xlu0 %v4835_v37, %s4738_s15 }
  0xfa   : > { %1323 = vrot.lane.b32.xlu1 %v5152_v1, %s4739_s16 }
  0xfb   : > { %v5593_v60 = vpop.permute.xlu0 %805 }
  0xfc   : > { %9352 = vst [vmem:[#allocation97_spill] sm:$0xff] %v5593_v60  ;;  %v5595_v18 = vpop.permute.xlu1 %807 }
  0xfd   : > { %9353 = vst [vmem:[#allocation98_spill] sm:$0xff] %v5595_v18  ;;  %1051 = vrot.lane.b32.xlu0 %v5152_v1, %s4736_s11 }
  0xfe   : > { %1325 = vrot.lane.b32.xlu1 %v5157_v53, %s4739_s16 }
  0xff   : > { %v5601_v27 = vpop.permute.xlu0 %809 }
 0x100   : > { %9354 = vst [vmem:[#allocation99_spill] sm:$0xff] %v5601_v27  ;;  %v5603_v63 = vpop.permute.xlu1 %811 }
 0x101   : > { %9355 = vst [vmem:[#allocation100_spill] sm:$0xff] %v5603_v63  ;;  %1053 = vrot.lane.b32.xlu0 %v5157_v53, %s4736_s11 }
 0x102   : > { %1147 = vrot.lane.b32.xlu1 %v4829_v33, %s4737_s14 }
 0x103   : > { %v5609_v37 = vpop.permute.xlu0 %844 }
 0x104   : > { %v5611_v60 = vpop.permute.xlu1 %846 }
 0x105   : > { %1149 = vrot.lane.b32.xlu0 %v4841_v39, %s4737_s14 }
 0x106   : > { %1237 = vrot.lane.b32.xlu1 %v4853_v50, %s4738_s15 }
 0x107   : > { %v5617_v1 = vpop.permute.xlu0 %848 }
 0x108   : > { %v5619_v27 = vpop.permute.xlu1 %850 }
 0x109   : > { %1239 = vrot.lane.b32.xlu0 %v9326_v32, %s4738_s15 }
 0x10a   : > { %1327 = vrot.lane.b32.xlu1 %v5178_v26, %s4739_s16 }
 0x10b   : > { %v5625_v53 = vpop.permute.xlu0 %852 }
 0x10c   : > { %v5627_v63 = vpop.permute.xlu1 %854 }
 0x10d   : > { %1055 = vrot.lane.b32.xlu0 %v5178_v26, %s4736_s11 }
 0x10e   : > { %1329 = vrot.lane.b32.xlu1 %v5183_v56, %s4739_s16 }
 0x10f   : > { %v5633_v50 = vpop.permute.xlu0 %856 }
 0x110   : > { %v5635_v18 = vpop.permute.xlu1 %858 }
 0x111   : > { %1057 = vrot.lane.b32.xlu0 %v5183_v56, %s4736_s11 }
 0x112   : > { %1151 = vrot.lane.b32.xlu1 %v4859_v52, %s4737_s14 }
 0x113   : > { %v5641_v32 = vpop.permute.xlu0 %860 }
 0x114   : > { %v5643_v59 = vpop.permute.xlu1 %862 }
 0x115   : > { %1153 = vrot.lane.b32.xlu0 %v4856_v51, %s4737_s14 }
 0x116   : > { %1241 = vrot.lane.b32.xlu1 %v9329_v29, %s4738_s15 }
 0x117   : > { %v5649_v26 = vpop.permute.xlu0 %864 }
 0x118   : > { %v5651_v25 = vpop.permute.xlu1 %866 }
 0x119   : > { %1243 = vrot.lane.b32.xlu0 %v9330_v7, %s4738_s15 }
 0x11a   : > { %1331 = vrot.lane.b32.xlu1 %v5191_v43, %s4739_s16 }
 0x11b   : > { %v5657_v56 = vpop.permute.xlu0 %868 }
 0x11c   : > { %v5659_v44 = vpop.permute.xlu1 %870 }
 0x11d   : > { %1059 = vrot.lane.b32.xlu0 %v5191_v43, %s4736_s11 }
 0x11e   : > { %1333 = vrot.lane.b32.xlu1 %v5196_v9, %s4739_s16 }
 0x11f   : > { %v5665_v29 = vpop.permute.xlu0 %872 }
 0x120   : > { %9356 = vst [vmem:[#allocation101_spill] sm:$0xff] %v5665_v29  ;;  %v5667_v24 = vpop.permute.xlu1 %874 }
 0x121   : > { %9357 = vst [vmem:[#allocation102_spill] sm:$0xff] %v5667_v24  ;;  %1061 = vrot.lane.b32.xlu0 %v5196_v9, %s4736_s11  ;;  %v9379_v24 = vld [vmem:[#allocation43_spill] sm:$0xff] }
 0x122   : > { %1155 = vrot.lane.b32.xlu1 %v4878_v62, %s4737_s14 }
 0x123   : > { %v5673_v7 = vpop.permute.xlu0 %876 }
 0x124   : > { %9358 = vst [vmem:[#allocation103_spill] sm:$0xff] %v5673_v7  ;;  %v5675_v30 = vpop.permute.xlu1 %878 }
 0x125   : > { %9359 = vst [vmem:[#allocation104_spill] sm:$0xff] %v5675_v30  ;;  %1157 = vrot.lane.b32.xlu0 %v4875_v61, %s4737_s14  ;;  %v9364_v30 = vld [vmem:[#allocation40_spill] sm:$0xff] }
 0x126   : > { %1245 = vrot.lane.b32.xlu1 %v9333_v49, %s4738_s15 }
 0x127   : > { %v5681_v43 = vpop.permute.xlu0 %880 }
 0x128   : > { %9360 = vst [vmem:[#allocation105_spill] sm:$0xff] %v5681_v43  ;;  %v5683_v31 = vpop.permute.xlu1 %882 }
 0x129   : > { %9361 = vst [vmem:[#allocation106_spill] sm:$0xff] %v5683_v31  ;;  %1247 = vrot.lane.b32.xlu0 %v9334_v57, %s4738_s15  ;;  %v9377_v31 = vld [vmem:[#allocation17_spill] sm:$0xff] }
 0x12a   : > { %1335 = vrot.lane.b32.xlu1 %v5204_v58, %s4739_s16 }
 0x12b   : > { %v5689_v9 = vpop.permute.xlu0 %884 }
 0x12c   : > { %9362 = vst [vmem:[#allocation107_spill] sm:$0xff] %v5689_v9  ;;  %v5691_v7 = vpop.permute.xlu1 %886 }
 0x12d   : > { %9363 = vst [vmem:[#allocation108_spill] sm:$0xff] %v5691_v7  ;;  %1063 = vrot.lane.b32.xlu0 %v5204_v58, %s4736_s11 }
 0x12e   : > { %1337 = vrot.lane.b32.xlu1 %v9364_v30, %s4739_s16 }
 0x12f   : > { %v5697_v49 = vpop.permute.xlu0 %888 }
 0x130   : > { %9365 = vst [vmem:[#allocation40_spill] sm:$0xff] %v5697_v49  ;;  %v5699_v43 = vpop.permute.xlu1 %890 }
 0x131   : > { %9366 = vst [vmem:[#allocation109_spill] sm:$0xff] %v5699_v43  ;;  %1065 = vrot.lane.b32.xlu0 %v9364_v30, %s4736_s11 }
 0x132   : > { %1159 = vrot.lane.b32.xlu1 %v4902_v16, %s4737_s14 }
 0x133   : > { %v5705_v57 = vpop.permute.xlu0 %892 }
 0x134   : > { %9367 = vst [vmem:[#allocation110_spill] sm:$0xff] %v5705_v57  ;;  %v5707_v9 = vpop.permute.xlu1 %894 }
 0x135   : > { %9368 = vst [vmem:[#allocation111_spill] sm:$0xff] %v5707_v9  ;;  %1161 = vrot.lane.b32.xlu0 %v4899_v15, %s4737_s14  ;;  %v9373_v9 = vld [vmem:[#allocation41_spill] sm:$0xff] }
 0x136   : > { %1249 = vrot.lane.b32.xlu1 %v9337_v42, %s4738_s15 }
 0x137   : > { %v5713_v58 = vpop.permute.xlu0 %896 }
 0x138   : > { %9369 = vst [vmem:[#allocation112_spill] sm:$0xff] %v5713_v58  ;;  %v5715_v49 = vpop.permute.xlu1 %898 }
 0x139   : > { %9370 = vst [vmem:[#allocation113_spill] sm:$0xff] %v5715_v49  ;;  %1251 = vrot.lane.b32.xlu0 %v9338_v54, %s4738_s15 }
 0x13a   : > { %1339 = vrot.lane.b32.xlu1 %v5217_v6, %s4739_s16 }
 0x13b   : > { %v5721_v30 = vpop.permute.xlu0 %900 }
 0x13c   : > { %9371 = vst [vmem:[#allocation114_spill] sm:$0xff] %v5721_v30  ;;  %v5723_v57 = vpop.permute.xlu1 %902 }
 0x13d   : > { %9372 = vst [vmem:[#allocation115_spill] sm:$0xff] %v5723_v57  ;;  %1067 = vrot.lane.b32.xlu0 %v5217_v6, %s4736_s11 }
 0x13e   : > { %1341 = vrot.lane.b32.xlu1 %v9373_v9, %s4739_s16 }
 0x13f   : > { %v5729_v42 = vpop.permute.xlu0 %904 }
 0x140   : > { %9374 = vst [vmem:[#allocation41_spill] sm:$0xff] %v5729_v42  ;;  %v5731_v58 = vpop.permute.xlu1 %906  ;;  %v9376_v42 = vld [vmem:[#allocation42_spill] sm:$0xff] }
 0x141   : > { %9375 = vst [vmem:[#allocation116_spill] sm:$0xff] %v5731_v58  ;;  %1069 = vrot.lane.b32.xlu0 %v9373_v9, %s4736_s11 }
 0x142   : > { %1163 = vrot.lane.b32.xlu1 %v4928_v41, %s4737_s14 }
 0x143   : > { %v947_v54 = vpop.permute.xlu0 %946 }
 0x144   : > { %v949_v30 = vpop.permute.xlu1 %948 }
 0x145   : > { %1165 = vrot.lane.b32.xlu0 %v4924_v36, %s4737_s14 }
 0x146   : > { %1253 = vrot.lane.b32.xlu1 %v9341_v38, %s4738_s15 }
 0x147   : > { %v5741_v6 = vpop.permute.xlu0 %950 }
 0x148   : > { %v5743_v57 = vpop.permute.xlu1 %952 }
 0x149   : > { %1255 = vrot.lane.b32.xlu0 %v9342_v11, %s4738_s15 }
 0x14a   : > { %1343 = vrot.lane.b32.xlu1 %v5230_v19, %s4739_s16 }
 0x14b   : > { %v5749_v9 = vpop.permute.xlu0 %954 }
 0x14c   : > { %v5751_v58 = vpop.permute.xlu1 %956 }
 0x14d   : > { %1071 = vrot.lane.b32.xlu0 %v5230_v19, %s4736_s11 }
 0x14e   : > { %1345 = vrot.lane.b32.xlu1 %v9376_v42, %s4739_s16 }
 0x14f   : > { %v5757_v38 = vpop.permute.xlu0 %958 }
 0x150   : > { %v5759_v49 = vpop.permute.xlu1 %960 }
 0x151   : > { %1073 = vrot.lane.b32.xlu0 %v9376_v42, %s4736_s11 }
 0x152   : > { %1167 = vrot.lane.b32.xlu1 %v4952_v3, %s4737_s14 }
 0x153   : > { %v5765_v11 = vpop.permute.xlu0 %962 }
 0x154   : > { %v5767_v43 = vpop.permute.xlu1 %964 }
 0x155   : > { %1169 = vrot.lane.b32.xlu0 %v4949_v2, %s4737_s14 }
 0x156   : > { %1257 = vrot.lane.b32.xlu1 %v9345_v17, %s4738_s15 }
 0x157   : > { %v5773_v19 = vpop.permute.xlu0 %966 }
 0x158   : > { %v5775_v7 = vpop.permute.xlu1 %968 }
 0x159   : > { %1259 = vrot.lane.b32.xlu0 %v9377_v31, %s4738_s15 }
 0x15a   : > { %1347 = vrot.lane.b32.xlu1 %v5243_v46, %s4739_s16 }
 0x15b   : > { %v5781_v42 = vpop.permute.xlu0 %970 }
 0x15c   : > { %v5783_v3 = vpop.permute.xlu1 %972 }
 0x15d   : > { %976 = vrot.lane.b32.xlu0 %v9377_v31, %s4735_s27 }
 0x15e   : > { %1075 = vrot.lane.b32.xlu1 %v5243_v46, %s4736_s11  ;;  %v1414_v46 = vsel %vm1413_vm4, %v4797_v14, %v5336_v28  ;;  %v9380_v14 = vld [vmem:[#allocation18_spill] sm:$0xff]  ;;  %v1415_v28 = vsel %vm1413_vm4, %v4794_v13, %v5347_v48 }
 0x15f   : > { %v5789_v17 = vpop.permute.xlu0 %974  ;;  %v5804_v31 = vsel %vm1444_vm5, %v1414_v46, %v5463_v34 }
 0x160   : > { %9378 = vst [vmem:[#allocation42_spill] sm:$0xff] %v5789_v17  ;;  %v1048_v2 = vpop.permute.xlu1 %1047  ;;  %v1476_v17 = vsel %vm1475_vm6, %v5804_v31, %v5609_v37  ;;  %v5820_v37 = vsel %vm1444_vm5, %v1415_v28, %v5466_v10 }
 0x161   : > { %1349 = vrot.lane.b32.xlu0 %v9379_v24, %s4739_s16  ;;  %v1509_v41 = vsel %vm1508_vm7, %v1476_v17, %v947_v54  ;;  %v1477_v46 = vsel %vm1475_vm6, %v5820_v37, %v5611_v60 }
 0x162   : > { %1077 = vrot.lane.b32.xlu1 %v9379_v24, %s4736_s11  ;;  %v1542_v34 = vsel %vm1541_vm8, %v1509_v41, %v1048_v2  ;;  %v1510_v41 = vsel %vm1508_vm7, %v1477_v46, %v949_v30  ;;  %v9381_v2 = vld [vmem:[#allocation19_spill] sm:$0xff] }
 0x163   : > { %v1050_v36 = vpop.permute.xlu0 %1049 }
 0x164   : > { %v1144_v29 = vpop.permute.xlu1 %1143  ;;  %v1543_v10 = vsel %vm1541_vm8, %v1510_v41, %v1050_v36 }
 0x165   : > { %1171 = vrot.lane.b32.xlu0 %v4958_v5, %s4737_s14  ;;  %v1575_v54 = vsel %vm1574_vm9, %v1542_v34, %v1144_v29 }
 0x166   : > { %1173 = vrot.lane.b32.xlu1 %v4963_v8, %s4737_s14 }
 0x167   : > { %v1146_v24 = vpop.permute.xlu0 %1145 }
 0x168   : > { %v1234_v5 = vpop.permute.xlu1 %1233  ;;  %v1576_v29 = vsel %vm1574_vm9, %v1543_v10, %v1146_v24  ;;  %v1416_v24 = vsel %vm1413_vm4, %v4806_v21, %v5341_v12  ;;  %v1417_v21 = vsel %vm1413_vm4, %v4803_v20, %v5349_v35  ;;  %v9383_v10 = vld [vmem:[#allocation20_spill] sm:$0xff] }
 0x169   : > { %1261 = vrot.lane.b32.xlu0 %v9380_v14, %s4738_s15  ;;  %v1608_v13 = vsel %vm1607_vm10, %v1575_v54, %v1234_v5  ;;  %v9382_v54 = vld [vmem:[#allocation44_spill] sm:$0xff] }
 0x16a   : > { %978 = vrot.lane.b32.xlu1 %v9380_v14, %s4735_s27 }
 0x16b   : > { %v1236_v17 = vpop.permute.xlu0 %1235 }
 0x16c   : > { %v1324_v48 = vpop.permute.xlu1 %1323  ;;  %v1609_v5 = vsel %vm1607_vm10, %v1576_v29, %v1236_v17  ;;  %v1447_v17 = vsel %vm1444_vm5, %v1416_v24, %v5475_v55  ;;  %v1448_v55 = vsel %vm1444_vm5, %v1417_v21, %v5482_v0 }
 0x16d   : > { %1263 = vrot.lane.b32.xlu0 %v9381_v2, %s4738_s15  ;;  %v1641_v14 = vsel %vm1640_vm11, %v1608_v13, %v1324_v48 }
 0x16e   : > { %1351 = vrot.lane.b32.xlu1 %v5256_v4, %s4739_s16  ;;  %4550 = vmatprep.mubr.msk.f32.mxu0 %vm1685_vm12, %v1641_v14 }
 0x16f   : > { %v1052_v60 = vpop.permute.xlu0 %1051 }
 0x170   : > { %v1326_v28 = vpop.permute.xlu1 %1325 }
 0x171   : > { %v1642_v30 = vsel %vm1640_vm11, %v1609_v5, %v1326_v28  ;;  %980 = vrot.lane.b32.xlu0 %v9381_v2, %s4735_s27  ;;  %v9384_v28 = vld [vmem:[#allocation23_spill] sm:$0xff] }
 0x172   : > { %1079 = vrot.lane.b32.xlu1 %v5256_v4, %s4736_s11  ;;  %4551 = vmatmul.mubr.msk.f32.vlgmr.msra.gmra.mrb[0].mxu0 %vm1685_vm12, %v1642_v30  ;;  %v1478_v4 = vsel %vm1475_vm6, %v1447_v17, %v5617_v1 }
 0x173   : > { %v1054_v36 = vpop.permute.xlu0 %1053  ;;  %v1511_v48 = vsel %vm1508_vm7, %v1478_v4, %v5741_v6  ;;  %v1479_v6 = vsel %vm1475_vm6, %v1448_v55, %v5619_v27 }
 0x174   : > { %v1148_v34 = vpop.permute.xlu1 %1147  ;;  %v1544_v12 = vsel %vm1541_vm8, %v1511_v48, %v1052_v60  ;;  %v1512_v20 = vsel %vm1508_vm7, %v1479_v6, %v5743_v57  ;;  %v1481_v48 = vsel %vm1475_vm6, %v5820_v37, %v5627_v63 }
 0x175   : > { %1353 = vrot.lane.b32.xlu0 %v9382_v54, %s4739_s16  ;;  %v1577_v1 = vsel %vm1574_vm9, %v1544_v12, %v1148_v34  ;;  %v1545_v29 = vsel %vm1541_vm8, %v1512_v20, %v1054_v36  ;;  %v9388_v20 = vld [vmem:[#allocation56_spill] sm:$0xff] }
 0x176   : > { %1081 = vrot.lane.b32.xlu1 %v9382_v54, %s4736_s11  ;;  %v1480_v54 = vsel %vm1475_vm6, %v5804_v31, %v5625_v53 }
 0x177   : > { %v1150_v46 = vpop.permute.xlu0 %1149  ;;  %v1513_v17 = vsel %vm1508_vm7, %v1480_v54, %v5749_v9  ;;  %v1514_v9 = vsel %vm1508_vm7, %v1481_v48, %v5751_v58 }
 0x178   : > { %v1238_v13 = vpop.permute.xlu1 %1237  ;;  %v1578_v0 = vsel %vm1574_vm9, %v1545_v29, %v1150_v46  ;;  %v9385_v46 = vld [vmem:[#allocation45_spill] sm:$0xff] }
 0x179   : > { %1175 = vrot.lane.b32.xlu0 %v4989_v47, %s4737_s14  ;;  %v1610_v2 = vsel %vm1607_vm10, %v1577_v1, %v1238_v13  ;;  %v9390_v29 = vld [vmem:[#allocation85_spill] sm:$0xff] }
 0x17a   : > { %1177 = vrot.lane.b32.xlu1 %v4986_v45, %s4737_s14 }
 0x17b   : > { %v1240_v41 = vpop.permute.xlu0 %1239 }
 0x17c   : > { %v1328_v14 = vpop.permute.xlu1 %1327  ;;  %v1611_v60 = vsel %vm1607_vm10, %v1578_v0, %v1240_v41  ;;  %v9386_v41 = vld [vmem:[#allocation24_spill] sm:$0xff] }
 0x17d   : > { %v1643_v35 = vsel %vm1640_vm11, %v1610_v2, %v1328_v14  ;;  %1265 = vrot.lane.b32.xlu0 %v9383_v10, %s4738_s15  ;;  %v9387_v14 = vld [vmem:[#allocation25_spill] sm:$0xff] }
 0x17e   : > { %982 = vrot.lane.b32.xlu1 %v9383_v10, %s4735_s27  ;;  %4553 = vmatprep.mubr.msk.f32.mxu0 %vm1685_vm12, %v1643_v35  ;;  %v1418_v35 = vsel %vm1413_vm4, %v4829_v33, %v9388_v20  ;;  %v9389_v10 = vld [vmem:[#allocation46_spill] sm:$0xff]  ;;  %v9399_v20 = vld [vmem:[#allocation29_spill] sm:$0xff] }
 0x17f   : > { %v1056_v27 = vpop.permute.xlu0 %1055  ;;  %v1449_v0 = vsel %vm1444_vm5, %v1418_v35, %v9390_v29  ;;  %v9400_v35 = vld [vmem:[#allocation59_spill] sm:$0xff]  ;;  %v9401_v29 = vld [vmem:[#allocation48_spill] sm:$0xff] }
 0x180   : > { %v1330_v5 = vpop.permute.xlu1 %1329  ;;  %v1546_v4 = vsel %vm1541_vm8, %v1513_v17, %v1056_v27 }
 0x181   : > { %v1644_v57 = vsel %vm1640_vm11, %v1611_v60, %v1330_v5  ;;  %1267 = vrot.lane.b32.xlu0 %v9384_v28, %s4738_s15  ;;  %v1482_v60 = vsel %vm1475_vm6, %v1449_v0, %v5633_v50  ;;  %v9402_v0 = vld [vmem:[#allocation88_spill] sm:$0xff] }
 0x182   : > { %1355 = vrot.lane.b32.xlu1 %v5269_v40, %s4739_s16  ;;  %4554 = vmatmul.mubr.msk.f32.gmra.mrb[2].mxu0 %vm1685_vm12, %v1644_v57  ;;  %v1515_v57 = vsel %vm1508_vm7, %v1482_v60, %v5757_v38 }
 0x183   : > { %v1058_v30 = vpop.permute.xlu0 %1057 }
 0x184   : > { %v1152_v36 = vpop.permute.xlu1 %1151  ;;  %v1547_v12 = vsel %vm1541_vm8, %v1514_v9, %v1058_v30  ;;  %v9395_v9 = vld [vmem:[#allocation21_spill] sm:$0xff] }
 0x185   : > { %984 = vrot.lane.b32.xlu0 %v9384_v28, %s4735_s27  ;;  %v1579_v13 = vsel %vm1574_vm9, %v1546_v4, %v1152_v36  ;;  %v9391_v28 = vld [vmem:[#allocation57_spill] sm:$0xff]  ;;  %v9392_v36 = vld [vmem:[#allocation86_spill] sm:$0xff]  ;;  %v9393_v4 = vld [vmem:[#allocation47_spill] sm:$0xff] }
 0x186   : > { %1083 = vrot.lane.b32.xlu1 %v5269_v40, %s4736_s11  ;;  %v1419_v33 = vsel %vm1413_vm4, %v4841_v39, %v9391_v28 }
 0x187   : > { %v1154_v34 = vpop.permute.xlu0 %1153 }
 0x188   : > { %v1242_v24 = vpop.permute.xlu1 %1241  ;;  %v1580_v63 = vsel %vm1574_vm9, %v1547_v12, %v1154_v34  ;;  %v1450_v34 = vsel %vm1444_vm5, %v1419_v33, %v9392_v36 }
 0x189   : > { %1357 = vrot.lane.b32.xlu0 %v9385_v46, %s4739_s16  ;;  %v1612_v53 = vsel %vm1607_vm10, %v1579_v13, %v1242_v24  ;;  %v1483_v38 = vsel %vm1475_vm6, %v1450_v34, %v5635_v18 }
 0x18a   : > { %1085 = vrot.lane.b32.xlu1 %v9385_v46, %s4736_s11  ;;  %v1516_v39 = vsel %vm1508_vm7, %v1483_v38, %v5759_v49 }
 0x18b   : > { %v1244_v40 = vpop.permute.xlu0 %1243 }
 0x18c   : > { %v1332_v31 = vpop.permute.xlu1 %1331  ;;  %v1613_v55 = vsel %vm1607_vm10, %v1580_v63, %v1244_v40  ;;  %v9396_v63 = vld [vmem:[#allocation28_spill] sm:$0xff] }
 0x18d   : > { %v1645_v21 = vsel %vm1640_vm11, %v1612_v53, %v1332_v31  ;;  %1179 = vrot.lane.b32.xlu0 %v5016_v23, %s4737_s14  ;;  %v9394_v31 = vld [vmem:[#allocation22_spill] sm:$0xff] }
 0x18e   : > { %1181 = vrot.lane.b32.xlu1 %v5013_v22, %s4737_s14  ;;  %4556 = vmatprep.mubr.msk.f32.mxu0 %vm1685_vm12, %v1645_v21 }
 0x18f   : > { %v1060_v37 = vpop.permute.xlu0 %1059 }
 0x190   : > { %v1334_v1 = vpop.permute.xlu1 %1333  ;;  %v1548_v30 = vsel %vm1541_vm8, %v1515_v57, %v1060_v37  ;;  %v9397_v37 = vld [vmem:[#allocation58_spill] sm:$0xff] }
 0x191   : > { %v1646_v58 = vsel %vm1640_vm11, %v1613_v55, %v1334_v1  ;;  %1269 = vrot.lane.b32.xlu0 %v9386_v41, %s4738_s15  ;;  %v1420_v55 = vsel %vm1413_vm4, %v4859_v52, %v9397_v37  ;;  %v9398_v1 = vld [vmem:[#allocation87_spill] sm:$0xff]  ;;  %v1421_v52 = vsel %vm1413_vm4, %v4856_v51, %v9400_v35 }
 0x192   : > { %986 = vrot.lane.b32.xlu1 %v9386_v41, %s4735_s27  ;;  %4557 = vmatmul.mubr.msk.f32.gmra.mrb[4].mxu0 %vm1685_vm12, %v1646_v58  ;;  %v1451_v58 = vsel %vm1444_vm5, %v1420_v55, %v9398_v1 }
 0x193   : > { %v1062_v6 = vpop.permute.xlu0 %1061 }
 0x194   : > { %v1156_v2 = vpop.permute.xlu1 %1155  ;;  %v1549_v13 = vsel %vm1541_vm8, %v1516_v39, %v1062_v6  ;;  %v1484_v6 = vsel %vm1475_vm6, %v1451_v58, %v5641_v32 }
 0x195   : > { %1271 = vrot.lane.b32.xlu0 %v9387_v14, %s4738_s15  ;;  %v1581_v50 = vsel %vm1574_vm9, %v1548_v30, %v1156_v2 }
 0x196   : > { %1359 = vrot.lane.b32.xlu1 %v9389_v10, %s4739_s16 }
 0x197   : > { %v1158_v27 = vpop.permute.xlu0 %1157 }
 0x198   : > { %v1246_v5 = vpop.permute.xlu1 %1245  ;;  %v1582_v18 = vsel %vm1574_vm9, %v1549_v13, %v1158_v27  ;;  %v1452_v27 = vsel %vm1444_vm5, %v1421_v52, %v9402_v0  ;;  %v9413_v0 = vld [vmem:[#allocation51_spill] sm:$0xff] }
 0x199   : > { %988 = vrot.lane.b32.xlu0 %v9387_v14, %s4735_s27  ;;  %v1614_v24 = vsel %vm1607_vm10, %v1581_v50, %v1246_v5  ;;  %v1517_v14 = vsel %vm1508_vm7, %v1484_v6, %v5765_v11  ;;  %v1485_v11 = vsel %vm1475_vm6, %v1452_v27, %v5643_v59  ;;  %v9403_v50 = vld [vmem:[#allocation49_spill] sm:$0xff]  ;;  %v9414_v27 = vld [vmem:[#allocation62_spill] sm:$0xff] }
 0x19a   : > { %1087 = vrot.lane.b32.xlu1 %v9389_v10, %s4736_s11  ;;  %v1518_v51 = vsel %vm1508_vm7, %v1485_v11, %v5767_v43  ;;  %v9411_v6 = vld [vmem:[#allocation33_spill] sm:$0xff] }
 0x19b   : > { %v1248_v54 = vpop.permute.xlu0 %1247 }
 0x19c   : > { %v1336_v17 = vpop.permute.xlu1 %1335  ;;  %v1615_v48 = vsel %vm1607_vm10, %v1582_v18, %v1248_v54 }
 0x19d   : > { %v1647_v46 = vsel %vm1640_vm11, %v1614_v24, %v1336_v17  ;;  %1361 = vrot.lane.b32.xlu0 %v9393_v4, %s4739_s16  ;;  %v9404_v24 = vld [vmem:[#allocation27_spill] sm:$0xff]  ;;  %v9405_v17 = vld [vmem:[#allocation60_spill] sm:$0xff] }
 0x19e   : > { %1089 = vrot.lane.b32.xlu1 %v9393_v4, %s4736_s11  ;;  %4559 = vmatprep.mubr.msk.f32.mxu0 %vm1685_vm12, %v1647_v46  ;;  %v1422_v39 = vsel %vm1413_vm4, %v4878_v62, %v9405_v17  ;;  %v9406_v46 = vld [vmem:[#allocation26_spill] sm:$0xff]  ;;  %v9407_v4 = vld [vmem:[#allocation89_spill] sm:$0xff] }
 0x19f   : > { %v1064_v40 = vpop.permute.xlu0 %1063  ;;  %v1453_v13 = vsel %vm1444_vm5, %v1422_v39, %v9407_v4 }
 0x1a0   : > { %v1338_v53 = vpop.permute.xlu1 %1337  ;;  %v1550_v10 = vsel %vm1541_vm8, %v1517_v14, %v1064_v40  ;;  %v1486_v40 = vsel %vm1475_vm6, %v1453_v13, %v5649_v26  ;;  %v9412_v14 = vld [vmem:[#allocation50_spill] sm:$0xff] }
 0x1a1   : > { %v1648_v49 = vsel %vm1640_vm11, %v1615_v48, %v1338_v53  ;;  %1183 = vrot.lane.b32.xlu0 %v9394_v31, %s4737_s14  ;;  %v1519_v53 = vsel %vm1508_vm7, %v1486_v40, %v5773_v19  ;;  %v9421_v40 = vld [vmem:[#allocation37_spill] sm:$0xff] }
 0x1a2   : > { %1185 = vrot.lane.b32.xlu1 %v9395_v9, %s4737_s14  ;;  %4560 = vmatmul.mubr.msk.f32.gmra.mrb[6].mxu0 %vm1685_vm12, %v1648_v49  ;;  %v9408_v49 = vld [vmem:[#allocation32_spill] sm:$0xff] }
 0x1a3   : > { %v1066_v21 = vpop.permute.xlu0 %1065 }
 0x1a4   : > { %v1160_v12 = vpop.permute.xlu1 %1159  ;;  %v1551_v33 = vsel %vm1541_vm8, %v1518_v51, %v1066_v21  ;;  %v9409_v21 = vld [vmem:[#allocation61_spill] sm:$0xff] }
 0x1a5   : > { %1273 = vrot.lane.b32.xlu0 %v9396_v63, %s4738_s15  ;;  %v1583_v32 = vsel %vm1574_vm9, %v1550_v10, %v1160_v12  ;;  %v1423_v62 = vsel %vm1413_vm4, %v4875_v61, %v9409_v21 }
 0x1a6   : > { %990 = vrot.lane.b32.xlu1 %v9396_v63, %s4735_s27  ;;  %v9410_v63 = vld [vmem:[#allocation90_spill] sm:$0xff] }
 0x1a7   : > { %v1162_v41 = vpop.permute.xlu0 %1161  ;;  %v1454_v37 = vsel %vm1444_vm5, %v1423_v62, %v9410_v63  ;;  %v9423_v63 = vld [vmem:[#allocation53_spill] sm:$0xff] }
 0x1a8   : > { %v1250_v2 = vpop.permute.xlu1 %1249  ;;  %v1584_v59 = vsel %vm1574_vm9, %v1551_v33, %v1162_v41  ;;  %v1487_v19 = vsel %vm1475_vm6, %v1454_v37, %v5651_v25  ;;  %v9416_v33 = vld [vmem:[#allocation31_spill] sm:$0xff]  ;;  %v9424_v37 = vld [vmem:[#allocation64_spill] sm:$0xff] }
 0x1a9   : > { %1275 = vrot.lane.b32.xlu0 %v9399_v20, %s4738_s15  ;;  %v1616_v5 = vsel %vm1607_vm10, %v1583_v32, %v1250_v2  ;;  %v1520_v61 = vsel %vm1508_vm7, %v1487_v19, %v5775_v7  ;;  %v1424_v32 = vsel %vm1413_vm4, %v4902_v16, %v9414_v27  ;;  %v9417_v16 = vld [vmem:[#allocation30_spill] sm:$0xff]  ;;  %v9426_v19 = vld [vmem:[#allocation3_spill] sm:$0xff] }
 0x1aa   : > { %1363 = vrot.lane.b32.xlu1 %v9401_v29, %s4739_s16  ;;  %v9432_v27 = vld [vmem:[#allocation7_spill] sm:$0xff] }
 0x1ab   : > { %v1252_v60 = vpop.permute.xlu0 %1251 }
 0x1ac   : > { %v1340_v57 = vpop.permute.xlu1 %1339  ;;  %v1617_v36 = vsel %vm1607_vm10, %v1584_v59, %v1252_v60  ;;  %v9415_v60 = vld [vmem:[#allocation2_spill] sm:$0xff] }
 0x1ad   : > { %v1649_v28 = vsel %vm1640_vm11, %v1616_v5, %v1340_v57  ;;  %992 = vrot.lane.b32.xlu0 %v9399_v20, %s4735_s27  ;;  %v1455_v11 = vsel %vm1444_vm5, %v1424_v32, %v9415_v60 }
 0x1ae   : > { %1091 = vrot.lane.b32.xlu1 %v9401_v29, %s4736_s11  ;;  %4562 = vmatprep.mubr.msk.f32.mxu0 %vm1685_vm12, %v1649_v28  ;;  %v1488_v57 = vsel %vm1475_vm6, %v1455_v11, %v5657_v56  ;;  %v9433_v11 = vld [vmem:[#allocation38_spill] sm:$0xff] }
 0x1af   : > { %v1068_v30 = vpop.permute.xlu0 %1067  ;;  %v1521_v28 = vsel %vm1508_vm7, %v1488_v57, %v5781_v42 }
 0x1b0   : > { %v1342_v34 = vpop.permute.xlu1 %1341  ;;  %v1552_v12 = vsel %vm1541_vm8, %v1519_v53, %v1068_v30  ;;  %v9422_v53 = vld [vmem:[#allocation52_spill] sm:$0xff] }
 0x1b1   : > { %v1650_v43 = vsel %vm1640_vm11, %v1617_v36, %v1342_v34  ;;  %1365 = vrot.lane.b32.xlu0 %v9403_v50, %s4739_s16 }
 0x1b2   : > { %1093 = vrot.lane.b32.xlu1 %v9403_v50, %s4736_s11  ;;  %4563 = vmatmul.mubr.msk.f32.gmra.mrb[8].mxu0 %vm1685_vm12, %v1650_v43  ;;  %v9418_v50 = vld [vmem:[#allocation63_spill] sm:$0xff] }
 0x1b3   : > { %v1070_v54 = vpop.permute.xlu0 %1069  ;;  %v1425_v56 = vsel %vm1413_vm4, %v4899_v15, %v9418_v50 }
 0x1b4   : > { %v1164_v38 = vpop.permute.xlu1 %1163  ;;  %v1553_v2 = vsel %vm1541_vm8, %v1520_v61, %v1070_v54  ;;  %v9419_v54 = vld [vmem:[#allocation36_spill] sm:$0xff]  ;;  %v9427_v61 = vld [vmem:[#allocation101_spill] sm:$0xff] }
 0x1b5   : > { %1187 = vrot.lane.b32.xlu0 %v9404_v24, %s4737_s14  ;;  %v1585_v26 = vsel %vm1574_vm9, %v1552_v12, %v1164_v38  ;;  %v9420_v38 = vld [vmem:[#allocation91_spill] sm:$0xff] }
 0x1b6   : > { %1189 = vrot.lane.b32.xlu1 %v9406_v46, %s4737_s14  ;;  %v1456_v17 = vsel %vm1444_vm5, %v1425_v56, %v9420_v38  ;;  %v9437_v56 = vld [vmem:[#allocation54_spill] sm:$0xff] }
 0x1b7   : > { %v1166_v18 = vpop.permute.xlu0 %1165  ;;  %v1489_v39 = vsel %vm1475_vm6, %v1456_v17, %v5659_v44 }
 0x1b8   : > { %v1254_v48 = vpop.permute.xlu1 %1253  ;;  %v1586_v25 = vsel %vm1574_vm9, %v1553_v2, %v1166_v18  ;;  %v1522_v15 = vsel %vm1508_vm7, %v1489_v39, %v5783_v3  ;;  %v9428_v2 = vld [vmem:[#allocation42_spill] sm:$0xff] }
 0x1b9   : > { %1277 = vrot.lane.b32.xlu0 %v9408_v49, %s4738_s15  ;;  %v1618_v1 = vsel %vm1607_vm10, %v1585_v26, %v1254_v48  ;;  %v9425_v26 = vld [vmem:[#allocation8_spill] sm:$0xff]  ;;  %v9438_v39 = vld [vmem:[#allocation82_spill] sm:$0xff] }
 0x1ba   : > { %994 = vrot.lane.b32.xlu1 %v9408_v49, %s4735_s27 }
 0x1bb   : > { %v1256_v55 = vpop.permute.xlu0 %1255 }
 0x1bc   : > { %v1344_v58 = vpop.permute.xlu1 %1343  ;;  %v1619_v35 = vsel %vm1607_vm10, %v1586_v25, %v1256_v55  ;;  %v1426_v55 = vsel %vm1413_vm4, %v9425_v26, %v9424_v37  ;;  %v9429_v25 = vld [vmem:[#allocation35_spill] sm:$0xff]  ;;  %v9445_v37 = vrot.slane %v9438_v39, 7 }
 0x1bd   : > { %v1651_v41 = vsel %vm1640_vm11, %v1618_v1, %v1344_v58  ;;  %1279 = vrot.lane.b32.xlu0 %v9411_v6, %s4738_s15  ;;  %v1457_v1 = vsel %vm1444_vm5, %v1426_v55, %v9426_v19  ;;  %v9446_v55 = vld [vmem:[#allocation103_spill] sm:$0xff] }
 0x1be   : > { %1367 = vrot.lane.b32.xlu1 %v9412_v14, %s4739_s16  ;;  %4565 = vmatprep.mubr.msk.f32.mxu0 %vm1685_vm12, %v1651_v41  ;;  %v1490_v41 = vsel %vm1475_vm6, %v1457_v1, %v9427_v61 }
 0x1bf   : > { %v1072_v20 = vpop.permute.xlu0 %1071 }
 0x1c0   : > { %v1346_v52 = vpop.permute.xlu1 %1345  ;;  %v1554_v59 = vsel %vm1541_vm8, %v1521_v28, %v1072_v20 }
 0x1c1   : > { %v1652_v7 = vsel %vm1640_vm11, %v1619_v35, %v1346_v52  ;;  %996 = vrot.lane.b32.xlu0 %v9411_v6, %s4735_s27  ;;  %v9430_v35 = vld [vmem:[#allocation34_spill] sm:$0xff] }
 0x1c2   : > { %1095 = vrot.lane.b32.xlu1 %v9412_v14, %s4736_s11  ;;  %4566 = vmatmul.mubr.msk.f32.gmra.mrb[10].mxu0 %vm1685_vm12, %v1652_v7  ;;  %v1523_v14 = vsel %vm1508_vm7, %v1490_v41, %v9428_v2 }
 0x1c3   : > { %v1074_v10 = vpop.permute.xlu0 %1073 }
 0x1c4   : > { %v1168_v29 = vpop.permute.xlu1 %1167  ;;  %v1555_v18 = vsel %vm1541_vm8, %v1522_v15, %v1074_v10 }
 0x1c5   : > { %1369 = vrot.lane.b32.xlu0 %v9413_v0, %s4739_s16  ;;  %v1587_v30 = vsel %vm1574_vm9, %v1554_v59, %v1168_v29 }
 0x1c6   : > { %1097 = vrot.lane.b32.xlu1 %v9413_v0, %s4736_s11  ;;  %v9431_v0 = vld [vmem:[#allocation65_spill] sm:$0xff] }
 0x1c7   : > { %v1170_v5 = vpop.permute.xlu0 %1169  ;;  %v1427_v32 = vsel %vm1413_vm4, %v9432_v27, %v9431_v0  ;;  %v9448_v0 = vld [vmem:[#allocation11_spill] sm:$0xff] }
 0x1c8   : > { %v1258_v51 = vpop.permute.xlu1 %1257  ;;  %v1588_v48 = vsel %vm1574_vm9, %v1555_v18, %v1170_v5  ;;  %v9434_v5 = vld [vmem:[#allocation4_spill] sm:$0xff]  ;;  %v9439_v18 = vld [vmem:[#allocation55_spill] sm:$0xff] }
 0x1c9   : > { %1191 = vrot.lane.b32.xlu0 %v9416_v33, %s4737_s14  ;;  %v1620_v34 = vsel %vm1607_vm10, %v1587_v30, %v1258_v51  ;;  %v1458_v57 = vsel %vm1444_vm5, %v1427_v32, %v9434_v5  ;;  %v9435_v51 = vld [vmem:[#allocation102_spill] sm:$0xff] }
 0x1ca   : > { %1193 = vrot.lane.b32.xlu1 %v9417_v16, %s4737_s14  ;;  %v1491_v28 = vsel %vm1475_vm6, %v1458_v57, %v9435_v51  ;;  %v9450_v57 = vld [vmem:[#allocation104_spill] sm:$0xff] }
 0x1cb   : > { %v1260_v36 = vpop.permute.xlu0 %1259 }
 0x1cc   : > { %v1348_v43 = vpop.permute.xlu1 %1347  ;;  %v1621_v49 = vsel %vm1607_vm10, %v1588_v48, %v1260_v36  ;;  %v9441_v48 = vld [vmem:[#allocation12_spill] sm:$0xff] }
 0x1cd   : > { %v1653_v42 = vsel %vm1640_vm11, %v1620_v34, %v1348_v43  ;;  %1281 = vrot.lane.b32.xlu0 %v9419_v54, %s4738_s15  ;;  %v9436_v43 = vld [vmem:[#allocation39_spill] sm:$0xff] }
 0x1ce   : > { %998 = vrot.lane.b32.xlu1 %v9419_v54, %s4735_s27  ;;  %4568 = vmatprep.mubr.msk.f32.mxu0 %vm1685_vm12, %v1653_v42 }
 0x1cf   : > { %v977_v4 = vpop.permute.xlu0 %976 }
 0x1d0   : > { %v1076_v13 = vpop.permute.xlu1 %1075  ;;  %v1524_v30 = vsel %vm1508_vm7, %v1491_v28, %v977_v4  ;;  %v432_v4 = vrot.slane %v9438_v39, 5 }
 0x1d1   : > { %1283 = vrot.lane.b32.xlu0 %v9421_v40, %s4738_s15  ;;  %v1556_v20 = vsel %vm1541_vm8, %v1523_v14, %v1076_v13 }
 0x1d2   : > { %1371 = vrot.lane.b32.xlu1 %v9422_v53, %s4739_s16  ;;  %v480_v26 = vsel %vm321_vm0, %v9445_v37, %v432_v4 }
 0x1d3   : > { %v1350_v21 = vpop.permute.xlu0 %1349  ;;  %v944_v2 = vrot.slane %v480_v26, 1 }
 0x1d4   : > { %v1654_v44 = vsel %vm1640_vm11, %v1621_v49, %v1350_v21  ;;  %v1078_v62 = vpop.permute.xlu1 %1077  ;;  %v9442_v49 = vld [vmem:[#allocation83_spill] sm:$0xff] }
 0x1d5   : > { %1000 = vrot.lane.b32.xlu0 %v9421_v40, %s4735_s27  ;;  %4569 = vmatmul.mubr.msk.f32.gmra.mrb[12].mxu0 %vm1685_vm12, %v1654_v44  ;;  %v1557_v34 = vsel %vm1541_vm8, %v1524_v30, %v1078_v62  ;;  %v9440_v40 = vld [vmem:[#allocation66_spill] sm:$0xff]  ;;  %v941_v21 = vrot.slane %v9442_v49, 1  ;;  %v9443_v44 = vld [vmem:[#allocation84_spill] sm:$0xff]  ;;  %v1042_v14 = vrot.slane %v9442_v49, 2 }
 0x1d6   : > { %1099 = vrot.lane.b32.xlu1 %v9422_v53, %s4736_s11  ;;  %v1428_v53 = vsel %vm1413_vm4, %v9441_v48, %v9440_v40  ;;  %v942_v62 = vrot.slane %v9443_v44, 1  ;;  %v9453_v40 = vld [vmem:[#allocation9_spill] sm:$0xff] }
 0x1d7   : > { %v1172_v3 = vpop.permute.xlu0 %1171 }
 0x1d8   : > { %v1174_v12 = vpop.permute.xlu1 %1173  ;;  %v1589_v52 = vsel %vm1574_vm9, %v1556_v20, %v1172_v3  ;;  %v9444_v3 = vld [vmem:[#allocation5_spill] sm:$0xff]  ;;  %v943_v41 = vsel %vm511_vm1, %v941_v21, %v942_v62  ;;  %v1043_v20 = vrot.slane %v9443_v44, 2  ;;  %v945_v5 = vsel %vm511_vm1, %v942_v62, %v944_v2 }
 0x1d9   : > { %1373 = vrot.lane.b32.xlu0 %v9423_v63, %s4739_s16  ;;  %v1590_v50 = vsel %vm1574_vm9, %v1557_v34, %v1174_v12  ;;  %v1459_v12 = vsel %vm1444_vm5, %v1428_v53, %v9444_v3 }
 0x1da   : > { %1101 = vrot.lane.b32.xlu1 %v9423_v63, %s4736_s11  ;;  %v1492_v19 = vsel %vm1475_vm6, %v1459_v12, %v9446_v55  ;;  %v1044_v30 = vsel %vm677_vm2, %v1042_v14, %v1043_v20  ;;  %v9455_v55 = vld [vmem:[#allocation69_spill] sm:$0xff] }
 0x1db   : > { %v1262_v58 = vpop.permute.xlu0 %1261 }
 0x1dc   : > { %v979_v6 = vpop.permute.xlu1 %978  ;;  %v1622_v10 = vsel %vm1607_vm10, %v1589_v52, %v1262_v58 }
 0x1dd   : > { %1195 = vrot.lane.b32.xlu0 %v9429_v25, %s4737_s14  ;;  %v1525_v58 = vsel %vm1508_vm7, %v1492_v19, %v979_v6  ;;  %v1431_v19 = vsel %vm1413_vm4, %v4963_v8, %v9455_v55 }
 0x1de   : > { %1197 = vrot.lane.b32.xlu1 %v9430_v35, %s4737_s14 }
 0x1df   : > { %v1264_v7 = vpop.permute.xlu0 %1263 }
 0x1e0   : > { %v1352_v29 = vpop.permute.xlu1 %1351  ;;  %v1623_v42 = vsel %vm1607_vm10, %v1590_v50, %v1264_v7 }
 0x1e1   : > { %v1655_v60 = vsel %vm1640_vm11, %v1622_v10, %v1352_v29  ;;  %1285 = vrot.lane.b32.xlu0 %v9433_v11, %s4738_s15  ;;  %v9447_v29 = vld [vmem:[#allocation67_spill] sm:$0xff] }
 0x1e2   : > { %1002 = vrot.lane.b32.xlu1 %v9433_v11, %s4735_s27  ;;  %4571 = vmatprep.mubr.msk.f32.mxu0 %vm1685_vm12, %v1655_v60  ;;  %v1429_v27 = vsel %vm1413_vm4, %v9448_v0, %v9447_v29  ;;  %v9449_v60 = vld [vmem:[#allocation6_spill] sm:$0xff] }
 0x1e3   : > { %v981_v59 = vpop.permute.xlu0 %980  ;;  %v1460_v11 = vsel %vm1444_vm5, %v1429_v27, %v9449_v60  ;;  %v9458_v60 = vld [vmem:[#allocation70_spill] sm:$0xff] }
 0x1e4   : > { %v1080_v36 = vpop.permute.xlu1 %1079  ;;  %v1493_v51 = vsel %vm1475_vm6, %v1460_v11, %v9450_v57  ;;  %v1432_v11 = vsel %vm1413_vm4, %v4989_v47, %v9458_v60 }
 0x1e5   : > { %1287 = vrot.lane.b32.xlu0 %v9436_v43, %s4738_s15  ;;  %v1558_v61 = vsel %vm1541_vm8, %v1525_v58, %v1080_v36  ;;  %v1526_v36 = vsel %vm1508_vm7, %v1493_v51, %v981_v59 }
 0x1e6   : > { %1375 = vrot.lane.b32.xlu1 %v9437_v56, %s4739_s16 }
 0x1e7   : > { %v1354_v54 = vpop.permute.xlu0 %1353 }
 0x1e8   : > { %v1656_v38 = vsel %vm1640_vm11, %v1623_v42, %v1354_v54  ;;  %v1082_v17 = vpop.permute.xlu1 %1081 }
 0x1e9   : > { %1004 = vrot.lane.b32.xlu0 %v9436_v43, %s4735_s27  ;;  %4572 = vmatmul.mubr.msk.f32.gmra.mrb[14].mxu0 %vm1685_vm12, %v1656_v38  ;;  %v1559_v43 = vsel %vm1541_vm8, %v1526_v36, %v1082_v17 }
 0x1ea   : > { %1103 = vrot.lane.b32.xlu1 %v9437_v56, %s4736_s11  ;;  %v1045_v56 = vrot.slane %v480_v26, 2 }
 0x1eb   : > { %v1176_v15 = vpop.permute.xlu0 %1175 }
 0x1ec   : > { %v1178_v13 = vpop.permute.xlu1 %1177  ;;  %v1591_v52 = vsel %vm1574_vm9, %v1558_v61, %v1176_v15  ;;  %v1046_v59 = vsel %vm677_vm2, %v1043_v20, %v1045_v56  ;;  %v9451_v15 = vld [vmem:[#allocation68_spill] sm:$0xff]  ;;  %v9456_v61 = vld [vmem:[#allocation10_spill] sm:$0xff] }
 0x1ed   : > { %1377 = vrot.lane.b32.xlu0 %v9439_v18, %s4739_s16  ;;  %v1592_v50 = vsel %vm1574_vm9, %v1559_v43, %v1178_v13  ;;  %v9452_v13 = vld [vmem:[#allocation13_spill] sm:$0xff] }
 0x1ee   : > { %1105 = vrot.lane.b32.xlu1 %v9439_v18, %s4736_s11  ;;  %v1430_v18 = vsel %vm1413_vm4, %v9452_v13, %v9451_v15 }
 0x1ef   : > { %v1266_v63 = vpop.permute.xlu0 %1265  ;;  %v1461_v48 = vsel %vm1444_vm5, %v1430_v18, %v9453_v40 }
 0x1f0   : > { %v983_v1 = vpop.permute.xlu1 %982  ;;  %v1624_v6 = vsel %vm1607_vm10, %v1591_v52, %v1266_v63 }
 0x1f1   : > { %1199 = vrot.lane.b32.xlu0 %v9442_v49, %s4737_s14  ;;  %v9454_v49 = vld [vmem:[#allocation105_spill] sm:$0xff] }
 0x1f2   : > { %1201 = vrot.lane.b32.xlu1 %v9443_v44, %s4737_s14  ;;  %v1494_v21 = vsel %vm1475_vm6, %v1461_v48, %v9454_v49 }
 0x1f3   : > { %v1268_v7 = vpop.permute.xlu0 %1267  ;;  %v1527_v62 = vsel %vm1508_vm7, %v1494_v21, %v983_v1  ;;  %v9457_v1 = vld [vmem:[#allocation106_spill] sm:$0xff] }
 0x1f4   : > { %v1356_v10 = vpop.permute.xlu1 %1355  ;;  %v1625_v42 = vsel %vm1607_vm10, %v1592_v50, %v1268_v7 }
 0x1f5   : > { %v1657_v32 = vsel %vm1640_vm11, %v1624_v6, %v1356_v10  ;;  %1289 = vrot.lane.b32.xlu0 %v943_v41, %s4738_s15 }
 0x1f6   : > { %1006 = vrot.lane.b32.xlu1 %v943_v41, %s4735_s27  ;;  %4574 = vmatprep.mubr.msk.f32.mxu0 %vm1685_vm12, %v1657_v32  ;;  %v1462_v41 = vsel %vm1444_vm5, %v1431_v19, %v9456_v61  ;;  %v9466_v19 = vld [vmem:[#allocation40_spill] sm:$0xff] }
 0x1f7   : > { %v985_v28 = vpop.permute.xlu0 %984  ;;  %v1495_v2 = vsel %vm1475_vm6, %v1462_v41, %v9457_v1 }
 0x1f8   : > { %v1084_v34 = vpop.permute.xlu1 %1083  ;;  %v1528_v20 = vsel %vm1508_vm7, %v1495_v2, %v985_v28  ;;  %v9460_v28 = vld [vmem:[#allocation107_spill] sm:$0xff] }
 0x1f9   : > { %1291 = vrot.lane.b32.xlu0 %v945_v5, %s4738_s15  ;;  %v1560_v3 = vsel %vm1541_vm8, %v1527_v62, %v1084_v34 }
 0x1fa   : > { %1379 = vrot.lane.b32.xlu1 %v1044_v30, %s4739_s16 }
 0x1fb   : > { %v1358_v54 = vpop.permute.xlu0 %1357 }
 0x1fc   : > { %v1658_v38 = vsel %vm1640_vm11, %v1625_v42, %v1358_v54  ;;  %v1086_v39 = vpop.permute.xlu1 %1085 }
 0x1fd   : > { %1008 = vrot.lane.b32.xlu0 %v945_v5, %s4735_s27  ;;  %4575 = vmatmul.mubr.msk.f32.gmra.mrb[16].mxu0 %vm1685_vm12, %v1658_v38  ;;  %v1561_v7 = vsel %vm1541_vm8, %v1528_v20, %v1086_v39  ;;  %v9459_v5 = vld [vmem:[#allocation14_spill] sm:$0xff]  ;;  %v9461_v38 = vld [vmem:[#allocation71_spill] sm:$0xff] }
 0x1fe   : > { %1107 = vrot.lane.b32.xlu1 %v1044_v30, %s4736_s11  ;;  %v1463_v57 = vsel %vm1444_vm5, %v1432_v11, %v9459_v5  ;;  %v1433_v47 = vsel %vm1413_vm4, %v4986_v45, %v9461_v38 }
 0x1ff   : > { %v1180_v17 = vpop.permute.xlu0 %1179  ;;  %v1496_v30 = vsel %vm1475_vm6, %v1463_v57, %v9460_v28 }
 0x200   : > { %v1182_v4 = vpop.permute.xlu1 %1181  ;;  %v1593_v12 = vsel %vm1574_vm9, %v1560_v3, %v1180_v17 }
 0x201   : > { %1381 = vrot.lane.b32.xlu0 %v1046_v59, %s4739_s16  ;;  %v1594_v6 = vsel %vm1574_vm9, %v1561_v7, %v1182_v4  ;;  %v9463_v4 = vld [vmem:[#allocation108_spill] sm:$0xff]  ;;  %v9467_v7 = vld [vmem:[#allocation73_spill] sm:$0xff] }
 0x202   : > { %1109 = vrot.lane.b32.xlu1 %v1046_v59, %s4736_s11  ;;  %v9462_v59 = vld [vmem:[#allocation15_spill] sm:$0xff] }
 0x203   : > { %v1270_v53 = vpop.permute.xlu0 %1269  ;;  %v1464_v17 = vsel %vm1444_vm5, %v1433_v47, %v9462_v59 }
 0x204   : > { %v987_v44 = vpop.permute.xlu1 %986  ;;  %v1626_v37 = vsel %vm1607_vm10, %v1593_v12, %v1270_v53  ;;  %v1497_v15 = vsel %vm1475_vm6, %v1464_v17, %v9463_v4  ;;  %v9464_v12 = vld [vmem:[#allocation72_spill] sm:$0xff] }
 0x205   : > { %v1529_v34 = vsel %vm1508_vm7, %v1496_v30, %v987_v44 }
 0x207   : > { %v1272_v63 = vpop.permute.xlu0 %1271 }
 0x208   : > { %v1360_v26 = vpop.permute.xlu1 %1359  ;;  %v1627_v8 = vsel %vm1607_vm10, %v1594_v6, %v1272_v63  ;;  %v1434_v63 = vsel %vm1413_vm4, %v5016_v23, %v9464_v12  ;;  %v1435_v23 = vsel %vm1413_vm4, %v5013_v22, %v9467_v7 }
 0x209   : > { %v1659_v58 = vsel %vm1640_vm11, %v1626_v37, %v1360_v26  ;;  %v9465_v37 = vld [vmem:[#allocation16_spill] sm:$0xff] }
 0x20a   : > { %4577 = vmatprep.mubr.msk.f32.mxu0 %vm1685_vm12, %v1659_v58  ;;  %v1465_v26 = vsel %vm1444_vm5, %v1434_v63, %v9465_v37 }
 0x20b   : > { %v989_v14 = vpop.permute.xlu0 %988  ;;  %v1498_v58 = vsel %vm1475_vm6, %v1465_v26, %v9466_v19 }
 0x20c   : > { %v1088_v52 = vpop.permute.xlu1 %1087  ;;  %v1530_v18 = vsel %vm1508_vm7, %v1497_v15, %v989_v14 }
 0x20d   : > { %v1562_v43 = vsel %vm1541_vm8, %v1529_v34, %v1088_v52  ;;  %v9470_v34 = vld [vmem:[#allocation74_spill] sm:$0xff] }
 0x20f   : > { %v1362_v10 = vpop.permute.xlu0 %1361 }
 0x210   : > { %v1660_v29 = vsel %vm1640_vm11, %v1627_v8, %v1362_v10  ;;  %v1090_v0 = vpop.permute.xlu1 %1089  ;;  %v9468_v8 = vld [vmem:[#allocation92_spill] sm:$0xff] }
 0x211   : > { %4578 = vmatmul.mubr.msk.f32.gmra.mrb[18].mxu0 %vm1685_vm12, %v1660_v29  ;;  %v1563_v48 = vsel %vm1541_vm8, %v1530_v18, %v1090_v0  ;;  %v1466_v10 = vsel %vm1444_vm5, %v1435_v23, %v9468_v8  ;;  %v9469_v29 = vld [vmem:[#allocation109_spill] sm:$0xff]  ;;  %v9473_v18 = vld [vmem:[#allocation75_spill] sm:$0xff] }
 0x212   : > { %v1499_v0 = vsel %vm1475_vm6, %v1466_v10, %v9469_v29 }
 0x213   : > { %v1184_v27 = vpop.permute.xlu0 %1183 }
 0x214   : > { %v1186_v32 = vpop.permute.xlu1 %1185  ;;  %v1595_v50 = vsel %vm1574_vm9, %v1562_v43, %v1184_v27  ;;  %v1436_v43 = vsel %vm1413_vm4, %v9394_v31, %v9470_v34  ;;  %v1437_v31 = vsel %vm1413_vm4, %v9395_v9, %v9473_v18 }
 0x215   : > { %v1596_v53 = vsel %vm1574_vm9, %v1563_v48, %v1186_v32 }
 0x217   : > { %v1274_v51 = vpop.permute.xlu0 %1273 }
 0x218   : > { %v991_v36 = vpop.permute.xlu1 %990  ;;  %v1628_v42 = vsel %vm1607_vm10, %v1595_v50, %v1274_v51  ;;  %v9471_v50 = vld [vmem:[#allocation93_spill] sm:$0xff] }
 0x219   : > { %v1531_v41 = vsel %vm1508_vm7, %v1498_v58, %v991_v36 }
 0x21b   : > { %v1276_v56 = vpop.permute.xlu0 %1275 }
 0x21c   : > { %v1364_v54 = vpop.permute.xlu1 %1363  ;;  %v1629_v45 = vsel %vm1607_vm10, %v1596_v53, %v1276_v56  ;;  %v1467_v56 = vsel %vm1444_vm5, %v1436_v43, %v9471_v50  ;;  %v9474_v53 = vld [vmem:[#allocation94_spill] sm:$0xff] }
 0x21d   : > { %v1661_v39 = vsel %vm1640_vm11, %v1628_v42, %v1364_v54  ;;  %v9472_v54 = vld [vmem:[#allocation110_spill] sm:$0xff] }
 0x21e   : > { %4580 = vmatprep.mubr.msk.f32.mxu0 %vm1685_vm12, %v1661_v39  ;;  %v1500_v38 = vsel %vm1475_vm6, %v1467_v56, %v9472_v54 }
 0x21f   : > { %v993_v13 = vpop.permute.xlu0 %992 }
 0x220   : > { %v1092_v40 = vpop.permute.xlu1 %1091  ;;  %v1532_v32 = vsel %vm1508_vm7, %v1499_v0, %v993_v13 }
 0x221   : > { %v1564_v1 = vsel %vm1541_vm8, %v1531_v41, %v1092_v40  ;;  %v9476_v41 = vld [vmem:[#allocation76_spill] sm:$0xff] }
 0x223   : > { %v1366_v49 = vpop.permute.xlu0 %1365 }
 0x224   : > { %v1662_v21 = vsel %vm1640_vm11, %v1629_v45, %v1366_v49  ;;  %v1094_v44 = vpop.permute.xlu1 %1093  ;;  %v1468_v45 = vsel %vm1444_vm5, %v1437_v31, %v9474_v53  ;;  %v9484_v31 = vld [vmem:[#allocation114_spill] sm:$0xff] }
 0x225   : > { %4581 = vmatmul.mubr.msk.f32.gmra.mrb[20].mxu0 %vm1685_vm12, %v1662_v21  ;;  %v1565_v11 = vsel %vm1541_vm8, %v1532_v32, %v1094_v44  ;;  %v9475_v21 = vld [vmem:[#allocation111_spill] sm:$0xff] }
 0x226   : > { %v1501_v44 = vsel %vm1475_vm6, %v1468_v45, %v9475_v21 }
 0x227   : > { %v1188_v62 = vpop.permute.xlu0 %1187 }
 0x228   : > { %v1190_v3 = vpop.permute.xlu1 %1189  ;;  %v1597_v2 = vsel %vm1574_vm9, %v1564_v1, %v1188_v62  ;;  %v1438_v1 = vsel %vm1413_vm4, %v9404_v24, %v9476_v41  ;;  %v9488_v41 = vld [vmem:[#allocation99_spill] sm:$0xff] }
 0x229   : > { %v1598_v5 = vsel %vm1574_vm9, %v1565_v11, %v1190_v3 }
 0x22b   : > { %v1278_v55 = vpop.permute.xlu0 %1277 }
 0x22c   : > { %v995_v61 = vpop.permute.xlu1 %994  ;;  %v1630_v20 = vsel %vm1607_vm10, %v1597_v2, %v1278_v55  ;;  %v9477_v2 = vld [vmem:[#allocation95_spill] sm:$0xff] }
 0x22d   : > { %v1533_v39 = vsel %vm1508_vm7, %v1500_v38, %v995_v61 }
 0x22f   : > { %v1280_v14 = vpop.permute.xlu0 %1279 }
 0x230   : > { %v1368_v52 = vpop.permute.xlu1 %1367  ;;  %v1631_v22 = vsel %vm1607_vm10, %v1598_v5, %v1280_v14  ;;  %v1469_v14 = vsel %vm1444_vm5, %v1438_v1, %v9477_v2  ;;  %v9489_v2 = vld [vmem:[#allocation115_spill] sm:$0xff] }
 0x231   : > { %v1663_v6 = vsel %vm1640_vm11, %v1630_v20, %v1368_v52  ;;  %v9478_v52 = vld [vmem:[#allocation112_spill] sm:$0xff] }
 0x232   : > { %4583 = vmatprep.mubr.msk.f32.mxu0 %vm1685_vm12, %v1663_v6  ;;  %v1502_v7 = vsel %vm1475_vm6, %v1469_v14, %v9478_v52  ;;  %v9490_v52 = vld [vmem:[#allocation41_spill] sm:$0xff] }
 0x233   : > { %v997_v27 = vpop.permute.xlu0 %996 }
 0x234   : > { %v1096_v60 = vpop.permute.xlu1 %1095  ;;  %v1534_v3 = vsel %vm1508_vm7, %v1501_v44, %v997_v27 }
 0x235   : > { %v1566_v59 = vsel %vm1541_vm8, %v1533_v39, %v1096_v60  ;;  %v9479_v60 = vld [vmem:[#allocation77_spill] sm:$0xff] }
 0x236   : > { %v1439_v11 = vsel %vm1413_vm4, %v9406_v46, %v9479_v60 }
 0x237   : > { %v1370_v57 = vpop.permute.xlu0 %1369 }
 0x238   : > { %v1664_v51 = vsel %vm1640_vm11, %v1631_v22, %v1370_v57  ;;  %v1098_v28 = vpop.permute.xlu1 %1097  ;;  %v9480_v22 = vld [vmem:[#allocation96_spill] sm:$0xff] }
 0x239   : > { %4584 = vmatmul.mubr.msk.f32.gmra.mrb[22].mxu0 %vm1685_vm12, %v1664_v51  ;;  %v1567_v9 = vsel %vm1541_vm8, %v1534_v3, %v1098_v28  ;;  %v1470_v57 = vsel %vm1444_vm5, %v1439_v11, %v9480_v22  ;;  %v9481_v51 = vld [vmem:[#allocation113_spill] sm:$0xff]  ;;  %v9492_v11 = vld [vmem:[#allocation100_spill] sm:$0xff] }
 0x23a   : > { %v1503_v28 = vsel %vm1475_vm6, %v1470_v57, %v9481_v51  ;;  %v9493_v51 = vld [vmem:[#allocation116_spill] sm:$0xff] }
 0x23b   : > { %v1192_v30 = vpop.permute.xlu0 %1191 }
 0x23c   : > { %v1194_v36 = vpop.permute.xlu1 %1193  ;;  %v1599_v17 = vsel %vm1574_vm9, %v1566_v59, %v1192_v30  ;;  %v9482_v59 = vld [vmem:[#allocation78_spill] sm:$0xff] }
 0x23d   : > { %v1600_v63 = vsel %vm1574_vm9, %v1567_v9, %v1194_v36 }
 0x23f   : > { %v1282_v42 = vpop.permute.xlu0 %1281 }
 0x240   : > { %v999_v47 = vpop.permute.xlu1 %998  ;;  %v1632_v15 = vsel %vm1607_vm10, %v1599_v17, %v1282_v42  ;;  %v1440_v17 = vsel %vm1413_vm4, %v9416_v33, %v9482_v59 }
 0x241   : > { %v1535_v6 = vsel %vm1508_vm7, %v1502_v7, %v999_v47 }
 0x243   : > { %v1284_v4 = vpop.permute.xlu0 %1283 }
 0x244   : > { %v1372_v13 = vpop.permute.xlu1 %1371  ;;  %v1633_v37 = vsel %vm1607_vm10, %v1600_v63, %v1284_v4  ;;  %v9486_v63 = vld [vmem:[#allocation80_spill] sm:$0xff] }
 0x245   : > { %v1665_v40 = vsel %vm1640_vm11, %v1632_v15, %v1372_v13  ;;  %v6297_v48 = vpop.f32.mrb[0].mxu0  ;;  %v9483_v15 = vld [vmem:[#allocation97_spill] sm:$0xff] }
 0x246   : > { %v6301_v49 = vpop.f32.mrb[1].mxu0  ;;  %4586 = vmatprep.mubr.msk.f32.mxu0 %vm1685_vm12, %v1665_v40  ;;  %v1471_v13 = vsel %vm1444_vm5, %v1440_v17, %v9483_v15 }
 0x247   : > { %v1001_v62 = vpop.permute.xlu0 %1000  ;;  %v1504_v40 = vsel %vm1475_vm6, %v1471_v13, %v9484_v31 }
 0x248   : > { %v1100_v12 = vpop.permute.xlu1 %1099  ;;  %v1536_v36 = vsel %vm1508_vm7, %v1503_v28, %v1001_v62 }
 0x249   : > { %v1568_v10 = vsel %vm1541_vm8, %v1535_v6, %v1100_v12  ;;  %v9485_v12 = vld [vmem:[#allocation79_spill] sm:$0xff] }
 0x24a   : > { %v1441_v9 = vsel %vm1413_vm4, %v9417_v16, %v9485_v12 }
 0x24b   : > { %v1374_v26 = vpop.permute.xlu0 %1373 }
 0x24c   : > { %v1666_v55 = vsel %vm1640_vm11, %v1633_v37, %v1374_v26  ;;  %v1102_v19 = vpop.permute.xlu1 %1101  ;;  %v1442_v37 = vsel %vm1413_vm4, %v9429_v25, %v9486_v63 }
 0x24d   : > { %4587 = vmatmul.mubr.msk.f32.gmra.mrb[24].mxu0 %vm1685_vm12, %v1666_v55  ;;  %v1569_v43 = vsel %vm1541_vm8, %v1536_v36, %v1102_v19  ;;  %v9487_v55 = vld [vmem:[#allocation98_spill] sm:$0xff]  ;;  %v1473_v1 = vsel %vm1444_vm5, %v1442_v37, %v9488_v41 }
 0x24e   : > { %v1472_v19 = vsel %vm1444_vm5, %v1441_v9, %v9487_v55  ;;  %v1506_v16 = vsel %vm1475_vm6, %v1473_v1, %v9490_v52 }
 0x24f   : > { %v6312_v58 = vpop.permute.xlu0 %1195  ;;  %v1505_v14 = vsel %vm1475_vm6, %v1472_v19, %v9489_v2 }
 0x250   : > { %v6314_v61 = vpop.permute.xlu1 %1197  ;;  %v1601_v24 = vsel %vm1574_vm9, %v1568_v10, %v6312_v58  ;;  %v9491_v10 = vld [vmem:[#allocation81_spill] sm:$0xff] }
 0x251   : > { %v1602_v50 = vsel %vm1574_vm9, %v1569_v43, %v6314_v61 }
 0x253   : > { %v6321_v20 = vpop.permute.xlu0 %1285 }
 0x254   : > { %v1003_v23 = vpop.permute.xlu1 %1002  ;;  %v1634_v27 = vsel %vm1607_vm10, %v1601_v24, %v6321_v20  ;;  %v1443_v24 = vsel %vm1413_vm4, %v9430_v35, %v9491_v10 }
 0x255   : > { %v6326_v8 = vpop.f32.mrb[2].mxu0  ;;  %v1537_v45 = vsel %vm1508_vm7, %v1504_v40, %v1003_v23 }
 0x256   : > { %v6329_v29 = vpop.f32.mrb[3].mxu0 }
 0x257   : > { %v6333_v0 = vpop.permute.xlu0 %1287 }
 0x258   : > { %v1376_v32 = vpop.permute.xlu1 %1375  ;;  %v1635_v46 = vsel %vm1607_vm10, %v1602_v50, %v6333_v0 }
 0x259   : > { %v1667_v5 = vsel %vm1640_vm11, %v1634_v27, %v1376_v32 }
 0x25a   : > { %4589 = vmatprep.mubr.msk.f32.mxu0 %vm1685_vm12, %v1667_v5  ;;  %v1474_v5 = vsel %vm1444_vm5, %v1443_v24, %v9492_v11 }
 0x25b   : > { %v1005_v30 = vpop.permute.xlu0 %1004  ;;  %v1507_v28 = vsel %vm1475_vm6, %v1474_v5, %v9493_v51 }
 0x25c   : > { %v1104_v34 = vpop.permute.xlu1 %1103  ;;  %v1538_v23 = vsel %vm1508_vm7, %v1505_v14, %v1005_v30 }
 0x25d   : > { %v1570_v21 = vsel %vm1541_vm8, %v1537_v45, %v1104_v34 }
 0x25f   : > { %v1378_v56 = vpop.permute.xlu0 %1377 }
 0x260   : > { %v1106_v42 = vpop.permute.xlu1 %1105  ;;  %v1668_v54 = vsel %vm1640_vm11, %v1635_v46, %v1378_v56 }
 0x261   : > { %4590 = vmatmul.mubr.msk.f32.gmra.mrb[26].mxu0 %vm1685_vm12, %v1668_v54  ;;  %v1571_v27 = vsel %vm1541_vm8, %v1538_v23, %v1106_v42 }
 0x263   : > { %v1200_v38 = vpop.permute.xlu0 %1199 }
 0x264   : > { %v1202_v47 = vpop.permute.xlu1 %1201  ;;  %v1603_v44 = vsel %vm1574_vm9, %v1570_v21, %v1200_v38 }
 0x265   : > { %v6354_v39 = vpop.f32.mrb[4].mxu0  ;;  %v1604_v22 = vsel %vm1574_vm9, %v1571_v27, %v1202_v47 }
 0x266   : > { %v6359_v4 = vpop.f32.mrb[5].mxu0 }
 0x267   : > { %v1290_v18 = vpop.permute.xlu0 %1289 }
 0x268   : > { %v1007_v53 = vpop.permute.xlu1 %1006  ;;  %v1636_v3 = vsel %vm1607_vm10, %v1603_v44, %v1290_v18 }
 0x269   : > { %v1539_v25 = vsel %vm1508_vm7, %v1506_v16, %v1007_v53 }
 0x26b   : > { %v1292_v62 = vpop.permute.xlu0 %1291 }
 0x26c   : > { %v1380_v33 = vpop.permute.xlu1 %1379  ;;  %v1637_v30 = vsel %vm1607_vm10, %v1604_v22, %v1292_v62 }
 0x26d   : > { %v1669_v26 = vsel %vm1640_vm11, %v1636_v3, %v1380_v33 }
 0x26e   : > { %4592 = vmatprep.mubr.msk.f32.mxu0 %vm1685_vm12, %v1669_v26 }
 0x26f   : > { %v1009_v7 = vpop.permute.xlu0 %1008 }
 0x270   : > { %v1108_v6 = vpop.permute.xlu1 %1107  ;;  %v1540_v34 = vsel %vm1508_vm7, %v1507_v28, %v1009_v7 }
 0x271   : > { %v1572_v60 = vsel %vm1541_vm8, %v1539_v25, %v1108_v6 }
 0x272   : > { %v1605_v57 = vsel %vm1574_vm9, %v1572_v60, %v6312_v58 }
 0x273   : > { %v1382_v36 = vpop.permute.xlu0 %1381  ;;  %v1638_v35 = vsel %vm1607_vm10, %v1605_v57, %v6321_v20 }
 0x274   : > { %v1670_v43 = vsel %vm1640_vm11, %v1637_v30, %v1382_v36  ;;  %v1110_v50 = vpop.permute.xlu1 %1109  ;;  %v1671_v58 = vsel %vm1640_vm11, %v1638_v35, %v1376_v32 }
 0x275   : > { %v1573_v46 = vsel %vm1541_vm8, %v1540_v34, %v1110_v50  ;;  %v4561_v42 = vpop.f32.mrb[6].mxu0  ;;  %4593 = vmatmul.mubr.msk.f32.gmra.mrb[28].mxu0 %vm1685_vm12, %v1670_v43 }
 0x276   : > { %v1606_v54 = vsel %vm1574_vm9, %v1573_v46, %v6314_v61  ;;  %v1882_v38 = vpop.f32.mrb[7].mxu0  ;;  %4595 = vmatprep.mubr.msk.f32.mxu0 %vm1685_vm12, %v1671_v58 }
 0x277   : > { %v1639_v20 = vsel %vm1607_vm10, %v1606_v54, %v6333_v0 }
 0x278   : > { %v1672_v47 = vsel %vm1640_vm11, %v1639_v20, %v1378_v56  ;;  %v6431_v56 = vld [vmem:[%s9014_s2] ss:$0 sm:$0xff] }
 0x279   : > { %4596 = vmatmul.mubr.msk.f32.gmra.mrb[30].mxu0 %vm1685_vm12, %v1672_v47  ;;  %v6437_v45 = vadd.f32 %v6297_v48, %v6431_v56  ;;  %v6443_v44 = vadd.f32 %v6431_v56, %v6301_v49  ;;  %v6447_v62 = vadd.f32 %v6431_v56, %v6329_v29  ;;  %v6463_v63 = vadd.f32 %v6326_v8, %v6431_v56 }
 0x27a   : > { %v6469_v26 = vadd.f32 %v6431_v56, %v6359_v4  ;;  %v6480_v16 = vadd.f32 %v6354_v39, %v6431_v56  ;;  %v6485_v7 = vadd.f32 %v6431_v56, %v1882_v38  ;;  %v6500_v57 = vadd.f32 %v4561_v42, %v6431_v56 }
 0x27b   : > { %v2081_v3 = vmul.f32 %v6437_v45, %v6437_v45  ;;  %v2080_v33 = vmul.f32 %v6443_v44, %v6443_v44  ;;  %v2012_v48 = vsel %vm1413_vm4, %v6437_v45, 0.0  ;;  %v2011_v12 = vsel %vm1413_vm4, %v6443_v44, 0.0 }
 0x27c   : > { %v2082_v49 = vmul.f32 %v6447_v62, %v6447_v62  ;;  %v2014_v37 = vsel %vm1413_vm4, %v6447_v62, 0.0  ;;  %v2013_v55 = vadd.f32 %v2012_v48, %v2011_v12  ;;  %v2083_v2 = vmul.f32 %v6463_v63, %v6463_v63 }
 0x27d   : > { %v2113_v9 = vsel %vm1413_vm4, %v2081_v3, 0.0  ;;  %v2112_v29 = vsel %vm1413_vm4, %v2080_v33, 0.0  ;;  %v2084_v14 = vmul.f32 %v6469_v26, %v6469_v26  ;;  %v2016_v52 = vsel %vm1413_vm4, %v6463_v63, 0.0 }
 0x27e   : > { %v2115_v19 = vsel %vm1413_vm4, %v2082_v49, 0.0  ;;  %v2114_v41 = vadd.f32 %v2113_v9, %v2112_v29  ;;  %v2015_v1 = vadd.f32 %v2014_v37, %v2013_v55  ;;  %v2018_v4 = vsel %vm1413_vm4, %v6469_v26, 0.0 }
 0x27f   : > { %v2117_v25 = vsel %vm1413_vm4, %v2083_v2, 0.0  ;;  %v2119_v6 = vsel %vm1413_vm4, %v2084_v14, 0.0  ;;  %v2085_v27 = vmul.f32 %v6480_v16, %v6480_v16  ;;  %v2086_v39 = vmul.f32 %v6485_v7, %v6485_v7 }
 0x280   : > { %v2116_v8 = vadd.f32 %v2115_v19, %v2114_v41  ;;  %v2017_v23 = vadd.f32 %v2016_v52, %v2015_v1  ;;  %v2020_v22 = vsel %vm1413_vm4, %v6480_v16, 0.0  ;;  %v2022_v51 = vsel %vm1413_vm4, %v6485_v7, 0.0 }
 0x281   : > { %v2121_v36 = vsel %vm1413_vm4, %v2085_v27, 0.0  ;;  %v2123_v35 = vsel %vm1413_vm4, %v2086_v39, 0.0  ;;  %v2087_v50 = vmul.f32 %v6500_v57, %v6500_v57  ;;  %v2024_v58 = vsel %vm1413_vm4, %v6500_v57, 0.0 }
 0x282   : > { %v2019_v10 = vadd.f32 %v2018_v4, %v2017_v23  ;;  %v2118_v24 = vadd.f32 %v2117_v25, %v2116_v8 }
 0x284   : > { %v2120_v11 = vadd.f32 %v2119_v6, %v2118_v24  ;;  %v2021_v30 = vadd.f32 %v2020_v22, %v2019_v10 }
 0x285   : > { %v4564_v59 = vpop.f32.mrb[8].mxu0 }
 0x286   : > { %v1892_v17 = vpop.f32.mrb[9].mxu0  ;;  %v2023_v34 = vadd.f32 %v2022_v51, %v2021_v30  ;;  %v2122_v43 = vadd.f32 %v2121_v36, %v2120_v11  ;;  %v6516_v54 = vadd.f32 %v4564_v59, %v6431_v56 }
 0x287   : > { %v6505_v28 = vadd.f32 %v6431_v56, %v1892_v17  ;;  %v2125_v17 = vsel %vm1413_vm4, %v2087_v50, 0.0 }
 0x288   : > { %v2124_v42 = vadd.f32 %v2123_v35, %v2122_v43  ;;  %v2025_v47 = vadd.f32 %v2024_v58, %v2023_v34  ;;  %v2089_v12 = vmul.f32 %v6516_v54, %v6516_v54  ;;  %v2028_v9 = vsel %vm1413_vm4, %v6516_v54, 0.0 }
 0x289   : > { %v2088_v46 = vmul.f32 %v6505_v28, %v6505_v28  ;;  %v2026_v38 = vsel %vm1413_vm4, %v6505_v28, 0.0 }
 0x28a   : > { %v2027_v33 = vadd.f32 %v2026_v38, %v2025_v47  ;;  %v2126_v48 = vadd.f32 %v2125_v17, %v2124_v42  ;;  %v2129_v19 = vsel %vm1413_vm4, %v2089_v12, 0.0 }
 0x28b   : > { %v2127_v3 = vsel %vm1413_vm4, %v2088_v46, 0.0 }
 0x28c   : > { %v2128_v49 = vadd.f32 %v2127_v3, %v2126_v48  ;;  %v2029_v55 = vadd.f32 %v2028_v9, %v2027_v33 }
 0x28e   : > { %v2130_v2 = vadd.f32 %v2129_v19, %v2128_v49 }
 0x295   : > { %v6414_v15 = vpop.f32.mrb[10].mxu0 }
 0x296   : > { %v1902_v13 = vpop.f32.mrb[11].mxu0 }
 0x297   : > { %v6521_v20 = vadd.f32 %v6431_v56, %v1902_v13  ;;  %v6533_v13 = vadd.f32 %v6414_v15, %v6431_v56 }
 0x299   : > { %v2090_v59 = vmul.f32 %v6521_v20, %v6521_v20  ;;  %v2030_v29 = vsel %vm1413_vm4, %v6521_v20, 0.0  ;;  %v2091_v14 = vmul.f32 %v6533_v13, %v6533_v13  ;;  %v2032_v52 = vsel %vm1413_vm4, %v6533_v13, 0.0 }
 0x29a   : > { %v2031_v1 = vadd.f32 %v2030_v29, %v2029_v55 }
 0x29b   : > { %v2131_v41 = vsel %vm1413_vm4, %v2090_v59, 0.0  ;;  %v2133_v24 = vsel %vm1413_vm4, %v2091_v14, 0.0 }
 0x29c   : > { %v2132_v8 = vadd.f32 %v2131_v41, %v2130_v2  ;;  %v2033_v6 = vadd.f32 %v2032_v52, %v2031_v1 }
 0x29e   : > { %v2134_v11 = vadd.f32 %v2133_v24, %v2132_v8 }
 0x2a8   : > { %v6416_v18 = vpop.f32.mrb[12].mxu0 }
 0x2a9   : > { %v6418_v32 = vpop.f32.mrb[13].mxu0 }
 0x2aa   : > { %v6539_v37 = vadd.f32 %v6431_v56, %v6418_v32  ;;  %v6551_v32 = vadd.f32 %v6416_v18, %v6431_v56 }
 0x2ac   : > { %v2092_v15 = vmul.f32 %v6539_v37, %v6539_v37  ;;  %v2034_v4 = vsel %vm1413_vm4, %v6539_v37, 0.0  ;;  %v2093_v18 = vmul.f32 %v6551_v32, %v6551_v32 }
 0x2ad   : > { %v2035_v39 = vadd.f32 %v2034_v4, %v2033_v6 }
 0x2ae   : > { %v2135_v27 = vsel %vm1413_vm4, %v2092_v15, 0.0  ;;  %v2137_v43 = vsel %vm1413_vm4, %v2093_v18, 0.0 }
 0x2af   : > { %v2136_v51 = vadd.f32 %v2135_v27, %v2134_v11 }
 0x2b1   : > { %v2138_v42 = vadd.f32 %v2137_v43, %v2136_v51 }
 0x2bc   : > { %v6420_v61 = vpop.f32.mrb[14].mxu0 }
 0x2bd   : > { %v6422_v31 = vpop.f32.mrb[15].mxu0  ;;  %v6569_v30 = vadd.f32 %v6420_v61, %v6431_v56 }
 0x2be   : > { %v6557_v23 = vadd.f32 %v6431_v56, %v6422_v31  ;;  %v2036_v31 = vsel %vm1413_vm4, %v6551_v32, 0.0 }
 0x2bf   : > { %v2037_v34 = vadd.f32 %v2036_v31, %v2035_v39  ;;  %v2095_v58 = vmul.f32 %v6569_v30, %v6569_v30  ;;  %v2040_v47 = vsel %vm1413_vm4, %v6569_v30, 0.0 }
 0x2c0   : > { %v2094_v22 = vmul.f32 %v6557_v23, %v6557_v23  ;;  %v2038_v36 = vsel %vm1413_vm4, %v6557_v23, 0.0 }
 0x2c1   : > { %v2039_v46 = vadd.f32 %v2038_v36, %v2037_v34  ;;  %v2141_v48 = vsel %vm1413_vm4, %v2095_v58, 0.0 }
 0x2c2   : > { %v2139_v50 = vsel %vm1413_vm4, %v2094_v22, 0.0 }
 0x2c3   : > { %v2140_v38 = vadd.f32 %v2139_v50, %v2138_v42  ;;  %v2041_v33 = vadd.f32 %v2040_v47, %v2039_v46 }
 0x2c5   : > { %v2142_v49 = vadd.f32 %v2141_v48, %v2140_v38 }
 0x2d0   : > { %v6424_v40 = vpop.f32.mrb[16].mxu0 }
 0x2d1   : > { %v6426_v0 = vpop.f32.mrb[17].mxu0 }
 0x2d2   : > { %v6575_v35 = vadd.f32 %v6431_v56, %v6426_v0  ;;  %v6587_v0 = vadd.f32 %v6424_v40, %v6431_v56 }
 0x2d4   : > { %v2096_v61 = vmul.f32 %v6575_v35, %v6575_v35  ;;  %v2042_v17 = vsel %vm1413_vm4, %v6575_v35, 0.0  ;;  %v2097_v9 = vmul.f32 %v6587_v0, %v6587_v0  ;;  %v2044_v55 = vsel %vm1413_vm4, %v6587_v0, 0.0 }
 0x2d5   : > { %v2043_v59 = vadd.f32 %v2042_v17, %v2041_v33 }
 0x2d6   : > { %v2143_v12 = vsel %vm1413_vm4, %v2096_v61, 0.0  ;;  %v2145_v2 = vsel %vm1413_vm4, %v2097_v9, 0.0 }
 0x2d7   : > { %v2144_v29 = vadd.f32 %v2143_v12, %v2142_v49  ;;  %v2045_v1 = vadd.f32 %v2044_v55, %v2043_v59 }
 0x2d9   : > { %v2146_v52 = vadd.f32 %v2145_v2, %v2144_v29 }
 0x2e4   : > { %v6433_v53 = vpop.f32.mrb[18].mxu0 }
 0x2e5   : > { %v6439_v21 = vpop.f32.mrb[19].mxu0 }
 0x2e6   : > { %v6593_v3 = vadd.f32 %v6431_v56, %v6439_v21  ;;  %v6605_v21 = vadd.f32 %v6433_v53, %v6431_v56 }
 0x2e8   : > { %v2098_v40 = vmul.f32 %v6593_v3, %v6593_v3  ;;  %v2046_v19 = vsel %vm1413_vm4, %v6593_v3, 0.0  ;;  %v2099_v53 = vmul.f32 %v6605_v21, %v6605_v21 }
 0x2e9   : > { %v2047_v8 = vadd.f32 %v2046_v19, %v2045_v1 }
 0x2ea   : > { %v2147_v14 = vsel %vm1413_vm4, %v2098_v40, 0.0  ;;  %v2149_v22 = vsel %vm1413_vm4, %v2099_v53, 0.0 }
 0x2eb   : > { %v2148_v24 = vadd.f32 %v2147_v14, %v2146_v52 }
 0x2ed   : > { %v2150_v36 = vadd.f32 %v2149_v22, %v2148_v24 }
 0x2f8   : > { %v6493_v60 = vpop.f32.mrb[20].mxu0 }
 0x2f9   : > { %v6495_v5 = vpop.f32.mrb[21].mxu0  ;;  %v6623_v27 = vadd.f32 %v6493_v60, %v6431_v56 }
 0x2fa   : > { %v6611_v41 = vadd.f32 %v6431_v56, %v6495_v5  ;;  %v2048_v5 = vsel %vm1413_vm4, %v6605_v21, 0.0 }
 0x2fb   : > { %v2049_v18 = vadd.f32 %v2048_v5, %v2047_v8  ;;  %v2101_v34 = vmul.f32 %v6623_v27, %v6623_v27  ;;  %v2052_v50 = vsel %vm1413_vm4, %v6623_v27, 0.0 }
 0x2fc   : > { %v2100_v6 = vmul.f32 %v6611_v41, %v6611_v41  ;;  %v2050_v39 = vsel %vm1413_vm4, %v6611_v41, 0.0 }
 0x2fd   : > { %v2051_v31 = vadd.f32 %v2050_v39, %v2049_v18  ;;  %v2153_v61 = vsel %vm1413_vm4, %v2101_v34, 0.0 }
 0x2fe   : > { %v2151_v51 = vsel %vm1413_vm4, %v2100_v6, 0.0 }
 0x2ff   : > { %v2152_v43 = vadd.f32 %v2151_v51, %v2150_v36  ;;  %v2053_v58 = vadd.f32 %v2052_v50, %v2051_v31 }
 0x301   : > { %v2154_v17 = vadd.f32 %v2153_v61, %v2152_v43 }
 0x30c   : > { %v4585_v25 = vpop.f32.mrb[22].mxu0 }
 0x30d   : > { %v1962_v10 = vpop.f32.mrb[23].mxu0 }
 0x30e   : > { %v6628_v11 = vadd.f32 %v6431_v56, %v1962_v10  ;;  %v6639_v10 = vadd.f32 %v4585_v25, %v6431_v56 }
 0x310   : > { %v2102_v60 = vmul.f32 %v6628_v11, %v6628_v11  ;;  %v2054_v46 = vsel %vm1413_vm4, %v6628_v11, 0.0  ;;  %v2103_v33 = vmul.f32 %v6639_v10, %v6639_v10  ;;  %v2056_v12 = vsel %vm1413_vm4, %v6639_v10, 0.0 }
 0x311   : > { %v2055_v47 = vadd.f32 %v2054_v46, %v2053_v58 }
 0x312   : > { %v2155_v38 = vsel %vm1413_vm4, %v2102_v60, 0.0  ;;  %v2157_v40 = vsel %vm1413_vm4, %v2103_v33, 0.0 }
 0x313   : > { %v2156_v48 = vadd.f32 %v2155_v38, %v2154_v17  ;;  %v2057_v9 = vadd.f32 %v2056_v12, %v2055_v47 }
 0x315   : > { %v2158_v19 = vadd.f32 %v2157_v40, %v2156_v48 }
 0x320   : > { %v4588_v15 = vpop.f32.mrb[24].mxu0 }
 0x321   : > { %v1972_v4 = vpop.f32.mrb[25].mxu0  ;;  %v6655_v59 = vadd.f32 %v4588_v15, %v6431_v56 }
 0x322   : > { %v6644_v42 = vadd.f32 %v6431_v56, %v1972_v4 }
 0x323   : > { %v2105_v1 = vmul.f32 %v6655_v59, %v6655_v59  ;;  %v2060_v52 = vsel %vm1413_vm4, %v6655_v59, 0.0 }
 0x324   : > { %v2104_v25 = vmul.f32 %v6644_v42, %v6644_v42  ;;  %v2058_v49 = vsel %vm1413_vm4, %v6644_v42, 0.0 }
 0x325   : > { %v2059_v55 = vadd.f32 %v2058_v49, %v2057_v9  ;;  %v2161_v6 = vsel %vm1413_vm4, %v2105_v1, 0.0 }
 0x326   : > { %v2159_v29 = vsel %vm1413_vm4, %v2104_v25, 0.0 }
 0x327   : > { %v2160_v14 = vadd.f32 %v2159_v29, %v2158_v19  ;;  %v2061_v53 = vadd.f32 %v2060_v52, %v2059_v55 }
 0x329   : > { %v2162_v22 = vadd.f32 %v2161_v6, %v2160_v14 }
 0x334   : > { %v4591_v2 = vpop.f32.mrb[26].mxu0 }
 0x335   : > { %v6664_v8 = vadd.f32 %v4591_v2, %v6431_v56  ;;  %v1982_v15 = vpop.f32.mrb[27].mxu0 }
 0x336   : > { %v6669_v4 = vadd.f32 %v6431_v56, %v1982_v15 }
 0x337   : > { %v2107_v24 = vmul.f32 %v6664_v8, %v6664_v8  ;;  %v2064_v51 = vsel %vm1413_vm4, %v6664_v8, 0.0 }
 0x338   : > { %v2062_v5 = vsel %vm1413_vm4, %v6669_v4, 0.0  ;;  %v2106_v39 = vmul.f32 %v6669_v4, %v6669_v4 }
 0x339   : > { %v2063_v18 = vadd.f32 %v2062_v5, %v2061_v53  ;;  %v2165_v60 = vsel %vm1413_vm4, %v2107_v24, 0.0 }
 0x33a   : > { %v2163_v31 = vsel %vm1413_vm4, %v2106_v39, 0.0 }
 0x33b   : > { %v2164_v36 = vadd.f32 %v2163_v31, %v2162_v22  ;;  %v2065_v34 = vadd.f32 %v2064_v51, %v2063_v18 }
 0x33d   : > { %v2166_v43 = vadd.f32 %v2165_v60, %v2164_v36 }
 0x348   : > { %v4594_v50 = vpop.f32.mrb[28].mxu0 }
 0x349   : > { %v6683_v46 = vadd.f32 %v4594_v50, %v6431_v56  ;;  %v1992_v58 = vpop.f32.mrb[29].mxu0 }
 0x34a   : > { %v6686_v61 = vadd.f32 %v6431_v56, %v1992_v58 }
 0x34b   : > { %v2109_v38 = vmul.f32 %v6683_v46, %v6683_v46  ;;  %v2068_v49 = vsel %vm1413_vm4, %v6683_v46, 0.0 }
 0x34c   : > { %v2066_v47 = vsel %vm1413_vm4, %v6686_v61, 0.0  ;;  %v2108_v17 = vmul.f32 %v6686_v61, %v6686_v61  ;;  %v4597_v33 = vpop.f32.mrb[30].mxu0 }
 0x34d   : > { %v2067_v25 = vadd.f32 %v2066_v47, %v2065_v34  ;;  %v6695_v48 = vadd.f32 %v4597_v33, %v6431_v56  ;;  %v2002_v12 = vpop.f32.mrb[31].mxu0  ;;  %v2169_v19 = vsel %vm1413_vm4, %v2109_v38, 0.0 }
 0x34e   : > { %v2167_v9 = vsel %vm1413_vm4, %v2108_v17, 0.0  ;;  %v6701_v40 = vadd.f32 %v6431_v56, %v2002_v12 }
 0x34f   : > { %v2168_v29 = vadd.f32 %v2167_v9, %v2166_v43  ;;  %v2069_v55 = vadd.f32 %v2068_v49, %v2067_v25  ;;  %v2111_v1 = vmul.f32 %v6695_v48, %v6695_v48  ;;  %v2072_v53 = vsel %vm1413_vm4, %v6695_v48, 0.0 }
 0x350   : > { %v2070_v2 = vsel %vm1413_vm4, %v6701_v40, 0.0  ;;  %v2110_v14 = vmul.f32 %v6701_v40, %v6701_v40 }
 0x351   : > { %v2071_v15 = vadd.f32 %v2070_v2, %v2069_v55  ;;  %v2170_v52 = vadd.f32 %v2169_v19, %v2168_v29  ;;  %v2173_v5 = vsel %vm1413_vm4, %v2111_v1, 0.0 }
 0x352   : > { %v2171_v56 = vsel %vm1413_vm4, %v2110_v14, 0.0 }
 0x353   : > { %v2073_v6 = vadd.f32 %v2072_v53, %v2071_v15  ;;  %v2172_v24 = vadd.f32 %v2171_v56, %v2170_v52 }
 0x355   : > { %v2074_v39 = vrot.slane %v2073_v6, 4  ;;  %v2174_v18 = vadd.f32 %v2173_v5, %v2172_v24 }
 0x357   : > { %v2075_v22 = vadd.f32 %v2074_v39, %v2073_v6  ;;  %v2175_v51 = vrot.slane %v2174_v18, 4 }
 0x359   : > { %v2076_v31 = vrot.slane %v2075_v22, 2  ;;  %v2176_v36 = vadd.f32 %v2175_v51, %v2174_v18 }
 0x35b   : > { %v2077_v34 = vadd.f32 %v2076_v31, %v2075_v22  ;;  %v2177_v60 = vrot.slane %v2176_v36, 2 }
 0x35d   : > { %v2078_v43 = vrot.slane %v2077_v34, 1  ;;  %v2178_v50 = vadd.f32 %v2177_v60, %v2176_v36 }
 0x35f   : > { %v2079_v58 = vadd.f32 %v2078_v43, %v2077_v34  ;;  %v2179_v38 = vrot.slane %v2178_v50, 1 }
 0x361   : > { %v2180_v47 = vadd.f32 %v2179_v38, %v2178_v50  ;;  %v6714_v17 = vmul.f32 0.00390625, %v2079_v58 }
 0x363   : > { %v2182_v33 = vmul.f32 0.00390625, %v2180_v47  ;;  %v2183_v25 = vmul.f32 %v6714_v17, %v6714_v17  ;;  %v2216_v12 = vsub.f32 %v6701_v40, %v6714_v17  ;;  %v2212_v55 = vsub.f32 %v6669_v4, %v6714_v17 }
 0x364   : > { %v2213_v19 = vsub.f32 %v6664_v8, %v6714_v17  ;;  %v2214_v1 = vsub.f32 %v6686_v61, %v6714_v17  ;;  %v2215_v2 = vsub.f32 %v6683_v46, %v6714_v17  ;;  %v2217_v14 = vsub.f32 %v6695_v48, %v6714_v17 }
 0x365   : > { %v2184_v49 = vsub.f32 %v2182_v33, %v2183_v25  ;;  %v2186_v40 = vsub.f32 %v6443_v44, %v6714_v17  ;;  %v2187_v15 = vsub.f32 %v6437_v45, %v6714_v17  ;;  %v2188_v52 = vsub.f32 %v6447_v62, %v6714_v17 }
 0x366   : > { %v2189_v53 = vsub.f32 %v6463_v63, %v6714_v17  ;;  %v2190_v56 = vsub.f32 %v6469_v26, %v6714_v17  ;;  %v2191_v6 = vsub.f32 %v6480_v16, %v6714_v17  ;;  %v2192_v24 = vsub.f32 %v6485_v7, %v6714_v17 }
 0x367   : > { %v2185_v9 = vmax.f32 %v2184_v49, 0.0  ;;  %v2193_v44 = vsub.f32 %v6500_v57, %v6714_v17  ;;  %v2194_v45 = vsub.f32 %v6505_v28, %v6714_v17  ;;  %v2195_v62 = vsub.f32 %v6516_v54, %v6714_v17 }
 0x368   : > { %v2196_v63 = vsub.f32 %v6521_v20, %v6714_v17  ;;  %v2197_v26 = vsub.f32 %v6533_v13, %v6714_v17  ;;  %v2198_v16 = vsub.f32 %v6539_v37, %v6714_v17  ;;  %v2199_v7 = vsub.f32 %v6551_v32, %v6714_v17 }
 0x369   : > { %v2218_v29 = vadd.f32 1e-05, %v2185_v9  ;;  %v2200_v57 = vsub.f32 %v6557_v23, %v6714_v17  ;;  %v2201_v28 = vsub.f32 %v6569_v30, %v6714_v17  ;;  %v2202_v54 = vsub.f32 %v6575_v35, %v6714_v17 }
 0x36a   : > { %v2203_v20 = vsub.f32 %v6587_v0, %v6714_v17  ;;  %v2204_v13 = vsub.f32 %v6593_v3, %v6714_v17  ;;  %v2205_v37 = vsub.f32 %v6605_v21, %v6714_v17  ;;  %v2206_v32 = vsub.f32 %v6611_v41, %v6714_v17 }
 0x36b   : > { %4688 = vrsqrt.f32 %v2218_v29  ;;  %v2207_v23 = vsub.f32 %v6623_v27, %v6714_v17  ;;  %v2208_v30 = vsub.f32 %v6628_v11, %v6714_v17  ;;  %v2209_v35 = vsub.f32 %v6639_v10, %v6714_v17 }
 0x36c   : > { %v2210_v0 = vsub.f32 %v6644_v42, %v6714_v17  ;;  %v2211_v11 = vsub.f32 %v6655_v59, %v6714_v17 }
 0x375   : > { %v4689_v5 = vpop.eup %4688 }
 0x376   : > { %v6780_v3 = vmul.f32 %v4689_v5, %v2216_v12  ;;  %v2222_v39 = vmul.f32 %v4689_v5, %v2188_v52  ;;  %v2223_v21 = vmul.f32 %v4689_v5, %v2189_v53  ;;  %v6782_v18 = vmul.f32 %v4689_v5, %v2186_v40 }
 0x377   : > { %v2221_v41 = vmul.f32 %v4689_v5, %v2187_v15  ;;  %v6784_v22 = vmul.f32 %v4689_v5, %v2190_v56  ;;  %v6786_v51 = vmul.f32 %v4689_v5, %v2191_v6  ;;  %v6788_v27 = vmul.f32 %v4689_v5, %v2192_v24 }
 0x378   : > { %9494 = vst [vmem:[#allocation17_spill] sm:$0xff] %v6780_v3  ;;  %v2254_v10 = vmax.f32 %v2222_v39, 0.0  ;;  %v2255_v31 = vmax.f32 %v2223_v21, 0.0  ;;  %v6792_v36 = vmul.f32 %v4689_v5, %v2193_v44  ;;  %v6794_v42 = vmul.f32 %v4689_v5, %v2194_v45 }
 0x379   : > { %v6796_v34 = vmul.f32 %v4689_v5, %v2195_v62  ;;  %v6798_v60 = vmul.f32 %v4689_v5, %v2196_v63  ;;  %v6800_v43 = vmul.f32 %v4689_v5, %v2197_v26  ;;  %v6802_v47 = vmul.f32 %v4689_v5, %v2198_v16 }
 0x37a   : > { %v2348_v50 = vrot.slane %v2254_v10, 7  ;;  %v2349_v58 = vrot.slane %v2255_v31, 7  ;;  %v2443_v38 = vrot.slane %v2255_v31, 5  ;;  %v6804_v33 = vmul.f32 %v4689_v5, %v2199_v7 }
 0x37b   : > { %v6806_v59 = vmul.f32 %v4689_v5, %v2200_v57  ;;  %v6808_v25 = vmul.f32 %v4689_v5, %v2201_v28  ;;  %v6810_v12 = vmul.f32 %v4689_v5, %v2202_v54  ;;  %v6818_v29 = vmul.f32 %v4689_v5, %v2203_v20 }
 0x37c   : > { %v6813_v49 = vsel %vm321_vm0, %v2348_v50, %v2349_v58  ;;  %v6816_v9 = vsel %vm321_vm0, %v2349_v58, %v2443_v38  ;;  %v6820_v40 = vmul.f32 %v4689_v5, %v2204_v13  ;;  %v6824_v53 = vmul.f32 %v4689_v5, %v2205_v37 }
 0x37d   : > { %9495 = vst [vmem:[#allocation43_spill] sm:$0xff] %v6813_v49  ;;  %9496 = vst [vmem:[#allocation18_spill] sm:$0xff] %v6816_v9  ;;  %v2538_v15 = vrot.slane %v6813_v49, 1  ;;  %v2540_v52 = vrot.slane %v6816_v9, 1  ;;  %v6826_v56 = vmul.f32 %v4689_v5, %v2206_v32  ;;  %v6828_v6 = vmul.f32 %v4689_v5, %v2207_v23 }
 0x37e   : > { %v6830_v24 = vmul.f32 %v4689_v5, %v2208_v30  ;;  %v6832_v44 = vmul.f32 %v4689_v5, %v2209_v35  ;;  %v6834_v45 = vmul.f32 %v4689_v5, %v2210_v0  ;;  %v6839_v63 = vmul.f32 %v4689_v5, %v2211_v11 }
 0x37f   : > { %v6837_v62 = vsel %vm511_vm1, %v2538_v15, %v2540_v52  ;;  %v6844_v26 = vmul.f32 %v4689_v5, %v2212_v55  ;;  %v6849_v16 = vmul.f32 %v4689_v5, %v2213_v19  ;;  %v6856_v7 = vmul.f32 %v4689_v5, %v2214_v1 }
 0x380   : > { %9497 = vst [vmem:[#allocation19_spill] sm:$0xff] %v6837_v62  ;;  %2614 = vrot.lane.b32.xlu1 %v6837_v62, %s4732_s24  ;;  %v6861_v57 = vmul.f32 %v4689_v5, %v2215_v2  ;;  %v6866_v4 = vmul.f32 %v4689_v5, %v2217_v14  ;;  %v2300_v8 = vrot.slane %v2254_v10, 1  ;;  %v2252_v1 = vmax.f32 %v6782_v18, 0.0 }
 0x381   : > { %9498 = vst [vmem:[#allocation44_spill] sm:$0xff] %v6844_v26  ;;  %9499 = vst [vmem:[#allocation20_spill] sm:$0xff] %v6849_v16  ;;  %v2253_v28 = vmax.f32 %v2221_v41, 0.0  ;;  %v2256_v46 = vmax.f32 %v6784_v22, 0.0  ;;  %v2257_v48 = vmax.f32 %v6786_v51, 0.0  ;;  %v2258_v54 = vmax.f32 %v6788_v27, 0.0 }
 0x382   : > { %9500 = vst [vmem:[#allocation23_spill] sm:$0xff] %v6856_v7  ;;  %9501 = vst [vmem:[#allocation45_spill] sm:$0xff] %v6861_v57  ;;  %v6869_v55 = vsel %vm321_vm0, %v2300_v8, %v2348_v50  ;;  %v6880_v17 = vrot.slane %v2252_v1, 7  ;;  %v9136_v20 = vmax.f32 %v6792_v36, 0.0  ;;  %v9128_v13 = vmax.f32 %v6794_v42, 0.0 }
 0x383   : > { %9502 = vst [vmem:[#allocation24_spill] sm:$0xff] %v6869_v55  ;;  %v2537_v19 = vrot.slane %v6869_v55, 1  ;;  %v2352_v2 = vrot.slane %v2253_v28, 7  ;;  %v2444_v14 = vrot.slane %v2253_v28, 5  ;;  %v9134_v37 = vmax.f32 %v6796_v34, 0.0 }
 0x384   : > { %v9129_v32 = vmax.f32 %v6798_v60, 0.0  ;;  %v9130_v5 = vmax.f32 %v6800_v43, 0.0  ;;  %v9131_v35 = vmax.f32 %v6802_v47, 0.0  ;;  %v9132_v0 = vmax.f32 %v6804_v33, 0.0 }
 0x385   : > { %v6873_v61 = vsel %vm511_vm1, %v2537_v19, %v2538_v15  ;;  %v6890_v23 = vsel %vm321_vm0, %v6880_v17, %v2352_v2  ;;  %v6893_v30 = vsel %vm321_vm0, %v2352_v2, %v2444_v14  ;;  %v9133_v18 = vmax.f32 %v6806_v59, 0.0 }
 0x386   : > { %9503 = vst [vmem:[#allocation25_spill] sm:$0xff] %v6873_v61  ;;  %2612 = vrot.lane.b32.xlu0 %v6873_v61, %s4732_s24  ;;  %9504 = vst [vmem:[#allocation56_spill] sm:$0xff] %v6890_v23  ;;  %v2543_v39 = vrot.slane %v6890_v23, 1  ;;  %v2545_v21 = vrot.slane %v6893_v30, 1  ;;  %v9135_v41 = vmax.f32 %v6808_v25, 0.0  ;;  %v9137_v22 = vmax.f32 %v6810_v12, 0.0 }
 0x387   : > { %9505 = vst [vmem:[#allocation46_spill] sm:$0xff] %v6893_v30  ;;  %v9138_v51 = vmax.f32 %v6818_v29, 0.0  ;;  %v9139_v27 = vmax.f32 %v6820_v40, 0.0  ;;  %v9142_v11 = vmax.f32 %v6824_v53, 0.0  ;;  %v2301_v14 = vrot.slane %v2252_v1, 1 }
 0x388   : > { %v6907_v31 = vsel %vm511_vm1, %v2543_v39, %v2545_v21  ;;  %v2302_v21 = vrot.slane %v2256_v46, 1  ;;  %v2303_v58 = vrot.slane %v2258_v54, 1  ;;  %v2354_v50 = vrot.slane %v2256_v46, 7 }
 0x389   : > { %9506 = vst [vmem:[#allocation85_spill] sm:$0xff] %v6907_v31  ;;  %2618 = vrot.lane.b32.xlu1 %v6907_v31, %s4732_s24  ;;  %v2355_v38 = vrot.slane %v2257_v48, 7  ;;  %v2357_v10 = vrot.slane %v2258_v54, 7  ;;  %v2358_v15 = vrot.slane %v9136_v20, 7  ;;  %v2360_v52 = vrot.slane %v9128_v13, 7 }
 0x38a   : > { %v2361_v8 = vrot.slane %v9134_v37, 7  ;;  %v6928_v28 = vrot.slane %v9129_v32, 7  ;;  %v6932_v1 = vrot.slane %v9130_v5, 7  ;;  %v6936_v46 = vrot.slane %v9131_v35, 7 }
 0x38b   : > { %v6940_v54 = vrot.slane %v9132_v0, 7  ;;  %v6944_v13 = vrot.slane %v9133_v18, 7  ;;  %v6948_v32 = vrot.slane %v9135_v41, 7  ;;  %v6952_v5 = vrot.slane %v9137_v22, 7 }
 0x38c   : > { %v6956_v35 = vrot.slane %v9138_v51, 7  ;;  %v6960_v0 = vrot.slane %v9139_v27, 7  ;;  %v6964_v18 = vrot.slane %v9142_v11, 7  ;;  %v9507_v37 = vmax.f32 %v6826_v56, 0.0 }
 0x38d   : > { %v9508_v20 = vmax.f32 %v6828_v6, 0.0  ;;  %v9509_v2 = vmax.f32 %v6830_v24, 0.0  ;;  %v9510_v19 = vmax.f32 %v6832_v44, 0.0  ;;  %v9512_v62 = vmax.f32 %v6834_v45, 0.0 }
 0x38e   : > { %v6968_v41 = vrot.slane %v9507_v37, 7  ;;  %v9514_v61 = vmax.f32 %v6839_v63, 0.0  ;;  %v9515_v31 = vmax.f32 %v6844_v26, 0.0  ;;  %v9516_v30 = vmax.f32 %v6849_v16, 0.0 }
 0x38f   : > { %v6972_v22 = vrot.slane %v9508_v20, 7  ;;  %v6976_v51 = vrot.slane %v9509_v2, 7  ;;  %v6980_v27 = vrot.slane %v9510_v19, 7  ;;  %v6984_v11 = vrot.slane %v9512_v62, 7 }
 0x390   : > { %v6988_v37 = vrot.slane %v9514_v61, 7  ;;  %v6992_v20 = vrot.slane %v9515_v31, 7  ;;  %v6996_v2 = vrot.slane %v9516_v30, 7  ;;  %v9518_v23 = vmax.f32 %v6856_v7, 0.0 }
 0x391   : > { %9511 = vst [vmem:[#allocation57_spill] sm:$0xff] %v6980_v27  ;;  %9513 = vst [vmem:[#allocation86_spill] sm:$0xff] %v6984_v11  ;;  %v9519_v9 = vmax.f32 %v6861_v57, 0.0  ;;  %v2445_v55 = vrot.slane %v2257_v48, 5  ;;  %v7008_v61 = vsel %vm321_vm0, %v2301_v14, %v6880_v17  ;;  %v7012_v49 = vsel %vm321_vm0, %v2354_v50, %v2355_v38 }
 0x392   : > { %9517 = vst [vmem:[#allocation47_spill] sm:$0xff] %v6996_v2  ;;  %v7000_v19 = vrot.slane %v9518_v23, 7  ;;  %9521 = vst [vmem:[#allocation21_spill] sm:$0xff] %v7008_v61  ;;  %v2542_v31 = vrot.slane %v7008_v61, 1  ;;  %v7015_v30 = vsel %vm321_vm0, %v2357_v10, %v2358_v15  ;;  %v7018_v23 = vsel %vm321_vm0, %v2360_v52, %v2361_v8 }
 0x393   : > { %v7004_v62 = vrot.slane %v9519_v9, 7  ;;  %9522 = vst [vmem:[#allocation28_spill] sm:$0xff] %v7018_v23  ;;  %v7023_v9 = vsel %vm321_vm0, %v6928_v28, %v6932_v1  ;;  %v7028_v48 = vsel %vm321_vm0, %v6936_v46, %v6940_v54  ;;  %v7033_v17 = vsel %vm321_vm0, %v6944_v13, %v6948_v32 }
 0x394   : > { %9523 = vst [vmem:[#allocation58_spill] sm:$0xff] %v7023_v9  ;;  %v7038_v14 = vsel %vm321_vm0, %v6952_v5, %v6956_v35  ;;  %v7041_v61 = vsel %vm511_vm1, %v2542_v31, %v2543_v39  ;;  %v7046_v57 = vsel %vm321_vm0, %v6960_v0, %v6964_v18  ;;  %v7051_v7 = vsel %vm321_vm0, %v6968_v41, %v6972_v22 }
 0x395   : > { %9520 = vst [vmem:[#allocation22_spill] sm:$0xff] %v7004_v62  ;;  %9524 = vst [vmem:[#allocation87_spill] sm:$0xff] %v7041_v61  ;;  %v7056_v16 = vsel %vm321_vm0, %v6976_v51, %v6980_v27  ;;  %v9526_v26 = vmax.f32 %v6792_v36, 0.0  ;;  %2616 = vrot.lane.b32.xlu0 %v7041_v61, %s4732_s24  ;;  %v7065_v39 = vsel %vm321_vm0, %v6984_v11, %v6988_v37  ;;  %v9531_v27 = vmax.f32 %v6796_v34, 0.0 }
 0x396   : > { %9525 = vst [vmem:[#allocation29_spill] sm:$0xff] %v7056_v16  ;;  %9527 = vst [vmem:[#allocation59_spill] sm:$0xff] %v7065_v39  ;;  %v7070_v31 = vsel %vm321_vm0, %v6992_v20, %v6996_v2  ;;  %v7075_v16 = vsel %vm321_vm0, %v7000_v19, %v7004_v62  ;;  %v7078_v36 = vsel %vm321_vm0, %v2302_v21, %v2354_v50  ;;  %v2553_v34 = vrot.slane %v7015_v30, 1 }
 0x397   : > { %v2446_v3 = vrot.slane %v9526_v26, 5  ;;  %9528 = vst [vmem:[#allocation48_spill] sm:$0xff] %v7070_v31  ;;  %9529 = vst [vmem:[#allocation88_spill] sm:$0xff] %v7075_v16  ;;  %v9530_v26 = vmax.f32 %v6794_v42, 0.0  ;;  %v2447_v11 = vrot.slane %v9531_v27, 5  ;;  %v7085_v39 = vsel %vm321_vm0, %v2303_v58, %v2357_v10 }
 0x398   : > { %v7088_v2 = vsel %vm321_vm0, %v2355_v38, %v2445_v55  ;;  %v2548_v31 = vrot.slane %v7012_v49, 1  ;;  %v2547_v62 = vrot.slane %v7078_v36, 1  ;;  %v2552_v27 = vrot.slane %v7085_v39, 1 }
 0x399   : > { %v2304_v61 = vrot.slane %v9530_v26, 1  ;;  %v7093_v16 = vsel %vm321_vm0, %v2358_v15, %v2446_v3  ;;  %v2550_v50 = vrot.slane %v7088_v2, 1  ;;  %v9532_v10 = vmax.f32 %v6798_v60, 0.0 }
 0x39a   : > { %v7097_v42 = vsel %vm511_vm1, %v2547_v62, %v2548_v31  ;;  %v2555_v3 = vrot.slane %v7093_v16, 1  ;;  %v9533_v15 = vmax.f32 %v6800_v43, 0.0  ;;  %v7117_v60 = vsel %vm321_vm0, %v2361_v8, %v2447_v11 }
 0x39b   : > { %v2305_v55 = vrot.slane %v9532_v10, 1  ;;  %v7104_v58 = vsel %vm321_vm0, %v2304_v61, %v2360_v52  ;;  %v7107_v38 = vsel %vm511_vm1, %v2548_v31, %v2550_v50  ;;  %2620 = vrot.lane.b32.xlu0 %v7097_v42, %s4732_s24  ;;  %v7120_v52 = vsel %vm511_vm1, %v2552_v27, %v2553_v34 }
 0x39c   : > { %v2448_v21 = vrot.slane %v9533_v15, 5  ;;  %2622 = vrot.lane.b32.xlu1 %v7107_v38, %s4732_s24  ;;  %v2558_v62 = vrot.slane %v7018_v23, 1  ;;  %v2557_v61 = vrot.slane %v7104_v58, 1  ;;  %v9534_v31 = vmax.f32 %v6802_v47, 0.0 }
 0x39d   : > { %v7128_v43 = vsel %vm321_vm0, %v2305_v55, %v6928_v28  ;;  %v7131_v50 = vsel %vm511_vm1, %v2553_v34, %v2555_v3  ;;  %v2560_v11 = vrot.slane %v7117_v60, 1  ;;  %v9536_v8 = vmax.f32 %v6804_v33, 0.0 }
 0x39e   : > { %v2306_v26 = vrot.slane %v9534_v31, 1  ;;  %9535 = vst [vmem:[#allocation49_spill] sm:$0xff] %v7128_v43  ;;  %v7142_v47 = vsel %vm321_vm0, %v6932_v1, %v2448_v21  ;;  %v7145_v28 = vsel %vm511_vm1, %v2557_v61, %v2558_v62  ;;  %v2563_v34 = vrot.slane %v7023_v9, 1 }
 0x39f   : > { %2624 = vrot.lane.b32.xlu0 %v7120_v52, %s4732_s24  ;;  %v2449_v27 = vrot.slane %v9536_v8, 5  ;;  %v2562_v10 = vrot.slane %v7128_v43, 1  ;;  %v9537_v55 = vmax.f32 %v6806_v59, 0.0  ;;  %v7156_v15 = vsel %vm511_vm1, %v2558_v62, %v2560_v11 }
 0x3a0   : > { %2626 = vrot.lane.b32.xlu1 %v7131_v50, %s4732_s24  ;;  %v7153_v33 = vsel %vm321_vm0, %v2306_v26, %v6936_v46  ;;  %v2565_v1 = vrot.slane %v7142_v47, 1  ;;  %v9538_v21 = vmax.f32 %v6808_v25, 0.0  ;;  %v2568_v62 = vrot.slane %v7028_v48, 1 }
 0x3a1   : > { %v2307_v3 = vrot.slane %v9537_v55, 1  ;;  %v7167_v59 = vsel %vm321_vm0, %v6940_v54, %v2449_v27  ;;  %v7170_v46 = vsel %vm511_vm1, %v2562_v10, %v2563_v34  ;;  %v2567_v31 = vrot.slane %v7153_v33, 1 }
 0x3a2   : > { %v2450_v61 = vrot.slane %v9538_v21, 5  ;;  %9539 = vst [vmem:[#allocation27_spill] sm:$0xff] %v7170_v46  ;;  %v9540_v26 = vmax.f32 %v6810_v12, 0.0  ;;  %v7181_v8 = vsel %vm511_vm1, %v2563_v34, %v2565_v1  ;;  %v2570_v54 = vrot.slane %v7167_v59, 1 }
 0x3a3   : > { %2628 = vrot.lane.b32.xlu0 %v7145_v28, %s4732_s24  ;;  %v7178_v25 = vsel %vm321_vm0, %v2307_v3, %v6944_v13  ;;  %9541 = vst [vmem:[#allocation60_spill] sm:$0xff] %v7181_v8  ;;  %v9542_v27 = vmax.f32 %v6818_v29, 0.0  ;;  %v7195_v13 = vsel %vm511_vm1, %v2567_v31, %v2568_v62  ;;  %v2573_v34 = vrot.slane %v7033_v17, 1 }
 0x3a4   : > { %2630 = vrot.lane.b32.xlu1 %v7156_v15, %s4732_s24  ;;  %v2308_v11 = vrot.slane %v9540_v26, 1  ;;  %v7192_v12 = vsel %vm321_vm0, %v6948_v32, %v2450_v61  ;;  %9543 = vst [vmem:[#allocation26_spill] sm:$0xff] %v7195_v13  ;;  %v2572_v55 = vrot.slane %v7178_v25, 1  ;;  %v9544_v3 = vmax.f32 %v6820_v40, 0.0 }
 0x3a5   : > { %v2451_v10 = vrot.slane %v9542_v27, 5  ;;  %v7206_v21 = vsel %vm511_vm1, %v2568_v62, %v2570_v54  ;;  %v2575_v32 = vrot.slane %v7192_v12, 1  ;;  %v9546_v61 = vmax.f32 %v6824_v53, 0.0 }
 0x3a6   : > { %v2309_v1 = vrot.slane %v9544_v3, 1  ;;  %v7203_v29 = vsel %vm321_vm0, %v2308_v11, %v6952_v5  ;;  %9545 = vst [vmem:[#allocation89_spill] sm:$0xff] %v7206_v21  ;;  %v7220_v5 = vsel %vm511_vm1, %v2572_v55, %v2573_v34  ;;  %v2578_v62 = vrot.slane %v7038_v14, 1 }
 0x3a7   : > { %2632 = vrot.lane.b32.xlu0 %v7170_v46, %s4732_s24  ;;  %v2452_v31 = vrot.slane %v9546_v61, 5  ;;  %v7217_v40 = vsel %vm321_vm0, %v6956_v35, %v2451_v10  ;;  %9547 = vst [vmem:[#allocation32_spill] sm:$0xff] %v7220_v5  ;;  %v2577_v26 = vrot.slane %v7203_v29, 1  ;;  %v9548_v11 = vmax.f32 %v6826_v56, 0.0 }
 0x3a8   : > { %2634 = vrot.lane.b32.xlu1 %v7181_v8, %s4732_s24  ;;  %v7228_v53 = vsel %vm321_vm0, %v2309_v1, %v6960_v0  ;;  %v7231_v27 = vsel %vm511_vm1, %v2573_v34, %v2575_v32  ;;  %v2580_v35 = vrot.slane %v7217_v40, 1  ;;  %v9550_v10 = vmax.f32 %v6828_v6, 0.0 }
 0x3a9   : > { %v2310_v54 = vrot.slane %v9548_v11, 1  ;;  %9549 = vst [vmem:[#allocation61_spill] sm:$0xff] %v7231_v27  ;;  %v7242_v56 = vsel %vm321_vm0, %v6964_v18, %v2452_v31  ;;  %v9551_v0 = vmax.f32 %v6830_v24, 0.0  ;;  %v7247_v34 = vsel %vm511_vm1, %v2577_v26, %v2578_v62 }
 0x3aa   : > { %v2453_v55 = vrot.slane %v9550_v10, 5  ;;  %9552 = vst [vmem:[#allocation90_spill] sm:$0xff] %v7247_v34  ;;  %v2583_v1 = vrot.slane %v7046_v57, 1  ;;  %v2582_v32 = vrot.slane %v7228_v53, 1  ;;  %v9553_v6 = vmax.f32 %v6839_v63, 0.0 }
 0x3ab   : > { %2636 = vrot.lane.b32.xlu0 %v7195_v13, %s4732_s24  ;;  %v2311_v3 = vrot.slane %v9551_v0, 1  ;;  %v7255_v11 = vsel %vm321_vm0, %v2310_v54, %v6968_v41  ;;  %v7258_v18 = vsel %vm511_vm1, %v2578_v62, %v2580_v35  ;;  %v2585_v24 = vrot.slane %v7242_v56, 1 }
 0x3ac   : > { %2638 = vrot.lane.b32.xlu1 %v7206_v21, %s4732_s24  ;;  %v2455_v61 = vrot.slane %v9553_v6, 5  ;;  %9554 = vst [vmem:[#allocation33_spill] sm:$0xff] %v7258_v18  ;;  %v9555_v31 = vmax.f32 %v6832_v44, 0.0  ;;  %v7269_v63 = vsel %vm321_vm0, %v6972_v22, %v2453_v55  ;;  %v2283_v41 = vmax.f32 %v6866_v4, 0.0 }
 0x3ad   : > { %v7274_v62 = vsel %vm321_vm0, %v2311_v3, %v6976_v51  ;;  %v7277_v54 = vsel %vm511_vm1, %v2582_v32, %v2583_v1  ;;  %v2588_v35 = vrot.slane %v7051_v7, 1  ;;  %v2587_v44 = vrot.slane %v7255_v11, 1  ;;  %v9560_v51 = vld [vmem:[#allocation17_spill] sm:$0xff]  ;;  %v9562_v32 = vld [vmem:[#allocation44_spill] sm:$0xff] }
 0x3ae   : > { %v2454_v26 = vrot.slane %v9555_v31, 5  ;;  %9556 = vst [vmem:[#allocation50_spill] sm:$0xff] %v7274_v62  ;;  %9557 = vst [vmem:[#allocation51_spill] sm:$0xff] %v7277_v54  ;;  %v9558_v10 = vmax.f32 %v6834_v45, 0.0  ;;  %v7284_v6 = vsel %vm511_vm1, %v2583_v1, %v2585_v24  ;;  %v2590_v4 = vrot.slane %v7269_v63, 1  ;;  %v9561_v3 = vld [vmem:[#allocation57_spill] sm:$0xff] }
 0x3af   : > { %2640 = vrot.lane.b32.xlu0 %v7220_v5, %s4732_s24  ;;  %9559 = vst [vmem:[#allocation62_spill] sm:$0xff] %v7284_v6  ;;  %v2503_v22 = vsel %vm321_vm0, %v6988_v37, %v2455_v61  ;;  %v2282_v55 = vmax.f32 %v9560_v51, 0.0  ;;  %v9563_v1 = vmax.f32 %v9562_v32, 0.0  ;;  %v2394_v31 = vrot.slane %v2283_v41, 7  ;;  %v9565_v61 = vld [vmem:[#allocation59_spill] sm:$0xff]  ;;  %v9573_v51 = vld [vmem:[#allocation45_spill] sm:$0xff] }
 0x3b0   : > { %2642 = vrot.lane.b32.xlu1 %v7231_v27, %s4732_s24  ;;  %v2312_v0 = vrot.slane %v9558_v10, 1  ;;  %v7296_v45 = vsel %vm321_vm0, %v9561_v3, %v2454_v26  ;;  %v9564_v10 = vld [vmem:[#allocation29_spill] sm:$0xff]  ;;  %v7303_v37 = vsel %vm511_vm1, %v2587_v44, %v2588_v35  ;;  %v2765_v27 = vrot.slane %v2503_v22, 2  ;;  %v9568_v26 = vld [vmem:[#allocation86_spill] sm:$0xff]  ;;  %v9571_v44 = vld [vmem:[#allocation23_spill] sm:$0xff] }
 0x3b1   : > { %v2313_v24 = vrot.slane %v9563_v1, 1  ;;  %v7313_v32 = vsel %vm511_vm1, %v2588_v35, %v2590_v4  ;;  %v9572_v1 = vmax.f32 %v9571_v44, 0.0  ;;  %v9574_v8 = vmax.f32 %v9573_v51, 0.0 }
 0x3b2   : > { %v7310_v3 = vsel %vm321_vm0, %v2312_v0, %v9568_v26  ;;  %9570 = vst [vmem:[#allocation31_spill] sm:$0xff] %v7313_v32  ;;  %v2598_v4 = vrot.slane %v9565_v61, 1  ;;  %v2315_v26 = vrot.slane %v2282_v55, 1  ;;  %v2600_v51 = vrot.slane %v2503_v22, 1 }
 0x3b3   : > { %2644 = vrot.lane.b32.xlu0 %v7247_v34, %s4732_s24  ;;  %v2458_v34 = vrot.slane %v2283_v41, 5  ;;  %9569 = vst [vmem:[#allocation2_spill] sm:$0xff] %v7310_v3  ;;  %v2595_v41 = vrot.slane %v7296_v45, 1  ;;  %v2314_v13 = vrot.slane %v9572_v1, 1  ;;  %v2457_v46 = vrot.slane %v9574_v8, 5 }
 0x3b4   : > { %2646 = vrot.lane.b32.xlu1 %v7258_v18, %s4732_s24  ;;  %v2592_v18 = vrot.slane %v7274_v62, 1  ;;  %v7331_v35 = vsel %vm321_vm0, %v2313_v24, %v6992_v20  ;;  %v2597_v8 = vrot.slane %v7310_v3, 1  ;;  %v2393_v44 = vrot.slane %v2282_v55, 7  ;;  %v9580_v20 = vld [vmem:[#allocation47_spill] sm:$0xff] }
 0x3b5   : > { %9577 = vst [vmem:[#allocation63_spill] sm:$0xff] %v7331_v35  ;;  %v2506_v1 = vsel %vm321_vm0, %v2394_v31, %v2458_v34  ;;  %v7350_v22 = vsel %vm321_vm0, %v2314_v13, %v7000_v19  ;;  %v9583_v34 = vld [vmem:[#allocation48_spill] sm:$0xff]  ;;  %v7366_v13 = vsel %vm511_vm1, %v2598_v4, %v2600_v51 }
 0x3b6   : > { %v3069_v24 = vrot.slane %v2506_v1, 2  ;;  %9582 = vst [vmem:[#allocation52_spill] sm:$0xff] %v7350_v22  ;;  %v2603_v55 = vrot.slane %v9583_v34, 1  ;;  %9586 = vst [vmem:[#allocation8_spill] sm:$0xff] %v7366_v13  ;;  %v2602_v34 = vrot.slane %v7331_v35, 1 }
 0x3b7   : > { %2648 = vrot.lane.b32.xlu0 %v7277_v54, %s4732_s24  ;;  %v2593_v54 = vrot.slane %v9564_v10, 1 }
 0x3b8   : > { %2650 = vrot.lane.b32.xlu1 %v7284_v6, %s4732_s24  ;;  %v9566_v6 = vld [vmem:[#allocation20_spill] sm:$0xff] }
 0x3b9   : > { %v9567_v5 = vmax.f32 %v9566_v6, 0.0  ;;  %v7334_v6 = vsel %vm511_vm1, %v2592_v18, %v2593_v54  ;;  %v2968_v18 = vrot.slane %v2506_v1, 1 }
 0x3ba   : > { %9578 = vst [vmem:[#allocation36_spill] sm:$0xff] %v7334_v6 }
 0x3bb   : > { %v2456_v21 = vrot.slane %v9567_v5, 5  ;;  %2652 = vrot.lane.b32.xlu0 %v7303_v37, %s4732_s24  ;;  %v9575_v5 = vrot.slane %v9565_v61, 2 }
 0x3bc   : > { %2654 = vrot.lane.b32.xlu1 %v7313_v32, %s4732_s24  ;;  %v7340_v32 = vsel %vm511_vm1, %v2593_v54, %v2595_v41  ;;  %v7356_v54 = vsel %vm321_vm0, %v2315_v26, %v2393_v44  ;;  %v7359_v41 = vsel %vm321_vm0, %v2393_v44, %v2394_v31 }
 0x3bd   : > { %v7327_v0 = vsel %vm677_vm2, %v9575_v5, %v2765_v27  ;;  %9579 = vst [vmem:[#allocation91_spill] sm:$0xff] %v7340_v32  ;;  %v7346_v27 = vsel %vm321_vm0, %v9580_v20, %v2456_v21  ;;  %9584 = vst [vmem:[#allocation53_spill] sm:$0xff] %v7356_v54  ;;  %v2965_v21 = vrot.slane %v7356_v54, 1  ;;  %v3066_v5 = vrot.slane %v7356_v54, 2 }
 0x3be   : > { %9576 = vst [vmem:[#allocation30_spill] sm:$0xff] %v7327_v0  ;;  %9581 = vst [vmem:[#allocation37_spill] sm:$0xff] %v7346_v27  ;;  %v2966_v1 = vrot.slane %v7359_v41, 1  ;;  %v3067_v19 = vrot.slane %v7359_v41, 2  ;;  %v7369_v20 = vsel %vm511_vm1, %v2597_v8, %v2598_v4  ;;  %v2605_v26 = vrot.slane %v7346_v27, 1  ;;  %v9592_v4 = vld [vmem:[#allocation22_spill] sm:$0xff] }
 0x3bf   : > { %2656 = vrot.lane.b32.xlu0 %v7334_v6, %s4732_s24  ;;  %9585 = vst [vmem:[#allocation64_spill] sm:$0xff] %v7359_v41  ;;  %9587 = vst [vmem:[#allocation3_spill] sm:$0xff] %v7369_v20  ;;  %v7391_v8 = vsel %vm321_vm0, %v9592_v4, %v2457_v46  ;;  %v7394_v54 = vsel %vm511_vm1, %v2602_v34, %v2603_v55  ;;  %v9598_v34 = vld [vmem:[#allocation43_spill] sm:$0xff] }
 0x3c0   : > { %2658 = vrot.lane.b32.xlu1 %v7340_v32, %s4732_s24  ;;  %v7376_v31 = vsel %vm511_vm1, %v2965_v21, %v2966_v1  ;;  %v7379_v44 = vsel %vm677_vm2, %v3066_v5, %v3067_v19  ;;  %v7382_v41 = vsel %vm511_vm1, %v2966_v1, %v2968_v18  ;;  %v7385_v51 = vsel %vm677_vm2, %v3067_v19, %v3069_v24  ;;  %v9595_v21 = vld [vmem:[#allocation88_spill] sm:$0xff] }
 0x3c1   : > { %9588 = vst [vmem:[#allocation101_spill] sm:$0xff] %v7376_v31  ;;  %9589 = vst [vmem:[#allocation42_spill] sm:$0xff] %v7379_v44  ;;  %v2608_v31 = vrot.slane %v9595_v21, 1  ;;  %v2607_v5 = vrot.slane %v7350_v22, 1  ;;  %v7399_v18 = vsel %vm511_vm1, %v2603_v55, %v2605_v26  ;;  %v2610_v24 = vrot.slane %v7391_v8, 1  ;;  %v9599_v19 = vld [vmem:[#allocation24_spill] sm:$0xff] }
 0x3c2   : > { %9590 = vst [vmem:[#allocation35_spill] sm:$0xff] %v7382_v41  ;;  %9591 = vst [vmem:[#allocation34_spill] sm:$0xff] %v7385_v51  ;;  %v2703_v1 = vrot.slane %v9598_v34, 2  ;;  %v2702_v4 = vrot.slane %v9599_v19, 2  ;;  %v9601_v55 = vld [vmem:[#allocation18_spill] sm:$0xff] }
 0x3c3   : > { %2660 = vrot.lane.b32.xlu0 %v7369_v20, %s4732_s24  ;;  %9593 = vst [vmem:[#allocation65_spill] sm:$0xff] %v7391_v8  ;;  %9594 = vst [vmem:[#allocation7_spill] sm:$0xff] %v7394_v54  ;;  %v7407_v46 = vsel %vm511_vm1, %v2607_v5, %v2608_v31  ;;  %v7412_v51 = vsel %vm511_vm1, %v2608_v31, %v2610_v24  ;;  %v2705_v26 = vrot.slane %v9601_v55, 2  ;;  %v9602_v5 = vld [vmem:[#allocation56_spill] sm:$0xff]  ;;  %v9603_v8 = vld [vmem:[#allocation21_spill] sm:$0xff] }
 0x3c4   : > { %2662 = vrot.lane.b32.xlu1 %v7366_v13, %s4732_s24  ;;  %9596 = vst [vmem:[#allocation38_spill] sm:$0xff] %v7399_v18  ;;  %9597 = vst [vmem:[#allocation4_spill] sm:$0xff] %v7407_v46  ;;  %v7420_v44 = vsel %vm677_vm2, %v2702_v4, %v2703_v1  ;;  %v2708_v41 = vrot.slane %v9602_v5, 2  ;;  %v2707_v21 = vrot.slane %v9603_v8, 2  ;;  %v9604_v31 = vld [vmem:[#allocation46_spill] sm:$0xff]  ;;  %v2713_v4 = vrot.slane %v7012_v49, 2 }
 0x3c5   : > { %9600 = vst [vmem:[#allocation102_spill] sm:$0xff] %v7412_v51  ;;  %v7425_v22 = vsel %vm677_vm2, %v2703_v1, %v2705_v26  ;;  %v2710_v24 = vrot.slane %v9604_v31, 2  ;;  %v2715_v1 = vrot.slane %v7088_v2, 2  ;;  %v2717_v31 = vrot.slane %v7085_v39, 2 }
 0x3c6   : > { %v7433_v55 = vsel %vm677_vm2, %v2707_v21, %v2708_v41  ;;  %v2718_v21 = vrot.slane %v7015_v30, 2 }
 0x3c7   : > { %2664 = vrot.lane.b32.xlu0 %v7394_v54, %s4732_s24  ;;  %v7451_v27 = vsel %vm677_vm2, %v2713_v4, %v2715_v1  ;;  %v2728_v1 = vrot.slane %v7023_v9, 2 }
 0x3c8   : > { %2666 = vrot.lane.b32.xlu1 %v7399_v18, %s4732_s24  ;;  %v7459_v2 = vsel %vm677_vm2, %v2717_v31, %v2718_v21  ;;  %v2727_v31 = vrot.slane %v7128_v43, 2 }
 0x3cb   : > { %2668 = vrot.lane.b32.xlu0 %v7407_v46, %s4732_s24  ;;  %v7438_v46 = vsel %vm677_vm2, %v2708_v41, %v2710_v24  ;;  %v2720_v41 = vrot.slane %v7093_v16, 2  ;;  %v2722_v24 = vrot.slane %v7104_v58, 2 }
 0x3cc   : > { %2670 = vrot.lane.b32.xlu1 %v7412_v51, %s4732_s24  ;;  %v2712_v51 = vrot.slane %v7078_v36, 2 }
 0x3cd   : > { %v7464_v18 = vsel %vm677_vm2, %v2718_v21, %v2720_v41  ;;  %v2730_v21 = vrot.slane %v7142_v47, 2  ;;  %v2733_v41 = vrot.slane %v7028_v48, 2 }
 0x3ce   : > { %v7446_v26 = vsel %vm677_vm2, %v2712_v51, %v2713_v4  ;;  %v2723_v51 = vrot.slane %v7018_v23, 2  ;;  %v2725_v4 = vrot.slane %v7117_v60, 2  ;;  %v7485_v60 = vsel %vm677_vm2, %v2727_v31, %v2728_v1 }
 0x3cf   : > { %2777 = vrot.lane.b32.xlu0 %v7420_v44, %s4733_s25  ;;  %v7490_v35 = vsel %vm677_vm2, %v2728_v1, %v2730_v21  ;;  %v2737_v31 = vrot.slane %v7178_v25, 2  ;;  %v2740_v1 = vrot.slane %v7192_v12, 2  ;;  %v2743_v21 = vrot.slane %v7038_v14, 2 }
 0x3d0   : > { %2779 = vrot.lane.b32.xlu1 %v7425_v22, %s4733_s25  ;;  %v7472_v16 = vsel %vm677_vm2, %v2722_v24, %v2723_v51  ;;  %v7477_v54 = vsel %vm677_vm2, %v2723_v51, %v2725_v4  ;;  %v2732_v24 = vrot.slane %v7153_v33, 2  ;;  %v2735_v51 = vrot.slane %v7167_v59, 2 }
 0x3d1   : > { %v2738_v4 = vrot.slane %v7033_v17, 2 }
 0x3d2   : > { %v7498_v47 = vsel %vm677_vm2, %v2732_v24, %v2733_v41  ;;  %v7503_v0 = vsel %vm677_vm2, %v2733_v41, %v2735_v51  ;;  %v2742_v24 = vrot.slane %v7203_v29, 2  ;;  %v2745_v41 = vrot.slane %v7217_v40, 2 }
 0x3d3   : > { %2781 = vrot.lane.b32.xlu0 %v7433_v55, %s4733_s25  ;;  %v7511_v59 = vsel %vm677_vm2, %v2737_v31, %v2738_v4  ;;  %v7516_v13 = vsel %vm677_vm2, %v2738_v4, %v2740_v1  ;;  %v2748_v51 = vrot.slane %v7046_v57, 2  ;;  %v2747_v31 = vrot.slane %v7228_v53, 2 }
 0x3d4   : > { %2783 = vrot.lane.b32.xlu1 %v7438_v46, %s4733_s25  ;;  %v7524_v12 = vsel %vm677_vm2, %v2742_v24, %v2743_v21  ;;  %v7529_v20 = vsel %vm677_vm2, %v2743_v21, %v2745_v41  ;;  %v2750_v4 = vrot.slane %v7242_v56, 2  ;;  %v2753_v1 = vrot.slane %v7051_v7, 2 }
 0x3d5   : > { %v7537_v40 = vsel %vm677_vm2, %v2747_v31, %v2748_v51  ;;  %v2752_v24 = vrot.slane %v7255_v11, 2  ;;  %v2755_v21 = vrot.slane %v7269_v63, 2  ;;  %v2758_v41 = vrot.slane %v9564_v10, 2 }
 0x3d6   : > { %v7542_v32 = vsel %vm677_vm2, %v2748_v51, %v2750_v4  ;;  %v2757_v31 = vrot.slane %v7274_v62, 2  ;;  %v2760_v51 = vrot.slane %v7296_v45, 2  ;;  %v2762_v4 = vrot.slane %v7310_v3, 2 }
 0x3d7   : > { %2785 = vrot.lane.b32.xlu0 %v7446_v26, %s4733_s25  ;;  %v7550_v56 = vsel %vm677_vm2, %v2752_v24, %v2753_v1  ;;  %v7555_v6 = vsel %vm677_vm2, %v2753_v1, %v2755_v21  ;;  %v9607_v1 = vrot.slane %v9565_v61, 2  ;;  %v3690_v61 = vld [vmem:[%s9015_s3 + $0x8] sm:$0xff] }
 0x3d8   : > { %2787 = vrot.lane.b32.xlu1 %v7451_v27, %s4733_s25  ;;  %v7563_v63 = vsel %vm677_vm2, %v2757_v31, %v2758_v41  ;;  %v7567_v24 = vsel %vm677_vm2, %v2758_v41, %v2760_v51  ;;  %v9609_v31 = vld [vmem:[#allocation87_spill] sm:$0xff]  ;;  %v9610_v51 = vld [vmem:[#allocation85_spill] sm:$0xff] }
 0x3d9   : > { %9605 = vst [vmem:[#allocation39_spill] sm:$0xff] %v7563_v63  ;;  %9606 = vst [vmem:[#allocation54_spill] sm:$0xff] %v7567_v24  ;;  %v7576_v45 = vsel %vm677_vm2, %v2762_v4, %v9607_v1 }
 0x3da   : > { %9608 = vst [vmem:[#allocation82_spill] sm:$0xff] %v7576_v45 }
 0x3db   : > { %2789 = vrot.lane.b32.xlu0 %v7459_v2, %s4733_s25 }
 0x3dc   : > { %2791 = vrot.lane.b32.xlu1 %v7464_v18, %s4733_s25 }
 0x3df   : > { %2793 = vrot.lane.b32.xlu0 %v7472_v16, %s4733_s25 }
 0x3e0   : > { %2795 = vrot.lane.b32.xlu1 %v7477_v54, %s4733_s25 }
 0x3e3   : > { %2797 = vrot.lane.b32.xlu0 %v7485_v60, %s4733_s25 }
 0x3e4   : > { %2799 = vrot.lane.b32.xlu1 %v7490_v35, %s4733_s25 }
 0x3e7   : > { %2801 = vrot.lane.b32.xlu0 %v7498_v47, %s4733_s25 }
 0x3e8   : > { %2803 = vrot.lane.b32.xlu1 %v7503_v0, %s4733_s25 }
 0x3eb   : > { %2805 = vrot.lane.b32.xlu0 %v7511_v59, %s4733_s25 }
 0x3ec   : > { %2807 = vrot.lane.b32.xlu1 %v7516_v13, %s4733_s25 }
 0x3ef   : > { %2809 = vrot.lane.b32.xlu0 %v7524_v12, %s4733_s25 }
 0x3f0   : > { %2811 = vrot.lane.b32.xlu1 %v7529_v20, %s4733_s25 }
 0x3f2   : > { %v7584_v41 = vpop.permute.xlu1 %2614 }
 0x3f3   : > { %2813 = vrot.lane.b32.xlu0 %v7537_v40, %s4733_s25 }
 0x3f4   : > { %2815 = vrot.lane.b32.xlu1 %v7542_v32, %s4733_s25 }
 0x3f7   : > { %2817 = vrot.lane.b32.xlu0 %v7550_v56, %s4733_s25 }
 0x3f8   : > { %2819 = vrot.lane.b32.xlu1 %v7555_v6, %s4733_s25  ;;  %v7582_v21 = vpop.permute.xlu0 %2612 }
 0x3fb   : > { %2821 = vrot.lane.b32.xlu0 %v7563_v63, %s4733_s25  ;;  %v7596_v1 = vpop.permute.xlu1 %2618  ;;  %v9614_v63 = vld [vmem:[#allocation19_spill] sm:$0xff] }
 0x3fc   : > { %2823 = vrot.lane.b32.xlu1 %v7567_v24, %s4733_s25 }
 0x3ff   : > { %2825 = vrot.lane.b32.xlu0 %v7576_v45, %s4733_s25  ;;  %v3689_v45 = vld [vmem:[%s9015_s3] sm:$0xff] }
 0x400   : > { %2868 = vrot.lane.b32.xlu1 %v9603_v8, %s4734_s26  ;;  %v4664_v3 = vpack.c.bf16 %v3690_v61, %v3689_v45 }
 0x402   : > { %4665 = vmatprep.subr.bf16.mxu1 %v4664_v3 }
 0x403   : > { %2870 = vrot.lane.b32.xlu0 %v9602_v5, %s4734_s26  ;;  %4667 = vmatpush3.bf16.msra.mxu1 %v4664_v3  ;;  %v3693_v3 = vld [vmem:[%s9015_s3 + $0x20] sm:$0xf] }
 0x404   : > { %2970 = vrot.lane.b32.xlu1 %v9609_v31, %s4735_s27  ;;  %v3692_v31 = vld [vmem:[%s9015_s3 + $0x18] sm:$0xff] }
 0x407   : > { %2972 = vrot.lane.b32.xlu0 %v9610_v51, %s4735_s27  ;;  %v7592_v4 = vpop.permute.xlu0 %2616 }
 0x408   : > { %3071 = vrot.lane.b32.xlu1 %v7433_v55, %s4736_s11  ;;  %v3691_v55 = vld [vmem:[%s9015_s3 + $0x10] sm:$0xff] }
 0x409   : > { %v4668_v24 = vpack.c.bf16 %v3692_v31, %v3691_v55  ;;  %v9611_v55 = vld [vmem:[#allocation25_spill] sm:$0xff] }
 0x40b   : > { %3073 = vrot.lane.b32.xlu0 %v7438_v46, %s4736_s11  ;;  %4669 = vmatprep.subr.bf16.mxu1 %v4668_v24 }
 0x40c   : > { %3167 = vrot.lane.b32.xlu1 %v9599_v19, %s4737_s14  ;;  %4671 = vmatpush3.bf16.msra.mxu1 %v4668_v24 }
 0x40d   : > { %v7614_v51 = vpop.permute.xlu0 %2620  ;;  %4606 = vmatprep.subr.msk.mxu1 %vm1782_vm3, %v3693_v3 }
 0x40e   : > { %v7616_v61 = vpop.permute.xlu1 %2622 }
 0x40f   : > { %2872 = vrot.lane.b32.xlu0 %v9599_v19, %s4734_s26 }
 0x410   : > { %3169 = vrot.lane.b32.xlu1 %v9598_v34, %s4737_s14  ;;  %4607 = vmatpush3.msk.msra.mxu1 %vm1782_vm3, %v3693_v3 }
 0x411   : > { %v7625_v46 = vpop.permute.xlu0 %2624 }
 0x412   : > { %v7628_v45 = vpop.permute.xlu1 %2626 }
 0x413   : > { %3257 = vrot.lane.b32.xlu0 %v9611_v55, %s4738_s15 }
 0x414   : > { %2874 = vrot.lane.b32.xlu1 %v9598_v34, %s4734_s26 }
 0x415   : > { %v7635_v31 = vpop.permute.xlu0 %2628 }
 0x416   : > { %9612 = vst [vmem:[#allocation55_spill] sm:$0xff] %v7635_v31  ;;  %v7637_v24 = vpop.permute.xlu1 %2630 }
 0x417   : > { %9613 = vst [vmem:[#allocation66_spill] sm:$0xff] %v7637_v24  ;;  %2974 = vrot.lane.b32.xlu0 %v9611_v55, %s4735_s27 }
 0x418   : > { %3259 = vrot.lane.b32.xlu1 %v9614_v63, %s4738_s15 }
 0x419   : > { %v7643_v10 = vpop.permute.xlu0 %2632 }
 0x41a   : > { %9615 = vst [vmem:[#allocation12_spill] sm:$0xff] %v7643_v10  ;;  %v7645_v62 = vpop.permute.xlu1 %2634 }
 0x41b   : > { %9616 = vst [vmem:[#allocation83_spill] sm:$0xff] %v7645_v62  ;;  %3347 = vrot.lane.b32.xlu0 %v7420_v44, %s4739_s16 }
 0x41c   : > { %2976 = vrot.lane.b32.xlu1 %v9614_v63, %s4735_s27 }
 0x41d   : > { %v7651_v3 = vpop.permute.xlu0 %2636 }
 0x41e   : > { %9617 = vst [vmem:[#allocation84_spill] sm:$0xff] %v7651_v3  ;;  %v7653_v31 = vpop.permute.xlu1 %2638 }
 0x41f   : > { %9618 = vst [vmem:[#allocation5_spill] sm:$0xff] %v7653_v31  ;;  %3075 = vrot.lane.b32.xlu0 %v7420_v44, %s4736_s11 }
 0x420   : > { %3349 = vrot.lane.b32.xlu1 %v7425_v22, %s4739_s16 }
 0x421   : > { %v7659_v55 = vpop.permute.xlu0 %2640 }
 0x422   : > { %9619 = vst [vmem:[#allocation103_spill] sm:$0xff] %v7659_v55  ;;  %v7661_v10 = vpop.permute.xlu1 %2642 }
 0x423   : > { %9620 = vst [vmem:[#allocation67_spill] sm:$0xff] %v7661_v10  ;;  %3077 = vrot.lane.b32.xlu0 %v7425_v22, %s4736_s11 }
 0x424   : > { %3171 = vrot.lane.b32.xlu1 %v7078_v36, %s4737_s14 }
 0x425   : > { %v7667_v63 = vpop.permute.xlu0 %2644 }
 0x426   : > { %9621 = vst [vmem:[#allocation11_spill] sm:$0xff] %v7667_v63  ;;  %v7669_v3 = vpop.permute.xlu1 %2646 }
 0x427   : > { %9622 = vst [vmem:[#allocation6_spill] sm:$0xff] %v7669_v3  ;;  %2876 = vrot.lane.b32.xlu0 %v7078_v36, %s4734_s26 }
 0x428   : > { %3173 = vrot.lane.b32.xlu1 %v7012_v49, %s4737_s14 }
 0x429   : > { %v7675_v44 = vpop.permute.xlu0 %2648 }
 0x42a   : > { %9623 = vst [vmem:[#allocation104_spill] sm:$0xff] %v7675_v44  ;;  %v7677_v55 = vpop.permute.xlu1 %2650 }
 0x42b   : > { %9624 = vst [vmem:[#allocation68_spill] sm:$0xff] %v7677_v55  ;;  %3261 = vrot.lane.b32.xlu0 %v7097_v42, %s4738_s15 }
 0x42c   : > { %2878 = vrot.lane.b32.xlu1 %v7012_v49, %s4734_s26 }
 0x42d   : > { %v7683_v22 = vpop.permute.xlu0 %2652 }
 0x42e   : > { %9625 = vst [vmem:[#allocation13_spill] sm:$0xff] %v7683_v22  ;;  %v7685_v63 = vpop.permute.xlu1 %2654 }
 0x42f   : > { %9626 = vst [vmem:[#allocation9_spill] sm:$0xff] %v7685_v63  ;;  %2978 = vrot.lane.b32.xlu0 %v7097_v42, %s4735_s27 }
 0x430   : > { %3263 = vrot.lane.b32.xlu1 %v7107_v38, %s4738_s15 }
 0x431   : > { %v7691_v3 = vpop.permute.xlu0 %2656 }
 0x432   : > { %9627 = vst [vmem:[#allocation105_spill] sm:$0xff] %v7691_v3  ;;  %v7693_v44 = vpop.permute.xlu1 %2658 }
 0x433   : > { %9628 = vst [vmem:[#allocation69_spill] sm:$0xff] %v7693_v44  ;;  %3351 = vrot.lane.b32.xlu0 %v7446_v26, %s4739_s16 }
 0x434   : > { %2980 = vrot.lane.b32.xlu1 %v7107_v38, %s4735_s27 }
 0x435   : > { %v7699_v55 = vpop.permute.xlu0 %2660 }
 0x436   : > { %9629 = vst [vmem:[#allocation10_spill] sm:$0xff] %v7699_v55  ;;  %v7701_v22 = vpop.permute.xlu1 %2662 }
 0x437   : > { %9630 = vst [vmem:[#allocation106_spill] sm:$0xff] %v7701_v22  ;;  %3079 = vrot.lane.b32.xlu0 %v7446_v26, %s4736_s11 }
 0x438   : > { %3353 = vrot.lane.b32.xlu1 %v7451_v27, %s4739_s16 }
 0x439   : > { %v7707_v42 = vpop.permute.xlu0 %2664 }
 0x43a   : > { %9631 = vst [vmem:[#allocation70_spill] sm:$0xff] %v7707_v42  ;;  %v7709_v3 = vpop.permute.xlu1 %2666 }
 0x43b   : > { %9632 = vst [vmem:[#allocation14_spill] sm:$0xff] %v7709_v3  ;;  %3081 = vrot.lane.b32.xlu0 %v7451_v27, %s4736_s11 }
 0x43c   : > { %3175 = vrot.lane.b32.xlu1 %v7085_v39, %s4737_s14 }
 0x43d   : > { %v7715_v38 = vpop.permute.xlu0 %2668 }
 0x43e   : > { %9633 = vst [vmem:[#allocation107_spill] sm:$0xff] %v7715_v38  ;;  %v7717_v55 = vpop.permute.xlu1 %2670 }
 0x43f   : > { %9634 = vst [vmem:[#allocation71_spill] sm:$0xff] %v7717_v55  ;;  %2880 = vrot.lane.b32.xlu0 %v7085_v39, %s4734_s26 }
 0x440   : > { %3177 = vrot.lane.b32.xlu1 %v7015_v30, %s4737_s14 }
 0x441   : > { %v7723_v26 = vpop.permute.xlu0 %2777 }
 0x442   : > { %v7725_v42 = vpop.permute.xlu1 %2779 }
 0x443   : > { %3265 = vrot.lane.b32.xlu0 %v7120_v52, %s4738_s15 }
 0x444   : > { %2882 = vrot.lane.b32.xlu1 %v7015_v30, %s4734_s26 }
 0x445   : > { %v7731_v27 = vpop.permute.xlu0 %2781 }
 0x446   : > { %v7733_v38 = vpop.permute.xlu1 %2783 }
 0x447   : > { %2982 = vrot.lane.b32.xlu0 %v7120_v52, %s4735_s27 }
 0x448   : > { %3267 = vrot.lane.b32.xlu1 %v7131_v50, %s4738_s15 }
 0x449   : > { %v7739_v55 = vpop.permute.xlu0 %2785 }
 0x44a   : > { %v7741_v3 = vpop.permute.xlu1 %2787 }
 0x44b   : > { %3355 = vrot.lane.b32.xlu0 %v7459_v2, %s4739_s16 }
 0x44c   : > { %2984 = vrot.lane.b32.xlu1 %v7131_v50, %s4735_s27 }
 0x44d   : > { %v7747_v22 = vpop.permute.xlu0 %2789 }
 0x44e   : > { %v7749_v44 = vpop.permute.xlu1 %2791 }
 0x44f   : > { %3083 = vrot.lane.b32.xlu0 %v7459_v2, %s4736_s11 }
 0x450   : > { %3357 = vrot.lane.b32.xlu1 %v7464_v18, %s4739_s16 }
 0x451   : > { %v7755_v52 = vpop.permute.xlu0 %2793 }
 0x452   : > { %9635 = vst [vmem:[#allocation15_spill] sm:$0xff] %v7755_v52  ;;  %v7757_v63 = vpop.permute.xlu1 %2795 }
 0x453   : > { %9636 = vst [vmem:[#allocation108_spill] sm:$0xff] %v7757_v63  ;;  %3085 = vrot.lane.b32.xlu0 %v7464_v18, %s4736_s11 }
 0x454   : > { %3179 = vrot.lane.b32.xlu1 %v7104_v58, %s4737_s14 }
 0x455   : > { %v7763_v50 = vpop.permute.xlu0 %2797 }
 0x456   : > { %9637 = vst [vmem:[#allocation72_spill] sm:$0xff] %v7763_v50  ;;  %v7765_v10 = vpop.permute.xlu1 %2799 }
 0x457   : > { %9638 = vst [vmem:[#allocation16_spill] sm:$0xff] %v7765_v10  ;;  %2884 = vrot.lane.b32.xlu0 %v7104_v58, %s4734_s26 }
 0x458   : > { %3181 = vrot.lane.b32.xlu1 %v7018_v23, %s4737_s14 }
 0x459   : > { %v7771_v2 = vpop.permute.xlu0 %2801 }
 0x45a   : > { %9639 = vst [vmem:[#allocation40_spill] sm:$0xff] %v7771_v2  ;;  %v7773_v31 = vpop.permute.xlu1 %2803 }
 0x45b   : > { %9640 = vst [vmem:[#allocation73_spill] sm:$0xff] %v7773_v31  ;;  %3269 = vrot.lane.b32.xlu0 %v7145_v28, %s4738_s15 }
 0x45c   : > { %2886 = vrot.lane.b32.xlu1 %v7018_v23, %s4734_s26 }
 0x45d   : > { %v7779_v18 = vpop.permute.xlu0 %2805 }
 0x45e   : > { %9641 = vst [vmem:[#allocation92_spill] sm:$0xff] %v7779_v18  ;;  %v7781_v62 = vpop.permute.xlu1 %2807 }
 0x45f   : > { %9642 = vst [vmem:[#allocation109_spill] sm:$0xff] %v7781_v62  ;;  %2986 = vrot.lane.b32.xlu0 %v7145_v28, %s4735_s27 }
 0x460   : > { %3271 = vrot.lane.b32.xlu1 %v7156_v15, %s4738_s15 }
 0x461   : > { %v7787_v10 = vpop.permute.xlu0 %2809 }
 0x462   : > { %9643 = vst [vmem:[#allocation74_spill] sm:$0xff] %v7787_v10  ;;  %v7789_v2 = vpop.permute.xlu1 %2811 }
 0x463   : > { %9644 = vst [vmem:[#allocation93_spill] sm:$0xff] %v7789_v2  ;;  %3359 = vrot.lane.b32.xlu0 %v7472_v16, %s4739_s16 }
 0x464   : > { %2988 = vrot.lane.b32.xlu1 %v7156_v15, %s4735_s27 }
 0x465   : > { %v7795_v31 = vpop.permute.xlu0 %2813 }
 0x466   : > { %9645 = vst [vmem:[#allocation110_spill] sm:$0xff] %v7795_v31  ;;  %v7797_v18 = vpop.permute.xlu1 %2815 }
 0x467   : > { %9646 = vst [vmem:[#allocation75_spill] sm:$0xff] %v7797_v18  ;;  %3087 = vrot.lane.b32.xlu0 %v7472_v16, %s4736_s11 }
 0x468   : > { %3361 = vrot.lane.b32.xlu1 %v7477_v54, %s4739_s16 }
 0x469   : > { %v7803_v28 = vpop.permute.xlu0 %2817 }
 0x46a   : > { %9647 = vst [vmem:[#allocation94_spill] sm:$0xff] %v7803_v28  ;;  %v7805_v10 = vpop.permute.xlu1 %2819 }
 0x46b   : > { %9648 = vst [vmem:[#allocation111_spill] sm:$0xff] %v7805_v10  ;;  %3089 = vrot.lane.b32.xlu0 %v7477_v54, %s4736_s11  ;;  %v9652_v10 = vld [vmem:[#allocation27_spill] sm:$0xff] }
 0x46c   : > { %3183 = vrot.lane.b32.xlu1 %v7128_v43, %s4737_s14 }
 0x46d   : > { %v7811_v15 = vpop.permute.xlu0 %2821 }
 0x46e   : > { %9649 = vst [vmem:[#allocation76_spill] sm:$0xff] %v7811_v15  ;;  %v7813_v31 = vpop.permute.xlu1 %2823 }
 0x46f   : > { %9650 = vst [vmem:[#allocation95_spill] sm:$0xff] %v7813_v31  ;;  %2888 = vrot.lane.b32.xlu0 %v7128_v43, %s4734_s26  ;;  %v9653_v31 = vld [vmem:[#allocation60_spill] sm:$0xff] }
 0x470   : > { %3185 = vrot.lane.b32.xlu1 %v7023_v9, %s4737_s14 }
 0x471   : > { %v7819_v16 = vpop.permute.xlu0 %2825 }
 0x472   : > { %9651 = vst [vmem:[#allocation112_spill] sm:$0xff] %v7819_v16  ;;  %v2869_v28 = vpop.permute.xlu1 %2868 }
 0x473   : > { %3273 = vrot.lane.b32.xlu0 %v9652_v10, %s4738_s15 }
 0x474   : > { %2890 = vrot.lane.b32.xlu1 %v7023_v9, %s4734_s26 }
 0x475   : > { %v2871_v54 = vpop.permute.xlu0 %2870 }
 0x476   : > { %v2971_v18 = vpop.permute.xlu1 %2970 }
 0x477   : > { %2990 = vrot.lane.b32.xlu0 %v9652_v10, %s4735_s27 }
 0x478   : > { %3275 = vrot.lane.b32.xlu1 %v9653_v31, %s4738_s15 }
 0x479   : > { %v2973_v15 = vpop.permute.xlu0 %2972 }
 0x47a   : > { %v3072_v2 = vpop.permute.xlu1 %3071 }
 0x47b   : > { %3363 = vrot.lane.b32.xlu0 %v7485_v60, %s4739_s16 }
 0x47c   : > { %2992 = vrot.lane.b32.xlu1 %v9653_v31, %s4735_s27  ;;  %v3437_v31 = vsel %vm1413_vm4, %v9599_v19, %v7582_v21  ;;  %v9654_v19 = vld [vmem:[#allocation26_spill] sm:$0xff]  ;;  %v3438_v21 = vsel %vm1413_vm4, %v9598_v34, %v7584_v41  ;;  %v9655_v41 = vld [vmem:[#allocation89_spill] sm:$0xff] }
 0x47d   : > { %v3074_v16 = vpop.permute.xlu0 %3073 }
 0x47e   : > { %v3168_v62 = vpop.permute.xlu1 %3167 }
 0x47f   : > { %3091 = vrot.lane.b32.xlu0 %v7485_v60, %s4736_s11  ;;  %v7848_v60 = vsel %vm1444_vm5, %v3437_v31, %v7723_v26 }
 0x480   : > { %3365 = vrot.lane.b32.xlu1 %v7490_v35, %s4739_s16 }
 0x481   : > { %v2873_v10 = vpop.permute.xlu0 %2872 }
 0x482   : > { %v3170_v9 = vpop.permute.xlu1 %3169 }
 0x483   : > { %3093 = vrot.lane.b32.xlu0 %v7490_v35, %s4736_s11  ;;  %v3497_v35 = vsel %vm1475_vm6, %v7848_v60, %v2869_v28  ;;  %v7866_v28 = vsel %vm1444_vm5, %v3438_v21, %v7725_v42 }
 0x484   : > { %3187 = vrot.lane.b32.xlu1 %v7153_v33, %s4737_s14  ;;  %v3529_v23 = vsel %vm1508_vm7, %v3497_v35, %v2971_v18 }
 0x485   : > { %v3258_v50 = vpop.permute.xlu0 %3257  ;;  %v3561_v52 = vsel %vm1541_vm8, %v3529_v23, %v3072_v2  ;;  %v3498_v23 = vsel %vm1475_vm6, %v7866_v28, %v2871_v54 }
 0x486   : > { %v2875_v43 = vpop.permute.xlu1 %2874  ;;  %v3593_v26 = vsel %vm1574_vm9, %v3561_v52, %v3168_v62  ;;  %v3530_v34 = vsel %vm1508_vm7, %v3498_v23, %v2973_v15 }
 0x487   : > { %2892 = vrot.lane.b32.xlu0 %v7153_v33, %s4734_s26  ;;  %v3625_v18 = vsel %vm1607_vm10, %v3593_v26, %v3258_v50  ;;  %v3562_v62 = vsel %vm1541_vm8, %v3530_v34, %v3074_v16 }
 0x488   : > { %3189 = vrot.lane.b32.xlu1 %v7028_v48, %s4737_s14  ;;  %v3594_v42 = vsel %vm1574_vm9, %v3562_v62, %v3170_v9  ;;  %v9656_v62 = vld [vmem:[#allocation32_spill] sm:$0xff] }
 0x489   : > { %v2975_v63 = vpop.permute.xlu0 %2974 }
 0x48a   : > { %v3260_v24 = vpop.permute.xlu1 %3259 }
 0x48b   : > { %3277 = vrot.lane.b32.xlu0 %v9654_v19, %s4738_s15  ;;  %v3626_v50 = vsel %vm1607_vm10, %v3594_v42, %v3260_v24 }
 0x48c   : > { %2894 = vrot.lane.b32.xlu1 %v7028_v48, %s4734_s26 }
 0x48d   : > { %v3348_v31 = vpop.permute.xlu0 %3347 }
 0x48e   : > { %v2977_v2 = vpop.permute.xlu1 %2976  ;;  %v3657_v35 = vsel %vm1640_vm11, %v3625_v18, %v3348_v31  ;;  %v3439_v18 = vsel %vm1413_vm4, %v9603_v8, %v7592_v4  ;;  %v3440_v8 = vsel %vm1413_vm4, %v9602_v5, %v7596_v1  ;;  %v9657_v1 = vld [vmem:[#allocation61_spill] sm:$0xff] }
 0x48f   : > { %2994 = vrot.lane.b32.xlu0 %v9654_v19, %s4735_s27  ;;  %4608 = vmatprep.mubr.msk.f32.mxu1 %vm1685_vm12, %v3657_v35 }
 0x490   : > { %3279 = vrot.lane.b32.xlu1 %v9655_v41, %s4738_s15 }
 0x491   : > { %v3076_v52 = vpop.permute.xlu0 %3075 }
 0x492   : > { %v3350_v54 = vpop.permute.xlu1 %3349 }
 0x493   : > { %v3658_v21 = vsel %vm1640_vm11, %v3626_v50, %v3350_v54  ;;  %3367 = vrot.lane.b32.xlu0 %v7498_v47, %s4739_s16 }
 0x494   : > { %2996 = vrot.lane.b32.xlu1 %v9655_v41, %s4735_s27  ;;  %4609 = vmatmul.mubr.msk.f32.vlgmr.msra.gmra.mrb[0].mxu1 %vm1685_vm12, %v3658_v21 }
 0x495   : > { %v3078_v15 = vpop.permute.xlu0 %3077 }
 0x496   : > { %v3172_v16 = vpop.permute.xlu1 %3171 }
 0x497   : > { %3095 = vrot.lane.b32.xlu0 %v7498_v47, %s4736_s11  ;;  %v3469_v47 = vsel %vm1444_vm5, %v3439_v18, %v7731_v27  ;;  %v3470_v27 = vsel %vm1444_vm5, %v3440_v8, %v7733_v38 }
 0x498   : > { %3369 = vrot.lane.b32.xlu1 %v7503_v0, %s4739_s16  ;;  %v3500_v41 = vsel %vm1475_vm6, %v3470_v27, %v2875_v43 }
 0x499   : > { %v2877_v9 = vpop.permute.xlu0 %2876  ;;  %v3532_v50 = vsel %vm1508_vm7, %v3500_v41, %v2977_v2 }
 0x49a   : > { %v3174_v24 = vpop.permute.xlu1 %3173  ;;  %v3564_v5 = vsel %vm1541_vm8, %v3532_v50, %v3078_v15 }
 0x49b   : > { %3097 = vrot.lane.b32.xlu0 %v7503_v0, %s4736_s11  ;;  %v3499_v0 = vsel %vm1475_vm6, %v3469_v47, %v2873_v10  ;;  %v3596_v38 = vsel %vm1574_vm9, %v3564_v5, %v3174_v24 }
 0x49c   : > { %3191 = vrot.lane.b32.xlu1 %v7178_v25, %s4737_s14  ;;  %v3531_v23 = vsel %vm1508_vm7, %v3499_v0, %v2975_v63 }
 0x49d   : > { %v3262_v19 = vpop.permute.xlu0 %3261  ;;  %v3563_v34 = vsel %vm1541_vm8, %v3531_v23, %v3076_v52 }
 0x49e   : > { %v2879_v26 = vpop.permute.xlu1 %2878  ;;  %v3595_v4 = vsel %vm1574_vm9, %v3563_v34, %v3172_v16  ;;  %v9658_v34 = vld [vmem:[#allocation90_spill] sm:$0xff] }
 0x49f   : > { %2896 = vrot.lane.b32.xlu0 %v7178_v25, %s4734_s26  ;;  %v3627_v63 = vsel %vm1607_vm10, %v3595_v4, %v3262_v19 }
 0x4a0   : > { %3193 = vrot.lane.b32.xlu1 %v7033_v17, %s4737_s14 }
 0x4a1   : > { %v2979_v31 = vpop.permute.xlu0 %2978 }
 0x4a2   : > { %v3264_v35 = vpop.permute.xlu1 %3263 }
 0x4a3   : > { %3281 = vrot.lane.b32.xlu0 %v9656_v62, %s4738_s15  ;;  %v3628_v43 = vsel %vm1607_vm10, %v3596_v38, %v3264_v35 }
 0x4a4   : > { %2898 = vrot.lane.b32.xlu1 %v7033_v17, %s4734_s26 }
 0x4a5   : > { %v3352_v10 = vpop.permute.xlu0 %3351 }
 0x4a6   : > { %v2981_v42 = vpop.permute.xlu1 %2980  ;;  %v3659_v52 = vsel %vm1640_vm11, %v3627_v63, %v3352_v10  ;;  %v9659_v10 = vld [vmem:[#allocation33_spill] sm:$0xff] }
 0x4a7   : > { %2998 = vrot.lane.b32.xlu0 %v9656_v62, %s4735_s27  ;;  %4611 = vmatprep.mubr.msk.f32.mxu1 %vm1685_vm12, %v3659_v52 }
 0x4a8   : > { %3283 = vrot.lane.b32.xlu1 %v9657_v1, %s4738_s15 }
 0x4a9   : > { %v3080_v54 = vpop.permute.xlu0 %3079 }
 0x4aa   : > { %v3354_v21 = vpop.permute.xlu1 %3353 }
 0x4ab   : > { %v3660_v16 = vsel %vm1640_vm11, %v3628_v43, %v3354_v21  ;;  %3371 = vrot.lane.b32.xlu0 %v7511_v59, %s4739_s16  ;;  %v3441_v21 = vsel %vm1413_vm4, %v7078_v36, %v7614_v51  ;;  %v3442_v36 = vsel %vm1413_vm4, %v7012_v49, %v7616_v61  ;;  %v9661_v61 = vld [vmem:[#allocation62_spill] sm:$0xff] }
 0x4ac   : > { %3000 = vrot.lane.b32.xlu1 %v9657_v1, %s4735_s27  ;;  %4612 = vmatmul.mubr.msk.f32.gmra.mrb[2].mxu1 %vm1685_vm12, %v3660_v16 }
 0x4ad   : > { %v3082_v2 = vpop.permute.xlu0 %3081 }
 0x4ae   : > { %v3176_v15 = vpop.permute.xlu1 %3175 }
 0x4af   : > { %3099 = vrot.lane.b32.xlu0 %v7511_v59, %s4736_s11  ;;  %v3501_v59 = vsel %vm1475_vm6, %v7848_v60, %v2877_v9  ;;  %v3502_v60 = vsel %vm1475_vm6, %v7866_v28, %v2879_v26 }
 0x4b0   : > { %3373 = vrot.lane.b32.xlu1 %v7516_v13, %s4739_s16  ;;  %v3533_v23 = vsel %vm1508_vm7, %v3501_v59, %v2979_v31  ;;  %v3534_v27 = vsel %vm1508_vm7, %v3502_v60, %v2981_v42 }
 0x4b1   : > { %v2881_v24 = vpop.permute.xlu0 %2880  ;;  %v3566_v63 = vsel %vm1541_vm8, %v3534_v27, %v3082_v2 }
 0x4b2   : > { %v3178_v19 = vpop.permute.xlu1 %3177 }
 0x4b3   : > { %3101 = vrot.lane.b32.xlu0 %v7516_v13, %s4736_s11  ;;  %v3565_v13 = vsel %vm1541_vm8, %v3533_v23, %v3080_v54  ;;  %v3598_v41 = vsel %vm1574_vm9, %v3566_v63, %v3178_v19 }
 0x4b4   : > { %3195 = vrot.lane.b32.xlu1 %v7203_v29, %s4737_s14  ;;  %v3597_v62 = vsel %vm1574_vm9, %v3565_v13, %v3176_v15 }
 0x4b5   : > { %v3266_v18 = vpop.permute.xlu0 %3265 }
 0x4b6   : > { %v2883_v47 = vpop.permute.xlu1 %2882  ;;  %v3629_v8 = vsel %vm1607_vm10, %v3597_v62, %v3266_v18  ;;  %v9660_v18 = vld [vmem:[#allocation51_spill] sm:$0xff] }
 0x4b7   : > { %2900 = vrot.lane.b32.xlu0 %v7203_v29, %s4734_s26 }
 0x4b8   : > { %3197 = vrot.lane.b32.xlu1 %v7038_v14, %s4737_s14 }
 0x4b9   : > { %v2983_v0 = vpop.permute.xlu0 %2982 }
 0x4ba   : > { %v3268_v35 = vpop.permute.xlu1 %3267 }
 0x4bb   : > { %3285 = vrot.lane.b32.xlu0 %v9658_v34, %s4738_s15  ;;  %v3630_v28 = vsel %vm1607_vm10, %v3598_v41, %v3268_v35 }
 0x4bc   : > { %2902 = vrot.lane.b32.xlu1 %v7038_v14, %s4734_s26 }
 0x4bd   : > { %v3356_v4 = vpop.permute.xlu0 %3355 }
 0x4be   : > { %v2985_v9 = vpop.permute.xlu1 %2984  ;;  %v3661_v31 = vsel %vm1640_vm11, %v3629_v8, %v3356_v4 }
 0x4bf   : > { %3002 = vrot.lane.b32.xlu0 %v9658_v34, %s4735_s27  ;;  %4614 = vmatprep.mubr.msk.f32.mxu1 %vm1685_vm12, %v3661_v31 }
 0x4c0   : > { %3287 = vrot.lane.b32.xlu1 %v9659_v10, %s4738_s15 }
 0x4c1   : > { %v3084_v52 = vpop.permute.xlu0 %3083 }
 0x4c2   : > { %v3358_v26 = vpop.permute.xlu1 %3357 }
 0x4c3   : > { %v3662_v50 = vsel %vm1640_vm11, %v3630_v28, %v3358_v26  ;;  %3375 = vrot.lane.b32.xlu0 %v7524_v12, %s4739_s16 }
 0x4c4   : > { %3004 = vrot.lane.b32.xlu1 %v9659_v10, %s4735_s27  ;;  %4615 = vmatmul.mubr.msk.f32.gmra.mrb[4].mxu1 %vm1685_vm12, %v3662_v50  ;;  %v3443_v10 = vsel %vm1413_vm4, %v7085_v39, %v7625_v46  ;;  %v3444_v39 = vsel %vm1413_vm4, %v7015_v30, %v7628_v45  ;;  %v9662_v45 = vld [vmem:[#allocation31_spill] sm:$0xff] }
 0x4c5   : > { %v3086_v42 = vpop.permute.xlu0 %3085 }
 0x4c6   : > { %v3180_v5 = vpop.permute.xlu1 %3179 }
 0x4c7   : > { %3103 = vrot.lane.b32.xlu0 %v7524_v12, %s4736_s11  ;;  %v3471_v12 = vsel %vm1444_vm5, %v3441_v21, %v7739_v55  ;;  %v3472_v55 = vsel %vm1444_vm5, %v3442_v36, %v7741_v3 }
 0x4c8   : > { %3377 = vrot.lane.b32.xlu1 %v7529_v20, %s4739_s16 }
 0x4c9   : > { %v2885_v1 = vpop.permute.xlu0 %2884 }
 0x4ca   : > { %v3182_v38 = vpop.permute.xlu1 %3181 }
 0x4cb   : > { %3105 = vrot.lane.b32.xlu0 %v7529_v20, %s4736_s11  ;;  %v3503_v20 = vsel %vm1475_vm6, %v3471_v12, %v2881_v24 }
 0x4cc   : > { %3199 = vrot.lane.b32.xlu1 %v7228_v53, %s4737_s14  ;;  %v3535_v2 = vsel %vm1508_vm7, %v3503_v20, %v2983_v0  ;;  %v3504_v0 = vsel %vm1475_vm6, %v3472_v55, %v2883_v47 }
 0x4cd   : > { %v3270_v54 = vpop.permute.xlu0 %3269  ;;  %v3567_v19 = vsel %vm1541_vm8, %v3535_v2, %v3084_v52  ;;  %v3536_v13 = vsel %vm1508_vm7, %v3504_v0, %v2985_v9 }
 0x4ce   : > { %v2887_v43 = vpop.permute.xlu1 %2886  ;;  %v3599_v51 = vsel %vm1574_vm9, %v3567_v19, %v3180_v5  ;;  %v3568_v49 = vsel %vm1541_vm8, %v3536_v13, %v3086_v42  ;;  %v9663_v19 = vld [vmem:[#allocation50_spill] sm:$0xff] }
 0x4cf   : > { %2904 = vrot.lane.b32.xlu0 %v7228_v53, %s4734_s26  ;;  %v3631_v24 = vsel %vm1607_vm10, %v3599_v51, %v3270_v54  ;;  %v3600_v3 = vsel %vm1574_vm9, %v3568_v49, %v3182_v38  ;;  %v9664_v51 = vld [vmem:[#allocation55_spill] sm:$0xff]  ;;  %v9667_v49 = vld [vmem:[#allocation36_spill] sm:$0xff] }
 0x4d0   : > { %3201 = vrot.lane.b32.xlu1 %v7046_v57, %s4737_s14  ;;  %v3445_v55 = vsel %vm1413_vm4, %v7104_v58, %v9664_v51  ;;  %v9668_v58 = vld [vmem:[#allocation66_spill] sm:$0xff]  ;;  %v9680_v51 = vld [vmem:[#allocation83_spill] sm:$0xff] }
 0x4d1   : > { %v2987_v16 = vpop.permute.xlu0 %2986 }
 0x4d2   : > { %v3272_v15 = vpop.permute.xlu1 %3271 }
 0x4d3   : > { %3289 = vrot.lane.b32.xlu0 %v9660_v18, %s4738_s15  ;;  %v3632_v47 = vsel %vm1607_vm10, %v3600_v3, %v3272_v15 }
 0x4d4   : > { %2906 = vrot.lane.b32.xlu1 %v7046_v57, %s4734_s26 }
 0x4d5   : > { %v3360_v59 = vpop.permute.xlu0 %3359 }
 0x4d6   : > { %v2989_v23 = vpop.permute.xlu1 %2988  ;;  %v3663_v35 = vsel %vm1640_vm11, %v3631_v24, %v3360_v59  ;;  %v9666_v59 = vld [vmem:[#allocation29_spill] sm:$0xff] }
 0x4d7   : > { %3006 = vrot.lane.b32.xlu0 %v9660_v18, %s4735_s27  ;;  %4617 = vmatprep.mubr.msk.f32.mxu1 %vm1685_vm12, %v3663_v35 }
 0x4d8   : > { %3291 = vrot.lane.b32.xlu1 %v9661_v61, %s4738_s15 }
 0x4d9   : > { %v3088_v34 = vpop.permute.xlu0 %3087 }
 0x4da   : > { %v3362_v62 = vpop.permute.xlu1 %3361 }
 0x4db   : > { %v3664_v8 = vsel %vm1640_vm11, %v3632_v47, %v3362_v62  ;;  %3379 = vrot.lane.b32.xlu0 %v7537_v40, %s4739_s16  ;;  %v9670_v47 = vld [vmem:[#allocation108_spill] sm:$0xff] }
 0x4dc   : > { %3008 = vrot.lane.b32.xlu1 %v9661_v61, %s4735_s27  ;;  %4618 = vmatmul.mubr.msk.f32.gmra.mrb[6].mxu1 %vm1685_vm12, %v3664_v8  ;;  %v9669_v61 = vld [vmem:[#allocation28_spill] sm:$0xff] }
 0x4dd   : > { %v3090_v4 = vpop.permute.xlu0 %3089  ;;  %v3446_v3 = vsel %vm1413_vm4, %v9669_v61, %v9668_v58 }
 0x4de   : > { %v3184_v60 = vpop.permute.xlu1 %3183  ;;  %v3476_v62 = vsel %vm1444_vm5, %v3446_v3, %v9670_v47  ;;  %v9683_v3 = vld [vmem:[#allocation8_spill] sm:$0xff] }
 0x4df   : > { %3107 = vrot.lane.b32.xlu0 %v7537_v40, %s4736_s11  ;;  %v3473_v40 = vsel %vm1444_vm5, %v3443_v10, %v7747_v22  ;;  %v3474_v22 = vsel %vm1444_vm5, %v3444_v39, %v7749_v44 }
 0x4e0   : > { %3381 = vrot.lane.b32.xlu1 %v7542_v32, %s4739_s16  ;;  %v3506_v5 = vsel %vm1475_vm6, %v3474_v22, %v2887_v43  ;;  %v9673_v22 = vld [vmem:[#allocation54_spill] sm:$0xff] }
 0x4e1   : > { %v2889_v9 = vpop.permute.xlu0 %2888  ;;  %v3538_v54 = vsel %vm1508_vm7, %v3506_v5, %v2989_v23  ;;  %v9674_v5 = vld [vmem:[#allocation2_spill] sm:$0xff] }
 0x4e2   : > { %v3186_v31 = vpop.permute.xlu1 %3185  ;;  %v3570_v30 = vsel %vm1541_vm8, %v3538_v54, %v3090_v4  ;;  %v9675_v54 = vld [vmem:[#allocation12_spill] sm:$0xff] }
 0x4e3   : > { %3109 = vrot.lane.b32.xlu0 %v7542_v32, %s4736_s11  ;;  %v3505_v32 = vsel %vm1475_vm6, %v3473_v40, %v2885_v1  ;;  %v3602_v44 = vsel %vm1574_vm9, %v3570_v30, %v3186_v31  ;;  %v9671_v40 = vld [vmem:[#allocation91_spill] sm:$0xff]  ;;  %v9676_v30 = vld [vmem:[#allocation49_spill] sm:$0xff] }
 0x4e4   : > { %3203 = vrot.lane.b32.xlu1 %v7255_v11, %s4737_s14  ;;  %v3537_v52 = vsel %vm1508_vm7, %v3505_v32, %v2987_v16 }
 0x4e5   : > { %v3274_v27 = vpop.permute.xlu0 %3273  ;;  %v3569_v26 = vsel %vm1541_vm8, %v3537_v52, %v3088_v34 }
 0x4e6   : > { %v2891_v63 = vpop.permute.xlu1 %2890  ;;  %v3601_v46 = vsel %vm1574_vm9, %v3569_v26, %v3184_v60  ;;  %v9672_v26 = vld [vmem:[#allocation39_spill] sm:$0xff] }
 0x4e7   : > { %2908 = vrot.lane.b32.xlu0 %v7255_v11, %s4734_s26  ;;  %v3633_v50 = vsel %vm1607_vm10, %v3601_v46, %v3274_v27  ;;  %v3508_v60 = vsel %vm1475_vm6, %v3476_v62, %v2891_v63 }
 0x4e8   : > { %3205 = vrot.lane.b32.xlu1 %v7051_v7, %s4737_s14 }
 0x4e9   : > { %v2991_v41 = vpop.permute.xlu0 %2990 }
 0x4ea   : > { %v3276_v28 = vpop.permute.xlu1 %3275 }
 0x4eb   : > { %3293 = vrot.lane.b32.xlu0 %v7303_v37, %s4738_s15  ;;  %v3634_v43 = vsel %vm1607_vm10, %v3602_v44, %v3276_v28  ;;  %v9677_v44 = vld [vmem:[#allocation72_spill] sm:$0xff] }
 0x4ec   : > { %2910 = vrot.lane.b32.xlu1 %v7051_v7, %s4734_s26 }
 0x4ed   : > { %v3364_v42 = vpop.permute.xlu0 %3363 }
 0x4ee   : > { %v2993_v1 = vpop.permute.xlu1 %2992  ;;  %v3665_v38 = vsel %vm1640_vm11, %v3633_v50, %v3364_v42 }
 0x4ef   : > { %3010 = vrot.lane.b32.xlu0 %v7303_v37, %s4735_s27  ;;  %4620 = vmatprep.mubr.msk.f32.mxu1 %vm1685_vm12, %v3665_v38  ;;  %v3540_v27 = vsel %vm1508_vm7, %v3508_v60, %v2993_v1 }
 0x4f0   : > { %3295 = vrot.lane.b32.xlu1 %v9662_v45, %s4738_s15 }
 0x4f1   : > { %v3092_v21 = vpop.permute.xlu0 %3091 }
 0x4f2   : > { %v3366_v12 = vpop.permute.xlu1 %3365 }
 0x4f3   : > { %v3666_v20 = vsel %vm1640_vm11, %v3634_v43, %v3366_v12  ;;  %3383 = vrot.lane.b32.xlu0 %v7550_v56, %s4739_s16  ;;  %v9678_v43 = vld [vmem:[#allocation59_spill] sm:$0xff] }
 0x4f4   : > { %3012 = vrot.lane.b32.xlu1 %v9662_v45, %s4735_s27  ;;  %4621 = vmatmul.mubr.msk.f32.gmra.mrb[8].mxu1 %vm1685_vm12, %v3666_v20  ;;  %v3447_v45 = vsel %vm1413_vm4, %v9676_v30, %v9675_v54  ;;  %v9689_v54 = vld [vmem:[#allocation48_spill] sm:$0xff] }
 0x4f5   : > { %v3094_v37 = vpop.permute.xlu0 %3093 }
 0x4f6   : > { %v3188_v16 = vpop.permute.xlu1 %3187  ;;  %v3572_v10 = vsel %vm1541_vm8, %v3540_v27, %v3094_v37 }
 0x4f7   : > { %3111 = vrot.lane.b32.xlu0 %v7550_v56, %s4736_s11  ;;  %v9665_v56 = vld [vmem:[#allocation15_spill] sm:$0xff] }
 0x4f8   : > { %3385 = vrot.lane.b32.xlu1 %v7555_v6, %s4739_s16  ;;  %v3475_v24 = vsel %vm1444_vm5, %v3445_v55, %v9665_v56  ;;  %v9681_v55 = vld [vmem:[#allocation58_spill] sm:$0xff] }
 0x4f9   : > { %v2893_v2 = vpop.permute.xlu0 %2892  ;;  %v3448_v56 = vsel %vm1413_vm4, %v9681_v55, %v9680_v51  ;;  %v2768_v51 = vrot.slane %v9689_v54, 2 }
 0x4fa   : > { %v3190_v15 = vpop.permute.xlu1 %3189 }
 0x4fb   : > { %3113 = vrot.lane.b32.xlu0 %v7555_v6, %s4736_s11  ;;  %v3507_v6 = vsel %vm1475_vm6, %v3475_v24, %v2889_v9  ;;  %v3604_v32 = vsel %vm1574_vm9, %v3572_v10, %v3190_v15 }
 0x4fc   : > { %3207 = vrot.lane.b32.xlu1 %v9663_v19, %s4737_s14  ;;  %v3539_v23 = vsel %vm1508_vm7, %v3507_v6, %v2991_v41  ;;  %v9682_v6 = vld [vmem:[#allocation16_spill] sm:$0xff] }
 0x4fd   : > { %v3278_v18 = vpop.permute.xlu0 %3277  ;;  %v3571_v13 = vsel %vm1541_vm8, %v3539_v23, %v3092_v21  ;;  %v3477_v21 = vsel %vm1444_vm5, %v3447_v45, %v9677_v44  ;;  %v9691_v44 = vld [vmem:[#allocation7_spill] sm:$0xff] }
 0x4fe   : > { %v2895_v36 = vpop.permute.xlu1 %2894  ;;  %v3603_v34 = vsel %vm1574_vm9, %v3571_v13, %v3188_v16  ;;  %v3509_v12 = vsel %vm1475_vm6, %v3477_v21, %v2893_v2  ;;  %v3478_v2 = vsel %vm1444_vm5, %v3448_v56, %v9682_v6  ;;  %v9692_v21 = vld [vmem:[#allocation73_spill] sm:$0xff] }
 0x4ff   : > { %2912 = vrot.lane.b32.xlu0 %v9663_v19, %s4734_s26  ;;  %v3635_v8 = vsel %vm1607_vm10, %v3603_v34, %v3278_v18  ;;  %v9679_v18 = vld [vmem:[#allocation3_spill] sm:$0xff] }
 0x500   : > { %3209 = vrot.lane.b32.xlu1 %v9666_v59, %s4737_s14 }
 0x501   : > { %v2995_v0 = vpop.permute.xlu0 %2994 }
 0x502   : > { %v3280_v35 = vpop.permute.xlu1 %3279  ;;  %v3541_v37 = vsel %vm1508_vm7, %v3509_v12, %v2995_v0 }
 0x503   : > { %3297 = vrot.lane.b32.xlu0 %v9667_v49, %s4738_s15  ;;  %v3636_v63 = vsel %vm1607_vm10, %v3604_v32, %v3280_v35  ;;  %v3510_v35 = vsel %vm1475_vm6, %v3478_v2, %v2895_v36 }
 0x504   : > { %2914 = vrot.lane.b32.xlu1 %v9666_v59, %s4734_s26 }
 0x505   : > { %v3368_v4 = vpop.permute.xlu0 %3367 }
 0x506   : > { %v2997_v9 = vpop.permute.xlu1 %2996  ;;  %v3667_v31 = vsel %vm1640_vm11, %v3635_v8, %v3368_v4  ;;  %v9684_v4 = vld [vmem:[#allocation82_spill] sm:$0xff] }
 0x507   : > { %3014 = vrot.lane.b32.xlu0 %v9667_v49, %s4735_s27  ;;  %4623 = vmatprep.mubr.msk.f32.mxu1 %vm1685_vm12, %v3667_v31  ;;  %v3542_v58 = vsel %vm1508_vm7, %v3510_v35, %v2997_v9  ;;  %v9685_v31 = vld [vmem:[#allocation30_spill] sm:$0xff] }
 0x508   : > { %3299 = vrot.lane.b32.xlu1 %v9671_v40, %s4738_s15 }
 0x509   : > { %v3096_v41 = vpop.permute.xlu0 %3095 }
 0x50a   : > { %v3370_v52 = vpop.permute.xlu1 %3369  ;;  %v3573_v15 = vsel %vm1541_vm8, %v3541_v37, %v3096_v41 }
 0x50b   : > { %v3668_v28 = vsel %vm1640_vm11, %v3636_v63, %v3370_v52  ;;  %3387 = vrot.lane.b32.xlu0 %v9672_v26, %s4739_s16  ;;  %v9687_v63 = vld [vmem:[#allocation84_spill] sm:$0xff] }
 0x50c   : > { %3016 = vrot.lane.b32.xlu1 %v9671_v40, %s4735_s27  ;;  %4624 = vmatmul.mubr.msk.f32.gmra.mrb[10].mxu1 %vm1685_vm12, %v3668_v28  ;;  %v9686_v40 = vld [vmem:[#allocation63_spill] sm:$0xff]  ;;  %v3449_v52 = vsel %vm1413_vm4, %v7153_v33, %v9687_v63  ;;  %v9688_v28 = vld [vmem:[#allocation40_spill] sm:$0xff]  ;;  %v9690_v33 = vld [vmem:[#allocation5_spill] sm:$0xff] }
 0x50d   : > { %v3098_v39 = vpop.permute.xlu0 %3097  ;;  %v3450_v30 = vsel %vm1413_vm4, %v7028_v48, %v9690_v33  ;;  %v2767_v48 = vrot.slane %v9686_v40, 2 }
 0x50e   : > { %v3192_v46 = vpop.permute.xlu1 %3191  ;;  %v3574_v61 = vsel %vm1541_vm8, %v3542_v58, %v3098_v39 }
 0x50f   : > { %3115 = vrot.lane.b32.xlu0 %v9672_v26, %s4736_s11  ;;  %v3605_v24 = vsel %vm1574_vm9, %v3573_v15, %v3192_v46  ;;  %v3479_v26 = vsel %vm1444_vm5, %v3449_v52, %v9688_v28  ;;  %v9698_v28 = vld [vmem:[#allocation67_spill] sm:$0xff] }
 0x510   : > { %3389 = vrot.lane.b32.xlu1 %v9673_v22, %s4739_s16 }
 0x511   : > { %v2897_v50 = vpop.permute.xlu0 %2896 }
 0x512   : > { %v3194_v42 = vpop.permute.xlu1 %3193  ;;  %v3511_v39 = vsel %vm1475_vm6, %v3479_v26, %v2897_v50  ;;  %v3480_v50 = vsel %vm1444_vm5, %v3450_v30, %v9692_v21 }
 0x513   : > { %3117 = vrot.lane.b32.xlu0 %v9673_v22, %s4736_s11  ;;  %v3606_v34 = vsel %vm1574_vm9, %v3574_v61, %v3194_v42 }
 0x514   : > { %3211 = vrot.lane.b32.xlu1 %v9674_v5, %s4737_s14 }
 0x515   : > { %v3282_v1 = vpop.permute.xlu0 %3281 }
 0x516   : > { %v2899_v38 = vpop.permute.xlu1 %2898  ;;  %v3637_v0 = vsel %vm1607_vm10, %v3605_v24, %v3282_v1 }
 0x517   : > { %2916 = vrot.lane.b32.xlu0 %v9674_v5, %s4734_s26  ;;  %v3512_v37 = vsel %vm1475_vm6, %v3480_v50, %v2899_v38 }
 0x518   : > { %3213 = vrot.lane.b32.xlu1 %v9678_v43, %s4737_s14 }
 0x519   : > { %v2999_v20 = vpop.permute.xlu0 %2998 }
 0x51a   : > { %v3284_v16 = vpop.permute.xlu1 %3283  ;;  %v3543_v22 = vsel %vm1508_vm7, %v3511_v39, %v2999_v20  ;;  %v9699_v39 = vld [vmem:[#allocation109_spill] sm:$0xff] }
 0x51b   : > { %3301 = vrot.lane.b32.xlu0 %v9679_v18, %s4738_s15  ;;  %v3638_v36 = vsel %vm1607_vm10, %v3606_v34, %v3284_v16 }
 0x51c   : > { %2918 = vrot.lane.b32.xlu1 %v9678_v43, %s4734_s26 }
 0x51d   : > { %v3372_v23 = vpop.permute.xlu0 %3371 }
 0x51e   : > { %v3001_v13 = vpop.permute.xlu1 %3000  ;;  %v3669_v49 = vsel %vm1640_vm11, %v3637_v0, %v3372_v23  ;;  %v2769_v0 = vsel %vm677_vm2, %v2767_v48, %v2768_v51  ;;  %v9693_v23 = vld [vmem:[#allocation38_spill] sm:$0xff] }
 0x51f   : > { %3018 = vrot.lane.b32.xlu0 %v9679_v18, %s4735_s27  ;;  %4626 = vmatprep.mubr.msk.f32.mxu1 %vm1685_vm12, %v3669_v49  ;;  %v3544_v18 = vsel %vm1508_vm7, %v3512_v37, %v3001_v13  ;;  %v9694_v49 = vld [vmem:[#allocation37_spill] sm:$0xff] }
 0x520   : > { %3303 = vrot.lane.b32.xlu1 %v9683_v3, %s4738_s15  ;;  %v2770_v58 = vrot.slane %v9694_v49, 2 }
 0x521   : > { %v3100_v47 = vpop.permute.xlu0 %3099 }
 0x522   : > { %v3374_v62 = vpop.permute.xlu1 %3373  ;;  %v3575_v1 = vsel %vm1541_vm8, %v3543_v22, %v3100_v47  ;;  %v2771_v34 = vsel %vm677_vm2, %v2768_v51, %v2770_v58  ;;  %v9702_v51 = vld [vmem:[#allocation102_spill] sm:$0xff] }
 0x523   : > { %v3670_v8 = vsel %vm1640_vm11, %v3638_v36, %v3374_v62  ;;  %3391 = vrot.lane.b32.xlu0 %v9684_v4, %s4739_s16  ;;  %v9695_v62 = vld [vmem:[#allocation103_spill] sm:$0xff] }
 0x524   : > { %3020 = vrot.lane.b32.xlu1 %v9683_v3, %s4735_s27  ;;  %4627 = vmatmul.mubr.msk.f32.gmra.mrb[12].mxu1 %vm1685_vm12, %v3670_v8  ;;  %v3451_v8 = vsel %vm1413_vm4, %v7178_v25, %v9695_v62  ;;  %v3452_v25 = vsel %vm1413_vm4, %v7033_v17, %v9698_v28  ;;  %v9700_v17 = vld [vmem:[#allocation88_spill] sm:$0xff] }
 0x525   : > { %v3102_v60 = vpop.permute.xlu0 %3101 }
 0x526   : > { %v3196_v9 = vpop.permute.xlu1 %3195  ;;  %v3576_v55 = vsel %vm1541_vm8, %v3544_v18, %v3102_v60 }
 0x527   : > { %3119 = vrot.lane.b32.xlu0 %v9684_v4, %s4736_s11  ;;  %v3607_v45 = vsel %vm1574_vm9, %v3575_v1, %v3196_v9  ;;  %v9696_v4 = vld [vmem:[#allocation92_spill] sm:$0xff] }
 0x528   : > { %3393 = vrot.lane.b32.xlu1 %v9685_v31, %s4739_s16  ;;  %v3481_v60 = vsel %vm1444_vm5, %v3451_v8, %v9696_v4  ;;  %v9697_v9 = vld [vmem:[#allocation52_spill] sm:$0xff]  ;;  %v9706_v8 = vld [vmem:[#allocation6_spill] sm:$0xff] }
 0x529   : > { %v2901_v27 = vpop.permute.xlu0 %2900  ;;  %v2772_v37 = vrot.slane %v9697_v9, 2 }
 0x52a   : > { %v3198_v10 = vpop.permute.xlu1 %3197 }
 0x52b   : > { %3121 = vrot.lane.b32.xlu0 %v9685_v31, %s4736_s11  ;;  %v3608_v38 = vsel %vm1574_vm9, %v3576_v55, %v3198_v10 }
 0x52c   : > { %3215 = vrot.lane.b32.xlu1 %v9686_v40, %s4737_s14 }
 0x52d   : > { %v3286_v32 = vpop.permute.xlu0 %3285 }
 0x52e   : > { %v8175_v41 = vpop.permute.xlu1 %2902  ;;  %v3639_v12 = vsel %vm1607_vm10, %v3607_v45, %v3286_v32 }
 0x52f   : > { %2827 = vrot.lane.b32.xlu0 %v9685_v31, %s4733_s25  ;;  %v3513_v31 = vsel %vm1475_vm6, %v3481_v60, %v2901_v27  ;;  %v3482_v27 = vsel %vm1444_vm5, %v3452_v25, %v9699_v39  ;;  %v9707_v60 = vld [vmem:[#allocation53_spill] sm:$0xff] }
 0x530   : > { %2920 = vrot.lane.b32.xlu1 %v9686_v40, %s4734_s26 }
 0x531   : > { %v3003_v46 = vpop.permute.xlu0 %3002 }
 0x532   : > { %v3288_v42 = vpop.permute.xlu1 %3287  ;;  %v3545_v32 = vsel %vm1508_vm7, %v3513_v31, %v3003_v46  ;;  %v9708_v31 = vld [vmem:[#allocation93_spill] sm:$0xff] }
 0x533   : > { %3217 = vrot.lane.b32.xlu0 %v9689_v54, %s4737_s14  ;;  %v3640_v24 = vsel %vm1607_vm10, %v3608_v38, %v3288_v42  ;;  %v3514_v42 = vsel %vm1475_vm6, %v3482_v27, %v8175_v41 }
 0x534   : > { %3305 = vrot.lane.b32.xlu1 %v9691_v44, %s4738_s15 }
 0x535   : > { %v3376_v20 = vpop.permute.xlu0 %3375 }
 0x536   : > { %v3005_v16 = vpop.permute.xlu1 %3004  ;;  %v3671_v15 = vsel %vm1640_vm11, %v3639_v12, %v3376_v20 }
 0x537   : > { %2922 = vrot.lane.b32.xlu0 %v9689_v54, %s4734_s26  ;;  %4629 = vmatprep.mubr.msk.f32.mxu1 %vm1685_vm12, %v3671_v15  ;;  %v3546_v30 = vsel %vm1508_vm7, %v3514_v42, %v3005_v16  ;;  %v2773_v16 = vrot.slane %v9700_v17, 2 }
 0x538   : > { %3022 = vrot.lane.b32.xlu1 %v9691_v44, %s4735_s27  ;;  %v9701_v44 = vld [vmem:[#allocation4_spill] sm:$0xff] }
 0x539   : > { %v3104_v56 = vpop.permute.xlu0 %3103  ;;  %v2774_v48 = vsel %vm677_vm2, %v2772_v37, %v2773_v16  ;;  %v9713_v37 = vld [vmem:[#allocation104_spill] sm:$0xff] }
 0x53a   : > { %v3378_v6 = vpop.permute.xlu1 %3377  ;;  %v3577_v52 = vsel %vm1541_vm8, %v3545_v32, %v3104_v56  ;;  %v9703_v56 = vld [vmem:[#allocation65_spill] sm:$0xff] }
 0x53b   : > { %v3672_v2 = vsel %vm1640_vm11, %v3640_v24, %v3378_v6  ;;  %3307 = vrot.lane.b32.xlu0 %v9693_v23, %s4738_s15  ;;  %v2775_v24 = vrot.slane %v9703_v56, 2 }
 0x53c   : > { %3395 = vrot.lane.b32.xlu1 %v2769_v0, %s4739_s16  ;;  %4630 = vmatmul.mubr.msk.f32.gmra.mrb[14].mxu1 %vm1685_vm12, %v3672_v2 }
 0x53d   : > { %v3106_v35 = vpop.permute.xlu0 %3105 }
 0x53e   : > { %v3200_v13 = vpop.permute.xlu1 %3199  ;;  %v3578_v45 = vsel %vm1541_vm8, %v3546_v30, %v3106_v35 }
 0x53f   : > { %3024 = vrot.lane.b32.xlu0 %v9693_v23, %s4735_s27  ;;  %v3609_v26 = vsel %vm1574_vm9, %v3577_v52, %v3200_v13  ;;  %v9704_v23 = vld [vmem:[#allocation11_spill] sm:$0xff]  ;;  %v9705_v13 = vld [vmem:[#allocation74_spill] sm:$0xff] }
 0x540   : > { %3123 = vrot.lane.b32.xlu1 %v2769_v0, %s4736_s11  ;;  %v3453_v35 = vsel %vm1413_vm4, %v7203_v29, %v9704_v23  ;;  %v3454_v29 = vsel %vm1413_vm4, %v7038_v14, %v9706_v8 }
 0x541   : > { %v2905_v61 = vpop.permute.xlu0 %2904  ;;  %v3483_v49 = vsel %vm1444_vm5, %v3453_v35, %v9705_v13  ;;  %v9717_v35 = vld [vmem:[#allocation75_spill] sm:$0xff] }
 0x542   : > { %v3202_v3 = vpop.permute.xlu1 %3201  ;;  %v3515_v58 = vsel %vm1475_vm6, %v3483_v49, %v2905_v61  ;;  %v3484_v61 = vsel %vm1444_vm5, %v3454_v29, %v9708_v31 }
 0x543   : > { %3397 = vrot.lane.b32.xlu0 %v2771_v34, %s4739_s16  ;;  %v3610_v21 = vsel %vm1574_vm9, %v3578_v45, %v3202_v3 }
 0x544   : > { %2829 = vrot.lane.b32.xlu1 %v2769_v0, %s4733_s25  ;;  %v2776_v0 = vsel %vm677_vm2, %v2773_v16, %v2775_v24  ;;  %v3455_v16 = vsel %vm1413_vm4, %v7228_v53, %v9713_v37  ;;  %v9716_v53 = vld [vmem:[#allocation68_spill] sm:$0xff] }
 0x545   : > { %v3290_v47 = vpop.permute.xlu0 %3289 }
 0x546   : > { %v8226_v36 = vpop.permute.xlu1 %2906  ;;  %v3641_v22 = vsel %vm1607_vm10, %v3609_v26, %v3290_v47 }
 0x547   : > { %3125 = vrot.lane.b32.xlu0 %v2771_v34, %s4736_s11 }
 0x548   : > { %3219 = vrot.lane.b32.xlu1 %v9697_v9, %s4737_s14 }
 0x549   : > { %v3007_v10 = vpop.permute.xlu0 %3006 }
 0x54a   : > { %v3292_v63 = vpop.permute.xlu1 %3291 }
 0x54b   : > { %2831 = vrot.lane.b32.xlu0 %v2771_v34, %s4733_s25  ;;  %v3642_v41 = vsel %vm1607_vm10, %v3610_v21, %v3292_v63  ;;  %v3547_v34 = vsel %vm1508_vm7, %v3515_v58, %v3007_v10  ;;  %v3516_v63 = vsel %vm1475_vm6, %v3484_v61, %v8226_v36 }
 0x54c   : > { %2924 = vrot.lane.b32.xlu1 %v9697_v9, %s4734_s26 }
 0x54d   : > { %v3380_v46 = vpop.permute.xlu0 %3379 }
 0x54e   : > { %v3009_v1 = vpop.permute.xlu1 %3008  ;;  %v3673_v33 = vsel %vm1640_vm11, %v3641_v22, %v3380_v46 }
 0x54f   : > { %3221 = vrot.lane.b32.xlu0 %v9700_v17, %s4737_s14  ;;  %4632 = vmatprep.mubr.msk.f32.mxu1 %vm1685_vm12, %v3673_v33  ;;  %v3548_v25 = vsel %vm1508_vm7, %v3516_v63, %v3009_v1  ;;  %v9709_v1 = vld [vmem:[#allocation64_spill] sm:$0xff]  ;;  %v9710_v33 = vld [vmem:[#allocation101_spill] sm:$0xff] }
 0x550   : > { %3309 = vrot.lane.b32.xlu1 %v9701_v44, %s4738_s15 }
 0x551   : > { %v3108_v50 = vpop.permute.xlu0 %3107 }
 0x552   : > { %v3382_v12 = vpop.permute.xlu1 %3381  ;;  %v3579_v62 = vsel %vm1541_vm8, %v3547_v34, %v3108_v50  ;;  %v9711_v50 = vld [vmem:[#allocation35_spill] sm:$0xff] }
 0x553   : > { %v3674_v20 = vsel %vm1640_vm11, %v3642_v41, %v3382_v12  ;;  %2926 = vrot.lane.b32.xlu0 %v9700_v17, %s4734_s26  ;;  %v9712_v41 = vld [vmem:[#allocation42_spill] sm:$0xff] }
 0x554   : > { %3026 = vrot.lane.b32.xlu1 %v9701_v44, %s4735_s27  ;;  %4633 = vmatmul.mubr.msk.f32.gmra.mrb[16].mxu1 %vm1685_vm12, %v3674_v20 }
 0x555   : > { %v3110_v15 = vpop.permute.xlu0 %3109 }
 0x556   : > { %v3204_v18 = vpop.permute.xlu1 %3203  ;;  %v3580_v26 = vsel %vm1541_vm8, %v3548_v25, %v3110_v15  ;;  %v9714_v15 = vld [vmem:[#allocation110_spill] sm:$0xff]  ;;  %v9718_v25 = vld [vmem:[#allocation13_spill] sm:$0xff] }
 0x557   : > { %3311 = vrot.lane.b32.xlu0 %v9702_v51, %s4738_s15  ;;  %v3611_v4 = vsel %vm1574_vm9, %v3579_v62, %v3204_v18  ;;  %v3485_v18 = vsel %vm1444_vm5, %v3455_v16, %v9714_v15 }
 0x558   : > { %3399 = vrot.lane.b32.xlu1 %v2774_v48, %s4739_s16 }
 0x559   : > { %v2909_v55 = vpop.permute.xlu0 %2908 }
 0x55a   : > { %v3206_v38 = vpop.permute.xlu1 %3205 }
 0x55b   : > { %3028 = vrot.lane.b32.xlu0 %v9702_v51, %s4735_s27  ;;  %v3612_v36 = vsel %vm1574_vm9, %v3580_v26, %v3206_v38  ;;  %v3457_v26 = vsel %vm1413_vm4, %v7255_v11, %v9718_v25 }
 0x55c   : > { %3127 = vrot.lane.b32.xlu1 %v2774_v48, %s4736_s11 }
 0x55d   : > { %v3294_v6 = vpop.permute.xlu0 %3293 }
 0x55e   : > { %v8277_v2 = vpop.permute.xlu1 %2910  ;;  %v3643_v32 = vsel %vm1607_vm10, %v3611_v4, %v3294_v6  ;;  %v9715_v6 = vld [vmem:[#allocation34_spill] sm:$0xff] }
 0x55f   : > { %3401 = vrot.lane.b32.xlu0 %v2776_v0, %s4739_s16 }
 0x560   : > { %2833 = vrot.lane.b32.xlu1 %v2774_v48, %s4733_s25  ;;  %v3517_v48 = vsel %vm1475_vm6, %v3485_v18, %v2909_v55 }
 0x561   : > { %v3011_v3 = vpop.permute.xlu0 %3010 }
 0x562   : > { %v3296_v47 = vpop.permute.xlu1 %3295  ;;  %v3549_v38 = vsel %vm1508_vm7, %v3517_v48, %v3011_v3 }
 0x563   : > { %3129 = vrot.lane.b32.xlu0 %v2776_v0, %s4736_s11  ;;  %v3644_v22 = vsel %vm1607_vm10, %v3612_v36, %v3296_v47  ;;  %v9719_v36 = vld [vmem:[#allocation94_spill] sm:$0xff] }
 0x564   : > { %3223 = vrot.lane.b32.xlu1 %v9707_v60, %s4737_s14 }
 0x565   : > { %v3384_v10 = vpop.permute.xlu0 %3383 }
 0x566   : > { %v3013_v52 = vpop.permute.xlu1 %3012  ;;  %v3675_v28 = vsel %vm1640_vm11, %v3643_v32, %v3384_v10 }
 0x567   : > { %v8304_v14 = vpop.f32.mrb[0].mxu1  ;;  %2835 = vrot.lane.b32.xlu0 %v2776_v0, %s4733_s25  ;;  %4635 = vmatprep.mubr.msk.f32.mxu1 %vm1685_vm12, %v3675_v28  ;;  %v3456_v0 = vsel %vm1413_vm4, %v7046_v57, %v9716_v53 }
 0x568   : > { %2928 = vrot.lane.b32.xlu1 %v9707_v60, %s4734_s26  ;;  %v8311_v39 = vpop.f32.mrb[1].mxu1  ;;  %v3486_v55 = vsel %vm1444_vm5, %v3456_v0, %v9717_v35 }
 0x569   : > { %v3112_v27 = vpop.permute.xlu0 %3111  ;;  %v3518_v58 = vsel %vm1475_vm6, %v3486_v55, %v8277_v2 }
 0x56a   : > { %v3386_v46 = vpop.permute.xlu1 %3385  ;;  %v3581_v24 = vsel %vm1541_vm8, %v3549_v38, %v3112_v27  ;;  %v3550_v47 = vsel %vm1508_vm7, %v3518_v58, %v3013_v52  ;;  %v3487_v27 = vsel %vm1444_vm5, %v3457_v26, %v9719_v36  ;;  %v9723_v58 = vld [vmem:[#allocation76_spill] sm:$0xff] }
 0x56b   : > { %v3676_v42 = vsel %vm1640_vm11, %v3644_v22, %v3386_v46  ;;  %3225 = vrot.lane.b32.xlu0 %v9709_v1, %s4737_s14 }
 0x56c   : > { %3313 = vrot.lane.b32.xlu1 %v9710_v33, %s4738_s15  ;;  %4636 = vmatmul.mubr.msk.f32.gmra.mrb[18].mxu1 %vm1685_vm12, %v3676_v42 }
 0x56d   : > { %v3114_v30 = vpop.permute.xlu0 %3113 }
 0x56e   : > { %v3208_v45 = vpop.permute.xlu1 %3207  ;;  %v3582_v62 = vsel %vm1541_vm8, %v3550_v47, %v3114_v30  ;;  %v9720_v30 = vld [vmem:[#allocation9_spill] sm:$0xff] }
 0x56f   : > { %2930 = vrot.lane.b32.xlu0 %v9709_v1, %s4734_s26  ;;  %v3613_v23 = vsel %vm1574_vm9, %v3581_v24, %v3208_v45  ;;  %v3458_v45 = vsel %vm1413_vm4, %v7051_v7, %v9720_v30 }
 0x570   : > { %3030 = vrot.lane.b32.xlu1 %v9710_v33, %s4735_s27 }
 0x571   : > { %v2913_v44 = vpop.permute.xlu0 %2912 }
 0x572   : > { %v3210_v21 = vpop.permute.xlu1 %3209  ;;  %v3519_v22 = vsel %vm1475_vm6, %v3487_v27, %v2913_v44 }
 0x573   : > { %3315 = vrot.lane.b32.xlu0 %v9711_v50, %s4738_s15  ;;  %v3614_v29 = vsel %vm1574_vm9, %v3582_v62, %v3210_v21 }
 0x574   : > { %3403 = vrot.lane.b32.xlu1 %v9712_v41, %s4739_s16 }
 0x575   : > { %v3298_v12 = vpop.permute.xlu0 %3297 }
 0x576   : > { %v2915_v20 = vpop.permute.xlu1 %2914  ;;  %v3645_v13 = vsel %vm1607_vm10, %v3613_v23, %v3298_v12 }
 0x577   : > { %3032 = vrot.lane.b32.xlu0 %v9711_v50, %s4735_s27  ;;  %v9721_v50 = vld [vmem:[#allocation111_spill] sm:$0xff] }
 0x578   : > { %3131 = vrot.lane.b32.xlu1 %v9712_v41, %s4736_s11  ;;  %v3488_v11 = vsel %vm1444_vm5, %v3458_v45, %v9721_v50 }
 0x579   : > { %v3015_v51 = vpop.permute.xlu0 %3014  ;;  %v3520_v44 = vsel %vm1475_vm6, %v3488_v11, %v2915_v20 }
 0x57a   : > { %v3300_v56 = vpop.permute.xlu1 %3299  ;;  %v3551_v42 = vsel %vm1508_vm7, %v3519_v22, %v3015_v51 }
 0x57b   : > { %3405 = vrot.lane.b32.xlu0 %v9715_v6, %s4739_s16  ;;  %v3646_v60 = vsel %vm1607_vm10, %v3614_v29, %v3300_v56 }
 0x57c   : > { %3133 = vrot.lane.b32.xlu1 %v9715_v6, %s4736_s11 }
 0x57d   : > { %v3388_v49 = vpop.permute.xlu0 %3387 }
 0x57e   : > { %v3017_v3 = vpop.permute.xlu1 %3016  ;;  %v3677_v34 = vsel %vm1640_vm11, %v3645_v13, %v3388_v49  ;;  %v9722_v13 = vld [vmem:[#allocation105_spill] sm:$0xff] }
 0x57f   : > { %v8356_v57 = vpop.f32.mrb[2].mxu1  ;;  %4638 = vmatprep.mubr.msk.f32.mxu1 %vm1685_vm12, %v3677_v34  ;;  %v3552_v15 = vsel %vm1508_vm7, %v3520_v44, %v3017_v3  ;;  %v3459_v49 = vsel %vm1413_vm4, %v9663_v19, %v9722_v13  ;;  %v9726_v44 = vld [vmem:[#allocation10_spill] sm:$0xff] }
 0x580   : > { %v8360_v8 = vpop.f32.mrb[3].mxu1  ;;  %v3489_v3 = vsel %vm1444_vm5, %v3459_v49, %v9723_v58 }
 0x581   : > { %v3116_v4 = vpop.permute.xlu0 %3115 }
 0x582   : > { %v3390_v31 = vpop.permute.xlu1 %3389  ;;  %v3583_v33 = vsel %vm1541_vm8, %v3551_v42, %v3116_v4 }
 0x583   : > { %v3678_v2 = vsel %vm1640_vm11, %v3646_v60, %v3390_v31 }
 0x584   : > { %4639 = vmatmul.mubr.msk.f32.gmra.mrb[20].mxu1 %vm1685_vm12, %v3678_v2 }
 0x585   : > { %v3118_v61 = vpop.permute.xlu0 %3117 }
 0x586   : > { %v3212_v32 = vpop.permute.xlu1 %3211  ;;  %v3584_v7 = vsel %vm1541_vm8, %v3552_v15, %v3118_v61 }
 0x587   : > { %v3615_v21 = vsel %vm1574_vm9, %v3583_v33, %v3212_v32  ;;  %v9724_v32 = vld [vmem:[#allocation69_spill] sm:$0xff] }
 0x588   : > { %v3460_v19 = vsel %vm1413_vm4, %v9666_v59, %v9724_v32 }
 0x589   : > { %v2917_v10 = vpop.permute.xlu0 %2916 }
 0x58a   : > { %v3214_v63 = vpop.permute.xlu1 %3213  ;;  %v3521_v47 = vsel %vm1475_vm6, %v3489_v3, %v2917_v10  ;;  %v9725_v10 = vld [vmem:[#allocation95_spill] sm:$0xff] }
 0x58b   : > { %v3616_v51 = vsel %vm1574_vm9, %v3584_v7, %v3214_v63  ;;  %v3490_v25 = vsel %vm1444_vm5, %v3460_v19, %v9725_v10 }
 0x58d   : > { %v3302_v52 = vpop.permute.xlu0 %3301 }
 0x58e   : > { %v2919_v28 = vpop.permute.xlu1 %2918  ;;  %v3647_v41 = vsel %vm1607_vm10, %v3615_v21, %v3302_v52 }
 0x58f   : > { %v3522_v36 = vsel %vm1475_vm6, %v3490_v25, %v2919_v28 }
 0x591   : > { %v3019_v46 = vpop.permute.xlu0 %3018 }
 0x592   : > { %v3304_v1 = vpop.permute.xlu1 %3303  ;;  %v3553_v29 = vsel %vm1508_vm7, %v3521_v47, %v3019_v46 }
 0x593   : > { %v3648_v56 = vsel %vm1607_vm10, %v3616_v51, %v3304_v1 }
 0x595   : > { %v3392_v12 = vpop.permute.xlu0 %3391 }
 0x596   : > { %v3021_v37 = vpop.permute.xlu1 %3020  ;;  %v3679_v16 = vsel %vm1640_vm11, %v3647_v41, %v3392_v12 }
 0x597   : > { %v8384_v18 = vpop.f32.mrb[4].mxu1  ;;  %4641 = vmatprep.mubr.msk.f32.mxu1 %vm1685_vm12, %v3679_v16  ;;  %v3554_v22 = vsel %vm1508_vm7, %v3522_v36, %v3021_v37  ;;  %v3461_v37 = vsel %vm1413_vm4, %v9674_v5, %v9726_v44  ;;  %v9727_v16 = vld [vmem:[#allocation112_spill] sm:$0xff]  ;;  %v9729_v36 = vld [vmem:[#allocation70_spill] sm:$0xff] }
 0x598   : > { %v8388_v48 = vpop.f32.mrb[5].mxu1  ;;  %v3491_v15 = vsel %vm1444_vm5, %v3461_v37, %v9727_v16 }
 0x599   : > { %v3120_v38 = vpop.permute.xlu0 %3119 }
 0x59a   : > { %v3394_v24 = vpop.permute.xlu1 %3393  ;;  %v3585_v4 = vsel %vm1541_vm8, %v3553_v29, %v3120_v38 }
 0x59b   : > { %v3680_v20 = vsel %vm1640_vm11, %v3648_v56, %v3394_v24 }
 0x59c   : > { %4642 = vmatmul.mubr.msk.f32.gmra.mrb[22].mxu1 %vm1685_vm12, %v3680_v20 }
 0x59d   : > { %v3122_v6 = vpop.permute.xlu0 %3121 }
 0x59e   : > { %v3216_v53 = vpop.permute.xlu1 %3215  ;;  %v3586_v42 = vsel %vm1541_vm8, %v3554_v22, %v3122_v6 }
 0x59f   : > { %v3617_v60 = vsel %vm1574_vm9, %v3585_v4, %v3216_v53 }
 0x5a1   : > { %v2828_v0 = vpop.permute.xlu0 %2827 }
 0x5a2   : > { %v2921_v23 = vpop.permute.xlu1 %2920 }
 0x5a3   : > { %v3523_v51 = vsel %vm1475_vm6, %v3491_v15, %v2921_v23  ;;  %v9728_v23 = vld [vmem:[#allocation106_spill] sm:$0xff] }
 0x5a4   : > { %v3462_v13 = vsel %vm1413_vm4, %v9678_v43, %v9728_v23  ;;  %v9730_v15 = vld [vmem:[#allocation14_spill] sm:$0xff] }
 0x5a5   : > { %v3218_v35 = vpop.permute.xlu0 %3217  ;;  %v3492_v58 = vsel %vm1444_vm5, %v3462_v13, %v2828_v0 }
 0x5a6   : > { %v3306_v55 = vpop.permute.xlu1 %3305  ;;  %v3618_v59 = vsel %vm1574_vm9, %v3586_v42, %v3218_v35 }
 0x5a7   : > { %v3649_v2 = vsel %vm1607_vm10, %v3617_v60, %v3306_v55 }
 0x5a9   : > { %v2923_v34 = vpop.permute.xlu0 %2922 }
 0x5aa   : > { %v3023_v62 = vpop.permute.xlu1 %3022  ;;  %v3524_v3 = vsel %vm1475_vm6, %v3492_v58, %v2923_v34 }
 0x5ab   : > { %v3555_v56 = vsel %vm1508_vm7, %v3523_v51, %v3023_v62  ;;  %v9731_v51 = vld [vmem:[#allocation107_spill] sm:$0xff] }
 0x5ad   : > { %v3308_v31 = vpop.permute.xlu0 %3307 }
 0x5ae   : > { %v3396_v61 = vpop.permute.xlu1 %3395  ;;  %v3650_v1 = vsel %vm1607_vm10, %v3618_v59, %v3308_v31 }
 0x5af   : > { %v3681_v63 = vsel %vm1640_vm11, %v3649_v2, %v3396_v61  ;;  %v8408_v52 = vpop.f32.mrb[6].mxu1 }
 0x5b0   : > { %v8412_v26 = vpop.f32.mrb[7].mxu1  ;;  %4644 = vmatprep.mubr.msk.f32.mxu1 %vm1685_vm12, %v3681_v63 }
 0x5b1   : > { %v3025_v27 = vpop.permute.xlu0 %3024 }
 0x5b2   : > { %v3124_v46 = vpop.permute.xlu1 %3123  ;;  %v3556_v62 = vsel %vm1508_vm7, %v3524_v3, %v3025_v27  ;;  %v3463_v27 = vsel %vm1413_vm4, %v9686_v40, %v9729_v36  ;;  %v3464_v40 = vsel %vm1413_vm4, %v9689_v54, %v9730_v15 }
 0x5b3   : > { %v3587_v20 = vsel %vm1541_vm8, %v3555_v56, %v3124_v46 }
 0x5b5   : > { %v3398_v33 = vpop.permute.xlu0 %3397 }
 0x5b6   : > { %v2830_v30 = vpop.permute.xlu1 %2829  ;;  %v3682_v45 = vsel %vm1640_vm11, %v3650_v1, %v3398_v33 }
 0x5b7   : > { %4645 = vmatmul.mubr.msk.f32.gmra.mrb[24].mxu1 %vm1685_vm12, %v3682_v45  ;;  %v3493_v46 = vsel %vm1444_vm5, %v3463_v27, %v2830_v30  ;;  %v3465_v30 = vsel %vm1413_vm4, %v9697_v9, %v9731_v51 }
 0x5b9   : > { %v3126_v21 = vpop.permute.xlu0 %3125 }
 0x5ba   : > { %v8422_v50 = vpop.permute.xlu1 %3219  ;;  %v3588_v4 = vsel %vm1541_vm8, %v3556_v62, %v3126_v21 }
 0x5bb   : > { %v3619_v53 = vsel %vm1574_vm9, %v3587_v20, %v8422_v50 }
 0x5bd   : > { %v2832_v28 = vpop.permute.xlu0 %2831 }
 0x5be   : > { %v2925_v11 = vpop.permute.xlu1 %2924 }
 0x5bf   : > { %v3525_v59 = vsel %vm1475_vm6, %v3493_v46, %v2925_v11 }
 0x5c1   : > { %v8424_v41 = vpop.permute.xlu0 %3221 }
 0x5c2   : > { %v8426_v12 = vpop.permute.xlu1 %3309  ;;  %v3620_v60 = vsel %vm1574_vm9, %v3588_v4, %v8424_v41 }
 0x5c3   : > { %v3651_v5 = vsel %vm1607_vm10, %v3619_v53, %v8426_v12 }
 0x5c5   : > { %v2927_v7 = vpop.permute.xlu0 %2926 }
 0x5c6   : > { %v3027_v38 = vpop.permute.xlu1 %3026 }
 0x5c7   : > { %v8435_v24 = vpop.f32.mrb[8].mxu1  ;;  %v3557_v33 = vsel %vm1508_vm7, %v3525_v59, %v3027_v38  ;;  %v3494_v38 = vsel %vm1444_vm5, %v3464_v40, %v2832_v28 }
 0x5c8   : > { %v8438_v6 = vpop.f32.mrb[9].mxu1  ;;  %v3526_v20 = vsel %vm1475_vm6, %v3494_v38, %v2927_v7 }
 0x5c9   : > { %v8442_v35 = vpop.permute.xlu0 %3311 }
 0x5ca   : > { %v8446_v55 = vpop.permute.xlu1 %3399  ;;  %v3652_v43 = vsel %vm1607_vm10, %v3620_v60, %v8442_v35 }
 0x5cb   : > { %v3683_v49 = vsel %vm1640_vm11, %v3651_v5, %v8446_v55 }
 0x5cc   : > { %4647 = vmatprep.mubr.msk.f32.mxu1 %vm1685_vm12, %v3683_v49  ;;  %v9732_v49 = vld [vmem:[#allocation71_spill] sm:$0xff] }
 0x5cd   : > { %v3029_v47 = vpop.permute.xlu0 %3028  ;;  %v3466_v9 = vsel %vm1413_vm4, %v9700_v17, %v9732_v49 }
 0x5ce   : > { %v3128_v29 = vpop.permute.xlu1 %3127  ;;  %v3558_v23 = vsel %vm1508_vm7, %v3526_v20, %v3029_v47 }
 0x5cf   : > { %v3589_v45 = vsel %vm1541_vm8, %v3557_v33, %v3128_v29 }
 0x5d1   : > { %v3402_v31 = vpop.permute.xlu0 %3401 }
 0x5d2   : > { %v2834_v2 = vpop.permute.xlu1 %2833  ;;  %v3684_v0 = vsel %vm1640_vm11, %v3652_v43, %v3402_v31 }
 0x5d3   : > { %4648 = vmatmul.mubr.msk.f32.gmra.mrb[26].mxu1 %vm1685_vm12, %v3684_v0  ;;  %v3495_v56 = vsel %vm1444_vm5, %v3465_v30, %v2834_v2 }
 0x5d5   : > { %v3130_v61 = vpop.permute.xlu0 %3129 }
 0x5d6   : > { %v3224_v34 = vpop.permute.xlu1 %3223  ;;  %v3590_v28 = vsel %vm1541_vm8, %v3558_v23, %v3130_v61 }
 0x5d7   : > { %v3621_v21 = vsel %vm1574_vm9, %v3589_v45, %v3224_v34 }
 0x5d9   : > { %v2836_v32 = vpop.permute.xlu0 %2835 }
 0x5da   : > { %v2929_v19 = vpop.permute.xlu1 %2928  ;;  %v3496_v3 = vsel %vm1444_vm5, %v3466_v9, %v2836_v32 }
 0x5db   : > { %v3527_v53 = vsel %vm1475_vm6, %v3495_v56, %v2929_v19 }
 0x5dd   : > { %v3226_v63 = vpop.permute.xlu0 %3225 }
 0x5de   : > { %v3314_v10 = vpop.permute.xlu1 %3313  ;;  %v3622_v7 = vsel %vm1574_vm9, %v3590_v28, %v3226_v63 }
 0x5df   : > { %v8464_v25 = vpop.f32.mrb[10].mxu1  ;;  %v3653_v37 = vsel %vm1607_vm10, %v3621_v21, %v3314_v10 }
 0x5e0   : > { %v8469_v22 = vpop.f32.mrb[11].mxu1 }
 0x5e1   : > { %v2931_v42 = vpop.permute.xlu0 %2930 }
 0x5e2   : > { %v3031_v1 = vpop.permute.xlu1 %3030  ;;  %v3528_v47 = vsel %vm1475_vm6, %v3496_v3, %v2931_v42 }
 0x5e3   : > { %v3559_v54 = vsel %vm1508_vm7, %v3527_v53, %v3031_v1 }
 0x5e5   : > { %v3316_v44 = vpop.permute.xlu0 %3315 }
 0x5e6   : > { %v3404_v16 = vpop.permute.xlu1 %3403  ;;  %v3654_v29 = vsel %vm1607_vm10, %v3622_v7, %v3316_v44 }
 0x5e7   : > { %v3685_v11 = vsel %vm1640_vm11, %v3653_v37, %v3404_v16 }
 0x5e8   : > { %4650 = vmatprep.mubr.msk.f32.mxu1 %vm1685_vm12, %v3685_v11 }
 0x5e9   : > { %v3033_v5 = vpop.permute.xlu0 %3032 }
 0x5ea   : > { %v3132_v13 = vpop.permute.xlu1 %3131  ;;  %v3560_v17 = vsel %vm1508_vm7, %v3528_v47, %v3033_v5 }
 0x5eb   : > { %v3591_v58 = vsel %vm1541_vm8, %v3559_v54, %v3132_v13 }
 0x5ec   : > { %v3623_v62 = vsel %vm1574_vm9, %v3591_v58, %v8422_v50 }
 0x5ed   : > { %v3406_v4 = vpop.permute.xlu0 %3405  ;;  %v3655_v60 = vsel %vm1607_vm10, %v3623_v62, %v8426_v12 }
 0x5ee   : > { %v3134_v43 = vpop.permute.xlu1 %3133  ;;  %v3686_v2 = vsel %vm1640_vm11, %v3654_v29, %v3406_v4  ;;  %v3687_v50 = vsel %vm1640_vm11, %v3655_v60, %v8446_v55  ;;  %v8524_v55 = vld [vmem:[%s9016_s4] ss:$0 sm:$0xff] }
 0x5ef   : > { %v3592_v0 = vsel %vm1541_vm8, %v3560_v17, %v3134_v43  ;;  %4651 = vmatmul.mubr.msk.f32.gmra.mrb[28].mxu1 %vm1685_vm12, %v3686_v2  ;;  %v8556_v59 = vadd.f32 %v8356_v57, %v8524_v55  ;;  %v8562_v33 = vadd.f32 %v8524_v55, %v8388_v48  ;;  %v8573_v51 = vadd.f32 %v8384_v18, %v8524_v55 }
 0x5f0   : > { %v3624_v61 = vsel %vm1574_vm9, %v3592_v0, %v8424_v41  ;;  %4653 = vmatprep.mubr.msk.f32.mxu1 %vm1685_vm12, %v3687_v50  ;;  %v8528_v41 = vadd.f32 %v8304_v14, %v8524_v55  ;;  %v8579_v30 = vadd.f32 %v8524_v55, %v8412_v26  ;;  %v8591_v26 = vadd.f32 %v8408_v52, %v8524_v55 }
 0x5f1   : > { %v3656_v12 = vsel %vm1607_vm10, %v3624_v61, %v8442_v35  ;;  %v8532_v35 = vadd.f32 %v8524_v55, %v8311_v39  ;;  %v4097_v16 = vmul.f32 %v8556_v59, %v8556_v59  ;;  %v4098_v15 = vmul.f32 %v8562_v33, %v8562_v33 }
 0x5f2   : > { %v3688_v34 = vsel %vm1640_vm11, %v3656_v12, %v3402_v31  ;;  %v8536_v31 = vadd.f32 %v8524_v55, %v8360_v8  ;;  %v4095_v63 = vmul.f32 %v8528_v41, %v8528_v41  ;;  %v4026_v36 = vsel %vm1413_vm4, %v8528_v41, 0.0 }
 0x5f3   : > { %4654 = vmatmul.mubr.msk.f32.gmra.mrb[30].mxu1 %vm1685_vm12, %v3688_v34  ;;  %v4094_v10 = vmul.f32 %v8532_v35, %v8532_v35  ;;  %v4025_v14 = vsel %vm1413_vm4, %v8532_v35, 0.0  ;;  %v4030_v40 = vsel %vm1413_vm4, %v8556_v59, 0.0  ;;  %v4032_v48 = vsel %vm1413_vm4, %v8562_v33, 0.0 }
 0x5f4   : > { %v4096_v39 = vmul.f32 %v8536_v31, %v8536_v31  ;;  %v4127_v8 = vsel %vm1413_vm4, %v4095_v63, 0.0  ;;  %v4028_v1 = vsel %vm1413_vm4, %v8536_v31, 0.0  ;;  %v4027_v45 = vadd.f32 %v4026_v36, %v4025_v14 }
 0x5f5   : > { %v4126_v42 = vsel %vm1413_vm4, %v4094_v10, 0.0  ;;  %v4131_v38 = vsel %vm1413_vm4, %v4097_v16, 0.0  ;;  %v4133_v56 = vsel %vm1413_vm4, %v4098_v15, 0.0  ;;  %v4099_v5 = vmul.f32 %v8573_v51, %v8573_v51 }
 0x5f6   : > { %v4129_v21 = vsel %vm1413_vm4, %v4096_v39, 0.0  ;;  %v4128_v44 = vadd.f32 %v4127_v8, %v4126_v42  ;;  %v4029_v37 = vadd.f32 %v4028_v1, %v4027_v45  ;;  %v4100_v18 = vmul.f32 %v8579_v30, %v8579_v30 }
 0x5f7   : > { %v8517_v32 = vpop.f32.mrb[12].mxu1  ;;  %v4034_v54 = vsel %vm1413_vm4, %v8573_v51, 0.0  ;;  %v4036_v13 = vsel %vm1413_vm4, %v8579_v30, 0.0  ;;  %v8597_v49 = vadd.f32 %v8524_v55, %v8438_v6  ;;  %v4135_v28 = vsel %vm1413_vm4, %v4099_v5, 0.0 }
 0x5f8   : > { %v8519_v19 = vpop.f32.mrb[13].mxu1  ;;  %v4130_v57 = vadd.f32 %v4129_v21, %v4128_v44  ;;  %v4031_v11 = vadd.f32 %v4030_v40, %v4029_v37  ;;  %v4137_v58 = vsel %vm1413_vm4, %v4100_v18, 0.0  ;;  %v4101_v62 = vmul.f32 %v8591_v26, %v8591_v26 }
 0x5f9   : > { %v4102_v52 = vmul.f32 %v8597_v49, %v8597_v49  ;;  %v4038_v29 = vsel %vm1413_vm4, %v8591_v26, 0.0  ;;  %v8609_v6 = vadd.f32 %v8435_v24, %v8524_v55  ;;  %v4040_v4 = vsel %vm1413_vm4, %v8597_v49, 0.0 }
 0x5fa   : > { %v4033_v20 = vadd.f32 %v4032_v48, %v4031_v11  ;;  %v4132_v53 = vadd.f32 %v4131_v38, %v4130_v57  ;;  %v8615_v60 = vadd.f32 %v8524_v55, %v8469_v22  ;;  %v4139_v43 = vsel %vm1413_vm4, %v4101_v62, 0.0 }
 0x5fb   : > { %v4141_v2 = vsel %vm1413_vm4, %v4102_v52, 0.0  ;;  %v4103_v61 = vmul.f32 %v8609_v6, %v8609_v6  ;;  %v4042_v22 = vsel %vm1413_vm4, %v8609_v6, 0.0  ;;  %v8627_v10 = vadd.f32 %v8464_v25, %v8524_v55 }
 0x5fc   : > { %v4134_v23 = vadd.f32 %v4133_v56, %v4132_v53  ;;  %v4035_v9 = vadd.f32 %v4034_v54, %v4033_v20  ;;  %v4104_v24 = vmul.f32 %v8615_v60, %v8615_v60  ;;  %v4044_v36 = vsel %vm1413_vm4, %v8615_v60, 0.0 }
 0x5fd   : > { %v8633_v14 = vadd.f32 %v8524_v55, %v8519_v19  ;;  %v4143_v8 = vsel %vm1413_vm4, %v4103_v61, 0.0  ;;  %v4105_v21 = vmul.f32 %v8627_v10, %v8627_v10  ;;  %v4046_v37 = vsel %vm1413_vm4, %v8627_v10, 0.0 }
 0x5fe   : > { %v4037_v3 = vadd.f32 %v4036_v13, %v4035_v9  ;;  %v4136_v7 = vadd.f32 %v4135_v28, %v4134_v23  ;;  %v4145_v42 = vsel %vm1413_vm4, %v4104_v24, 0.0  ;;  %v8645_v19 = vadd.f32 %v8517_v32, %v8524_v55 }
 0x5ff   : > { %v4106_v25 = vmul.f32 %v8633_v14, %v8633_v14  ;;  %v4048_v16 = vsel %vm1413_vm4, %v8633_v14, 0.0  ;;  %v4147_v40 = vsel %vm1413_vm4, %v4105_v21, 0.0 }
 0x600   : > { %v4138_v47 = vadd.f32 %v4137_v58, %v4136_v7  ;;  %v4039_v17 = vadd.f32 %v4038_v29, %v4037_v3  ;;  %v4107_v56 = vmul.f32 %v8645_v19, %v8645_v19  ;;  %v4050_v53 = vsel %vm1413_vm4, %v8645_v19, 0.0 }
 0x601   : > { %v4149_v48 = vsel %vm1413_vm4, %v4106_v25, 0.0 }
 0x602   : > { %v4041_v0 = vadd.f32 %v4040_v4, %v4039_v17  ;;  %v4140_v50 = vadd.f32 %v4139_v43, %v4138_v47  ;;  %v4151_v54 = vsel %vm1413_vm4, %v4107_v56, 0.0 }
 0x604   : > { %v4142_v34 = vadd.f32 %v4141_v2, %v4140_v50  ;;  %v4043_v39 = vadd.f32 %v4042_v22, %v4041_v0 }
 0x606   : > { %v4045_v1 = vadd.f32 %v4044_v36, %v4043_v39  ;;  %v4144_v45 = vadd.f32 %v4143_v8, %v4142_v34 }
 0x608   : > { %v4146_v44 = vadd.f32 %v4145_v42, %v4144_v45  ;;  %v4047_v57 = vadd.f32 %v4046_v37, %v4045_v1 }
 0x60a   : > { %v4049_v11 = vadd.f32 %v4048_v16, %v4047_v57  ;;  %v4148_v38 = vadd.f32 %v4147_v40, %v4146_v44 }
 0x60c   : > { %v4150_v20 = vadd.f32 %v4149_v48, %v4148_v38  ;;  %v4051_v23 = vadd.f32 %v4050_v53, %v4049_v11 }
 0x60e   : > { %v4152_v28 = vadd.f32 %v4151_v54, %v4150_v20 }
 0x60f   : > { %v8548_v27 = vpop.f32.mrb[14].mxu1 }
 0x610   : > { %v8551_v46 = vpop.f32.mrb[15].mxu1 }
 0x611   : > { %v8651_v15 = vadd.f32 %v8524_v55, %v8551_v46  ;;  %v8663_v46 = vadd.f32 %v8548_v27, %v8524_v55 }
 0x613   : > { %v4108_v32 = vmul.f32 %v8651_v15, %v8651_v15  ;;  %v4052_v5 = vsel %vm1413_vm4, %v8651_v15, 0.0  ;;  %v4109_v58 = vmul.f32 %v8663_v46, %v8663_v46  ;;  %v4054_v7 = vsel %vm1413_vm4, %v8663_v46, 0.0 }
 0x614   : > { %v4053_v9 = vadd.f32 %v4052_v5, %v4051_v23 }
 0x615   : > { %v4153_v13 = vsel %vm1413_vm4, %v4108_v32, 0.0  ;;  %v4155_v29 = vsel %vm1413_vm4, %v4109_v58, 0.0 }
 0x616   : > { %v4154_v3 = vadd.f32 %v4153_v13, %v4152_v28  ;;  %v4055_v47 = vadd.f32 %v4054_v7, %v4053_v9 }
 0x618   : > { %v4156_v43 = vadd.f32 %v4155_v29, %v4154_v3 }
 0x627   : > { %v4634_v12 = vpop.f32.mrb[16].mxu1 }
 0x628   : > { %v3946_v63 = vpop.f32.mrb[17].mxu1  ;;  %v8679_v62 = vadd.f32 %v4634_v12, %v8524_v55 }
 0x629   : > { %v8668_v18 = vadd.f32 %v8524_v55, %v3946_v63 }
 0x62a   : > { %v4111_v2 = vmul.f32 %v8679_v62, %v8679_v62  ;;  %v4058_v12 = vsel %vm1413_vm4, %v8679_v62, 0.0 }
 0x62b   : > { %v4110_v27 = vmul.f32 %v8668_v18, %v8668_v18  ;;  %v4056_v52 = vsel %vm1413_vm4, %v8668_v18, 0.0 }
 0x62c   : > { %v4057_v17 = vadd.f32 %v4056_v52, %v4055_v47  ;;  %v4159_v22 = vsel %vm1413_vm4, %v4111_v2, 0.0 }
 0x62d   : > { %v4157_v4 = vsel %vm1413_vm4, %v4110_v27, 0.0 }
 0x62e   : > { %v4158_v50 = vadd.f32 %v4157_v4, %v4156_v43  ;;  %v4059_v63 = vadd.f32 %v4058_v12, %v4057_v17 }
 0x630   : > { %v4160_v1 = vadd.f32 %v4159_v22, %v4158_v50 }
 0x63f   : > { %v4637_v0 = vpop.f32.mrb[18].mxu1 }
 0x640   : > { %v8688_v61 = vadd.f32 %v4637_v0, %v8524_v55  ;;  %v3956_v24 = vpop.f32.mrb[19].mxu1 }
 0x641   : > { %v8693_v34 = vadd.f32 %v8524_v55, %v3956_v24 }
 0x642   : > { %v4113_v36 = vmul.f32 %v8688_v61, %v8688_v61  ;;  %v4062_v45 = vsel %vm1413_vm4, %v8688_v61, 0.0 }
 0x643   : > { %v4060_v39 = vsel %vm1413_vm4, %v8693_v34, 0.0  ;;  %v4112_v8 = vmul.f32 %v8693_v34, %v8693_v34 }
 0x644   : > { %v4061_v42 = vadd.f32 %v4060_v39, %v4059_v63  ;;  %v4163_v37 = vsel %vm1413_vm4, %v4113_v36, 0.0 }
 0x645   : > { %v4161_v21 = vsel %vm1413_vm4, %v4112_v8, 0.0 }
 0x646   : > { %v4162_v25 = vadd.f32 %v4161_v21, %v4160_v1  ;;  %v4063_v44 = vadd.f32 %v4062_v45, %v4061_v42 }
 0x648   : > { %v4164_v16 = vadd.f32 %v4163_v37, %v4162_v25 }
 0x657   : > { %v4640_v57 = vpop.f32.mrb[20].mxu1 }
 0x658   : > { %v8707_v40 = vadd.f32 %v4640_v57, %v8524_v55  ;;  %v3966_v48 = vpop.f32.mrb[21].mxu1 }
 0x659   : > { %v8710_v11 = vadd.f32 %v8524_v55, %v3966_v48 }
 0x65a   : > { %v4115_v38 = vmul.f32 %v8707_v40, %v8707_v40  ;;  %v4066_v53 = vsel %vm1413_vm4, %v8707_v40, 0.0 }
 0x65b   : > { %v4064_v56 = vsel %vm1413_vm4, %v8710_v11, 0.0  ;;  %v4114_v32 = vmul.f32 %v8710_v11, %v8710_v11 }
 0x65c   : > { %v4065_v20 = vadd.f32 %v4064_v56, %v4063_v44  ;;  %v4167_v13 = vsel %vm1413_vm4, %v4115_v38, 0.0 }
 0x65d   : > { %v4165_v5 = vsel %vm1413_vm4, %v4114_v32, 0.0 }
 0x65e   : > { %v4166_v23 = vadd.f32 %v4165_v5, %v4164_v16  ;;  %v4067_v54 = vadd.f32 %v4066_v53, %v4065_v20 }
 0x660   : > { %v4168_v9 = vadd.f32 %v4167_v13, %v4166_v23 }
 0x66f   : > { %v4643_v28 = vpop.f32.mrb[22].mxu1 }
 0x670   : > { %v8723_v58 = vadd.f32 %v4643_v28, %v8524_v55  ;;  %v3976_v27 = vpop.f32.mrb[23].mxu1 }
 0x671   : > { %v8726_v3 = vadd.f32 %v8524_v55, %v3976_v27 }
 0x672   : > { %v4117_v7 = vmul.f32 %v8723_v58, %v8723_v58  ;;  %v4070_v4 = vsel %vm1413_vm4, %v8723_v58, 0.0 }
 0x673   : > { %v4068_v52 = vsel %vm1413_vm4, %v8726_v3, 0.0  ;;  %v4116_v47 = vmul.f32 %v8726_v3, %v8726_v3 }
 0x674   : > { %v4069_v29 = vadd.f32 %v4068_v52, %v4067_v54  ;;  %v4171_v0 = vsel %vm1413_vm4, %v4117_v7, 0.0 }
 0x675   : > { %v4169_v17 = vsel %vm1413_vm4, %v4116_v47, 0.0 }
 0x676   : > { %v4170_v43 = vadd.f32 %v4169_v17, %v4168_v9  ;;  %v4071_v2 = vadd.f32 %v4070_v4, %v4069_v29 }
 0x678   : > { %v4172_v50 = vadd.f32 %v4171_v0, %v4170_v43 }
 0x68a   : > { %v4646_v24 = vpop.f32.mrb[24].mxu1 }
 0x68b   : > { %v8739_v12 = vadd.f32 %v4646_v24, %v8524_v55  ;;  %v3986_v63 = vpop.f32.mrb[25].mxu1 }
 0x68c   : > { %v8742_v22 = vadd.f32 %v8524_v55, %v3986_v63 }
 0x68d   : > { %v4119_v36 = vmul.f32 %v8739_v12, %v8739_v12  ;;  %v4074_v1 = vsel %vm1413_vm4, %v8739_v12, 0.0 }
 0x68e   : > { %v4072_v39 = vsel %vm1413_vm4, %v8742_v22, 0.0  ;;  %v4118_v8 = vmul.f32 %v8742_v22, %v8742_v22 }
 0x68f   : > { %v4073_v42 = vadd.f32 %v4072_v39, %v4071_v2  ;;  %v4175_v44 = vsel %vm1413_vm4, %v4119_v36, 0.0 }
 0x690   : > { %v4173_v45 = vsel %vm1413_vm4, %v4118_v8, 0.0 }
 0x691   : > { %v4174_v21 = vadd.f32 %v4173_v45, %v4172_v50  ;;  %v4075_v25 = vadd.f32 %v4074_v1, %v4073_v42 }
 0x693   : > { %v4176_v37 = vadd.f32 %v4175_v44, %v4174_v21 }
 0x6a6   : > { %v4649_v16 = vpop.f32.mrb[26].mxu1 }
 0x6a7   : > { %v8755_v57 = vadd.f32 %v4649_v16, %v8524_v55  ;;  %v3996_v48 = vpop.f32.mrb[27].mxu1 }
 0x6a8   : > { %v8758_v38 = vadd.f32 %v8524_v55, %v3996_v48 }
 0x6a9   : > { %v4121_v56 = vmul.f32 %v8755_v57, %v8755_v57  ;;  %v4078_v5 = vsel %vm1413_vm4, %v8755_v57, 0.0 }
 0x6aa   : > { %v4076_v32 = vsel %vm1413_vm4, %v8758_v38, 0.0  ;;  %v4120_v20 = vmul.f32 %v8758_v38, %v8758_v38 }
 0x6ab   : > { %v4077_v53 = vadd.f32 %v4076_v32, %v4075_v25  ;;  %v4179_v9 = vsel %vm1413_vm4, %v4121_v56, 0.0 }
 0x6ac   : > { %v4177_v23 = vsel %vm1413_vm4, %v4120_v20, 0.0 }
 0x6ad   : > { %v4178_v54 = vadd.f32 %v4177_v23, %v4176_v37  ;;  %v4079_v13 = vadd.f32 %v4078_v5, %v4077_v53 }
 0x6af   : > { %v4180_v28 = vadd.f32 %v4179_v9, %v4178_v54 }
 0x6c2   : > { %v4652_v27 = vpop.f32.mrb[28].mxu1 }
 0x6c3   : > { %v8771_v7 = vadd.f32 %v4652_v27, %v8524_v55  ;;  %v4006_v52 = vpop.f32.mrb[29].mxu1 }
 0x6c4   : > { %v8774_v47 = vadd.f32 %v8524_v55, %v4006_v52 }
 0x6c5   : > { %v4123_v29 = vmul.f32 %v8771_v7, %v8771_v7  ;;  %v4082_v24 = vsel %vm1413_vm4, %v8771_v7, 0.0 }
 0x6c6   : > { %v4080_v4 = vsel %vm1413_vm4, %v8774_v47, 0.0  ;;  %v4122_v17 = vmul.f32 %v8774_v47, %v8774_v47  ;;  %v4655_v43 = vpop.f32.mrb[30].mxu1 }
 0x6c7   : > { %v4081_v2 = vadd.f32 %v4080_v4, %v4079_v13  ;;  %v8783_v0 = vadd.f32 %v4655_v43, %v8524_v55  ;;  %v4016_v50 = vpop.f32.mrb[31].mxu1  ;;  %v4183_v42 = vsel %vm1413_vm4, %v4123_v29, 0.0 }
 0x6c8   : > { %v4181_v63 = vsel %vm1413_vm4, %v4122_v17, 0.0  ;;  %v8789_v36 = vadd.f32 %v8524_v55, %v4016_v50 }
 0x6c9   : > { %v4182_v39 = vadd.f32 %v4181_v63, %v4180_v28  ;;  %v4083_v8 = vadd.f32 %v4082_v24, %v4081_v2  ;;  %v4125_v1 = vmul.f32 %v8783_v0, %v8783_v0  ;;  %v4086_v37 = vsel %vm1413_vm4, %v8783_v0, 0.0 }
 0x6ca   : > { %v4084_v45 = vsel %vm1413_vm4, %v8789_v36, 0.0  ;;  %v4124_v21 = vmul.f32 %v8789_v36, %v8789_v36 }
 0x6cb   : > { %v4085_v25 = vadd.f32 %v4084_v45, %v4083_v8  ;;  %v4184_v44 = vadd.f32 %v4183_v42, %v4182_v39  ;;  %v4187_v56 = vsel %vm1413_vm4, %v4125_v1, 0.0 }
 0x6cc   : > { %v4185_v55 = vsel %vm1413_vm4, %v4124_v21, 0.0 }
 0x6cd   : > { %v4087_v16 = vadd.f32 %v4086_v37, %v4085_v25  ;;  %v4186_v48 = vadd.f32 %v4185_v55, %v4184_v44 }
 0x6cf   : > { %v4088_v32 = vrot.slane %v4087_v16, 4  ;;  %v4188_v20 = vadd.f32 %v4187_v56, %v4186_v48 }
 0x6d1   : > { %v4089_v53 = vadd.f32 %v4088_v32, %v4087_v16  ;;  %v4189_v5 = vrot.slane %v4188_v20, 4 }
 0x6d3   : > { %v4090_v23 = vrot.slane %v4089_v53, 2  ;;  %v4190_v54 = vadd.f32 %v4189_v5, %v4188_v20 }
 0x6d5   : > { %v4091_v13 = vadd.f32 %v4090_v23, %v4089_v53  ;;  %v4191_v9 = vrot.slane %v4190_v54, 2 }
 0x6d7   : > { %v4092_v28 = vrot.slane %v4091_v13, 1  ;;  %v4192_v27 = vadd.f32 %v4191_v9, %v4190_v54 }
 0x6d9   : > { %v4093_v52 = vadd.f32 %v4092_v28, %v4091_v13  ;;  %v4193_v29 = vrot.slane %v4192_v27, 1 }
 0x6db   : > { %v4194_v4 = vadd.f32 %v4193_v29, %v4192_v27  ;;  %v8802_v17 = vmul.f32 0.00390625, %v4093_v52 }
 0x6dd   : > { %v4196_v43 = vmul.f32 0.00390625, %v4194_v4  ;;  %v4197_v2 = vmul.f32 %v8802_v17, %v8802_v17  ;;  %v4218_v63 = vsub.f32 %v8693_v34, %v8802_v17  ;;  %v4219_v39 = vsub.f32 %v8688_v61, %v8802_v17 }
 0x6de   : > { %v4220_v8 = vsub.f32 %v8710_v11, %v8802_v17  ;;  %v4221_v42 = vsub.f32 %v8707_v40, %v8802_v17  ;;  %v4222_v1 = vsub.f32 %v8726_v3, %v8802_v17  ;;  %v4223_v45 = vsub.f32 %v8723_v58, %v8802_v17 }
 0x6df   : > { %v4198_v50 = vsub.f32 %v4196_v43, %v4197_v2  ;;  %v4224_v21 = vsub.f32 %v8742_v22, %v8802_v17  ;;  %v4225_v34 = vsub.f32 %v8739_v12, %v8802_v17  ;;  %v4226_v61 = vsub.f32 %v8758_v38, %v8802_v17 }
 0x6e0   : > { %v4227_v11 = vsub.f32 %v8755_v57, %v8802_v17  ;;  %v4228_v40 = vsub.f32 %v8774_v47, %v8802_v17  ;;  %v4229_v3 = vsub.f32 %v8771_v7, %v8802_v17  ;;  %v4230_v58 = vsub.f32 %v8789_v36, %v8802_v17 }
 0x6e1   : > { %v4199_v24 = vmax.f32 %v4198_v50, 0.0  ;;  %v4231_v22 = vsub.f32 %v8783_v0, %v8802_v17  ;;  %v4200_v12 = vsub.f32 %v8532_v35, %v8802_v17  ;;  %v4201_v57 = vsub.f32 %v8528_v41, %v8802_v17 }
 0x6e2   : > { %v4202_v38 = vsub.f32 %v8536_v31, %v8802_v17  ;;  %v4203_v7 = vsub.f32 %v8556_v59, %v8802_v17  ;;  %v4204_v47 = vsub.f32 %v8562_v33, %v8802_v17  ;;  %v4205_v0 = vsub.f32 %v8573_v51, %v8802_v17 }
 0x6e3   : > { %v4232_v25 = vadd.f32 1e-05, %v4199_v24  ;;  %v4206_v36 = vsub.f32 %v8579_v30, %v8802_v17  ;;  %v4207_v35 = vsub.f32 %v8591_v26, %v8802_v17  ;;  %v4208_v41 = vsub.f32 %v8597_v49, %v8802_v17 }
 0x6e4   : > { %v4209_v31 = vsub.f32 %v8609_v6, %v8802_v17  ;;  %v4210_v59 = vsub.f32 %v8615_v60, %v8802_v17  ;;  %v4211_v33 = vsub.f32 %v8627_v10, %v8802_v17  ;;  %v4212_v51 = vsub.f32 %v8633_v14, %v8802_v17 }
 0x6e5   : > { %4690 = vrsqrt.f32 %v4232_v25  ;;  %v4213_v30 = vsub.f32 %v8645_v19, %v8802_v17  ;;  %v4214_v26 = vsub.f32 %v8651_v15, %v8802_v17  ;;  %v4215_v49 = vsub.f32 %v8663_v46, %v8802_v17  ;;  %v4698_v25 = vld [vmem:[%s4786_s23 + $0x30] sm:$0xff] }
 0x6e6   : > { %v4216_v6 = vsub.f32 %v8668_v18, %v8802_v17  ;;  %v4217_v60 = vsub.f32 %v8679_v62, %v8802_v17 }
 0x6ef   : > { %v4691_v44 = vpop.eup %4690 }
 0x6f0   : > { %v4234_v10 = vmul.f32 %v4691_v44, %v4200_v12  ;;  %v4235_v37 = vmul.f32 %v4691_v44, %v4201_v57  ;;  %v4236_v55 = vmul.f32 %v4691_v44, %v4202_v38  ;;  %v4237_v14 = vmul.f32 %v4691_v44, %v4203_v7  ;;  %v4699_v57 = vld [vmem:[%s4786_s23 + $0x38] sm:$0xff]  ;;  %v4700_v7 = vld [vmem:[%s4786_s23 + $0x40] sm:$0xff] }
 0x6f1   : > { %v4238_v16 = vmul.f32 %v4691_v44, %v4204_v47  ;;  %v4239_v48 = vmul.f32 %v4691_v44, %v4205_v0  ;;  %v4240_v19 = vmul.f32 %v4691_v44, %v4206_v36  ;;  %v4241_v56 = vmul.f32 %v4691_v44, %v4207_v35  ;;  %v4701_v0 = vld [vmem:[%s4786_s23 + $0x48] sm:$0xff]  ;;  %v4702_v35 = vld [vmem:[%s4786_s23 + $0x50] sm:$0xff] }
 0x6f2   : > { %v4242_v32 = vmul.f32 %v4691_v44, %v4208_v41  ;;  %v4243_v20 = vmul.f32 %v4691_v44, %v4209_v31  ;;  %v4244_v15 = vmul.f32 %v4691_v44, %v4210_v59  ;;  %v4245_v53 = vmul.f32 %v4691_v44, %v4211_v33  ;;  %v4703_v31 = vld [vmem:[%s4786_s23 + $0x58] sm:$0xff]  ;;  %v4704_v33 = vld [vmem:[%s4786_s23 + $0x60] sm:$0xff] }
 0x6f3   : > { %v4246_v5 = vmul.f32 %v4691_v44, %v4212_v51  ;;  %v4247_v46 = vmul.f32 %v4691_v44, %v4213_v30  ;;  %v4248_v23 = vmul.f32 %v4691_v44, %v4214_v26  ;;  %v4249_v18 = vmul.f32 %v4691_v44, %v4215_v49  ;;  %v4705_v30 = vld [vmem:[%s4786_s23 + $0x68] sm:$0xff]  ;;  %v4706_v26 = vld [vmem:[%s4786_s23 + $0x70] sm:$0xff] }
 0x6f4   : > { %v4250_v54 = vmul.f32 %v4691_v44, %v4216_v6  ;;  %v4251_v13 = vmul.f32 %v4691_v44, %v4217_v60  ;;  %v4252_v62 = vmul.f32 %v4691_v44, %v4218_v63  ;;  %v4253_v9 = vmul.f32 %v4691_v44, %v4219_v39  ;;  %v4707_v6 = vld [vmem:[%s4786_s23 + $0x78] sm:$0xff] }
 0x6f5   : > { %v8870_v28 = vmul.f32 %v4691_v44, %v4220_v8  ;;  %v8872_v27 = vmul.f32 %v4691_v44, %v4221_v42  ;;  %v8874_v52 = vmul.f32 %v4691_v44, %v4222_v1  ;;  %v8876_v29 = vmul.f32 %v4691_v44, %v4223_v45  ;;  %v4692_v8 = vld [vmem:[%s4786_s23] sm:$0xff]  ;;  %v4693_v1 = vld [vmem:[%s4786_s23 + $0x8] sm:$0xff] }
 0x6f6   : > { %v8878_v4 = vmul.f32 %v4691_v44, %v4224_v21  ;;  %v8880_v17 = vmul.f32 %v4691_v44, %v4225_v34  ;;  %v8882_v43 = vmul.f32 %v4691_v44, %v4226_v61  ;;  %v8884_v2 = vmul.f32 %v4691_v44, %v4227_v11  ;;  %v4694_v21 = vld [vmem:[%s4786_s23 + $0x10] sm:$0xff]  ;;  %v4695_v61 = vld [vmem:[%s4786_s23 + $0x18] sm:$0xff] }
 0x6f7   : > { %v8893_v50 = vmul.f32 %v4691_v44, %v4228_v40  ;;  %v8895_v24 = vmul.f32 %v4691_v44, %v4229_v3  ;;  %v8897_v63 = vmul.f32 %v4691_v44, %v4230_v58  ;;  %v8899_v39 = vmul.f32 %v4691_v44, %v4231_v22  ;;  %v4696_v40 = vld [vmem:[%s4786_s23 + $0x20] sm:$0xff]  ;;  %v4697_v58 = vld [vmem:[%s4786_s23 + $0x28] sm:$0xff] }
 0x6f8   : > { %v4266_v42 = vadd.f32 %v4692_v8, %v4234_v10  ;;  %v4267_v45 = vadd.f32 %v4693_v1, %v4235_v37  ;;  %v4268_v34 = vadd.f32 %v4694_v21, %v4236_v55  ;;  %v4269_v11 = vadd.f32 %v4695_v61, %v4237_v14  ;;  %v4708_v10 = vld [vmem:[%s4786_s23 + $0x80] sm:$0xff]  ;;  %v4709_v55 = vld [vmem:[%s4786_s23 + $0x88] sm:$0xff]  ;;  %v4722_v8 = vld [vmem:[%s4786_s23 + $0xf0] sm:$0xff] }
 0x6f9   : > { %v4270_v3 = vadd.f32 %v4696_v40, %v4238_v16  ;;  %v4271_v22 = vadd.f32 %v4697_v58, %v4239_v48  ;;  %v4272_v12 = vadd.f32 %v4698_v25, %v4240_v19  ;;  %v4273_v38 = vadd.f32 %v4699_v57, %v4241_v56  ;;  %v4710_v16 = vld [vmem:[%s4786_s23 + $0x90] sm:$0xff]  ;;  %v4711_v19 = vld [vmem:[%s4786_s23 + $0x98] sm:$0xff] }
 0x6fa   : > { %v4274_v47 = vadd.f32 %v4700_v7, %v4242_v32  ;;  %v4275_v36 = vadd.f32 %v4701_v0, %v4243_v20  ;;  %v4276_v41 = vadd.f32 %v4702_v35, %v4244_v15  ;;  %v4277_v59 = vadd.f32 %v4703_v31, %v4245_v53  ;;  %4298 = vst.msk [vmem:[%s8891_s12] sm:$0xff] %vm1413_vm4, %v4266_v42  ;;  %v4712_v32 = vld [vmem:[%s4786_s23 + $0xa0] sm:$0xff]  ;;  %v4713_v15 = vld [vmem:[%s4786_s23 + $0xa8] sm:$0xff]  ;;  %v4723_v1 = vld [vmem:[%s4786_s23 + $0xf8] sm:$0xff] }
 0x6fb   : > { %4299 = vst.msk [vmem:[%s8891_s12 + $0x8] sm:$0xff] %vm1413_vm4, %v4267_v45  ;;  %4300 = vst.msk [vmem:[%s8891_s12 + $0x10] sm:$0xff] %vm1413_vm4, %v4268_v34  ;;  %v4278_v51 = vadd.f32 %v4704_v33, %v4246_v5  ;;  %v4279_v44 = vadd.f32 %v4705_v30, %v4247_v46  ;;  %v4280_v49 = vadd.f32 %v4706_v26, %v4248_v23  ;;  %v4714_v5 = vld [vmem:[%s4786_s23 + $0xb0] sm:$0xff]  ;;  %v4715_v23 = vld [vmem:[%s4786_s23 + $0xb8] sm:$0xff] }
 0x6fc   : > { %4301 = vst.msk [vmem:[%s8891_s12 + $0x18] sm:$0xff] %vm1413_vm4, %v4269_v11  ;;  %v4281_v60 = vadd.f32 %v4707_v6, %v4249_v18  ;;  %4302 = vst.msk [vmem:[%s8891_s12 + $0x20] sm:$0xff] %vm1413_vm4, %v4270_v3  ;;  %v4282_v37 = vadd.f32 %v4708_v10, %v4250_v54  ;;  %v4283_v14 = vadd.f32 %v4709_v55, %v4251_v13  ;;  %v4716_v54 = vld [vmem:[%s4786_s23 + $0xc0] sm:$0xff] }
 0x6fd   : > { %4303 = vst.msk [vmem:[%s8891_s12 + $0x28] sm:$0xff] %vm1413_vm4, %v4271_v22  ;;  %4304 = vst.msk [vmem:[%s8891_s12 + $0x30] sm:$0xff] %vm1413_vm4, %v4272_v12  ;;  %v4284_v48 = vadd.f32 %v4710_v16, %v4252_v62  ;;  %v4285_v56 = vadd.f32 %v4711_v19, %v4253_v9  ;;  %v4286_v20 = vadd.f32 %v4712_v32, %v8870_v28  ;;  %v4717_v62 = vld [vmem:[%s4786_s23 + $0xc8] sm:$0xff]  ;;  %v4718_v28 = vld [vmem:[%s4786_s23 + $0xd0] sm:$0xff] }
 0x6fe   : > { %4305 = vst.msk [vmem:[%s8891_s12 + $0x38] sm:$0xff] %vm1413_vm4, %v4273_v38  ;;  %4306 = vst.msk [vmem:[%s8891_s12 + $0x40] sm:$0xff] %vm1413_vm4, %v4274_v47  ;;  %v4287_v53 = vadd.f32 %v4713_v15, %v8872_v27  ;;  %v4288_v46 = vadd.f32 %v4714_v5, %v8874_v52  ;;  %v4289_v18 = vadd.f32 %v4715_v23, %v8876_v29  ;;  %v4719_v52 = vld [vmem:[%s4786_s23 + $0xd8] sm:$0xff] }
 0x6ff   : > { %4307 = vst.msk [vmem:[%s8891_s12 + $0x48] sm:$0xff] %vm1413_vm4, %v4275_v36  ;;  %4308 = vst.msk [vmem:[%s8891_s12 + $0x50] sm:$0xff] %vm1413_vm4, %v4276_v41  ;;  %v4290_v13 = vadd.f32 %v4716_v54, %v8878_v4  ;;  %v4291_v9 = vadd.f32 %v4717_v62, %v8880_v17  ;;  %v4292_v27 = vadd.f32 %v4718_v28, %v8882_v43  ;;  %v4720_v4 = vld [vmem:[%s4786_s23 + $0xe0] sm:$0xff]  ;;  %v4721_v43 = vld [vmem:[%s4786_s23 + $0xe8] sm:$0xff] }
 0x700   : > { %4309 = vst.msk [vmem:[%s8891_s12 + $0x58] sm:$0xff] %vm1413_vm4, %v4277_v59  ;;  %4310 = vst.msk [vmem:[%s8891_s12 + $0x60] sm:$0xff] %vm1413_vm4, %v4278_v51  ;;  %v4293_v29 = vadd.f32 %v4719_v52, %v8884_v2  ;;  %v4294_v17 = vadd.f32 %v4720_v4, %v8893_v50  ;;  %v4295_v2 = vadd.f32 %v4721_v43, %v8895_v24 }
 0x701   : > { %4311 = vst.msk [vmem:[%s8891_s12 + $0x68] sm:$0xff] %vm1413_vm4, %v4279_v44  ;;  %4312 = vst.msk [vmem:[%s8891_s12 + $0x70] sm:$0xff] %vm1413_vm4, %v4280_v49  ;;  %v4296_v42 = vadd.f32 %v4722_v8, %v8897_v63  ;;  %v4297_v45 = vadd.f32 %v4723_v1, %v8899_v39 }
 0x702   : > { %4313 = vst.msk [vmem:[%s8891_s12 + $0x78] sm:$0xff] %vm1413_vm4, %v4281_v60  ;;  %4314 = vst.msk [vmem:[%s8891_s12 + $0x80] sm:$0xff] %vm1413_vm4, %v4282_v37 }
 0x703   : > { %4315 = vst.msk [vmem:[%s8891_s12 + $0x88] sm:$0xff] %vm1413_vm4, %v4283_v14  ;;  %4316 = vst.msk [vmem:[%s8891_s12 + $0x90] sm:$0xff] %vm1413_vm4, %v4284_v48 }
 0x704   : > { %4317 = vst.msk [vmem:[%s8891_s12 + $0x98] sm:$0xff] %vm1413_vm4, %v4285_v56  ;;  %4318 = vst.msk [vmem:[%s8891_s12 + $0xa0] sm:$0xff] %vm1413_vm4, %v4286_v20 }
 0x705   : > { %4319 = vst.msk [vmem:[%s8891_s12 + $0xa8] sm:$0xff] %vm1413_vm4, %v4287_v53  ;;  %4320 = vst.msk [vmem:[%s8891_s12 + $0xb0] sm:$0xff] %vm1413_vm4, %v4288_v46 }
 0x706   : > { %4321 = vst.msk [vmem:[%s8891_s12 + $0xb8] sm:$0xff] %vm1413_vm4, %v4289_v18  ;;  %4322 = vst.msk [vmem:[%s8891_s12 + $0xc0] sm:$0xff] %vm1413_vm4, %v4290_v13 }
 0x707   : > { %4323 = vst.msk [vmem:[%s8891_s12 + $0xc8] sm:$0xff] %vm1413_vm4, %v4291_v9  ;;  %4324 = vst.msk [vmem:[%s8891_s12 + $0xd0] sm:$0xff] %vm1413_vm4, %v4292_v27 }
 0x708   : > { %4325 = vst.msk [vmem:[%s8891_s12 + $0xd8] sm:$0xff] %vm1413_vm4, %v4293_v29  ;;  %4326 = vst.msk [vmem:[%s8891_s12 + $0xe0] sm:$0xff] %vm1413_vm4, %v4294_v17 }
 0x709   : > { %4327 = vst.msk [vmem:[%s8891_s12 + $0xe8] sm:$0xff] %vm1413_vm4, %v4295_v2  ;;  %4328 = vst.msk [vmem:[%s8891_s12 + $0xf0] sm:$0xff] %vm1413_vm4, %v4296_v42 }
 0x70a   : > { %4329 = vst.msk [vmem:[%s8891_s12 + $0xf8] sm:$0xff] %vm1413_vm4, %v4297_v45 }
 0x70b PF: > { %s15_s18 = sadd.s32 1, %s4730_s18  }
 0x70c   : > { %p12_p4 = scmp.ge.s32.totalorder %s15_s18, 4  }
 0x70e   :  { %14 = sbr.rel (!%p12_p4) target bundleno = 1 (0x1), region = 70 }

</bundles_post_ra>
